<compile_context>
chip_gen: v5e
topology: v5e:2x2
jax: 0.10.0
libtpu: 0.0.40
codegen_flags: <defaults>
</compile_context>

<pallas_src>
import functools
import math

import jax
import jax.numpy as jnp
import numpy as np
from jax import lax
from jax.experimental import pallas as pl
from jax.experimental.pallas import tpu as pltpu


_NEG_BIG = -1e30      # finite "minus infinity" for the length mask (NaN-safe)
_LANE = 128
_SUBLANE = 8


def _round_up(x, m):
    return ((x + m - 1) // m) * m


def _pad_cols(a, n):
    p = n - a.shape[1]
    return a if p == 0 else jnp.concatenate(
        [a, jnp.zeros((a.shape[0], p), a.dtype)], axis=1)


def _pad_rows(a, n):
    p = n - a.shape[0]
    return a if p == 0 else jnp.concatenate(
        [a, jnp.zeros((p, a.shape[1]), a.dtype)], axis=0)


def _pad_gate_blocks(w, h, h_pad):
    """(in, 4h) in PyTorch gate order i,f,g,o -> (in, 4*h_pad): each gate block
    zero-padded to a 128-lane boundary so in-kernel gate slices are lane-aligned."""
    return jnp.concatenate(
        [_pad_cols(w[:, k * h:(k + 1) * h], h_pad) for k in range(4)], axis=1)


# ----------------------------------------------------------------------------
# The fused kernel: one batch tile per grid step.
# ----------------------------------------------------------------------------
def _set_encoder_kernel(lens_ref, state_ref, *refs, n_layers, n_shuffle,
                        has_proj, e_pad, h_pad, normalize):
    """refs = [w0,b0,...,w_{k-1},b_{k-1}, (wa,), w_cat, b_cat,
               att_out, h_out, attw_out]"""
    att_out, h_out, attw_out = refs[-3], refs[-2], refs[-1]
    wrefs = refs[:-3]
    emb_wb = wrefs[:2 * n_layers]
    k = 2 * n_layers
    wa_ref = wrefs[k] if has_proj else None
    wcat_ref = wrefs[k + 1] if has_proj else wrefs[k]
    bcat_ref = wrefs[k + 2] if has_proj else wrefs[k + 1]

    tile_n, l_pad, d = state_ref.shape

    # ---- embedder MLP over every timestep of this batch tile (activations
    # stay in VMEM/vregs; no HBM round trip for `embedded`) ----
    x = state_ref[...].reshape(tile_n * l_pad, d)
    for li in range(n_layers):
        w = emb_wb[2 * li][...]
        b = emb_wb[2 * li + 1][...]
        x = jnp.dot(x, w, preferred_element_type=jnp.float32) + b
        if li < n_layers - 1:                 # ReLU on hidden layers only
            x = jnp.maximum(x, 0.0)
    if normalize:                             # F.normalize(dim=1) via EUP rsqrt
        ss = jnp.sum(x * x, axis=1, keepdims=True)
        x = x * lax.rsqrt(jnp.maximum(ss, 1e-24))
    m = x.reshape(tile_n, l_pad, e_pad)       # (N, L, E_pad); padded lanes = 0

    # ---- length mask built in-kernel: 0 for valid slots, -1e30 for padding ----
    pos = lax.broadcasted_iota(jnp.int32, (tile_n, l_pad), 1)
    neg = jnp.where(pos < lens_ref[...], 0.0, _NEG_BIG)

    wcat = wcat_ref[...]                      # (E_pad + H_pad, 4*H_pad)
    bcat = bcat_ref[...]                      # (1, 4*H_pad)
    wa = wa_ref[...] if has_proj else None    # (H_pad, E_pad)

    qt = jnp.zeros((tile_n, h_pad), jnp.float32)   # carried in vregs (no scratch)
    ct = jnp.zeros((tile_n, h_pad), jnp.float32)
    att = jnp.zeros((tile_n, e_pad), jnp.float32)
    attw = jnp.zeros((tile_n, l_pad), jnp.float32)

    for _ in range(n_shuffle):                # small static constant -> unroll
        # simple attention; q projection skipped entirely when it is identity
        q = (jnp.dot(qt, wa, preferred_element_type=jnp.float32)
             if has_proj else qt)                                  # (N, E_pad)
        # VPU broadcast-multiply + XLU reduce (no 1-wide batched MXU matmuls)
        logits = jnp.sum(m * q[:, None, :], axis=-1) + neg         # (N, L)
        lmax = jnp.max(logits, axis=1, keepdims=True)
        ex = jnp.exp(logits - lmax)
        attw = ex / jnp.sum(ex, axis=1, keepdims=True)             # exact softmax
        att = jnp.sum(attw[:, :, None] * m, axis=1)                # (N, E_pad)

        # LSTMCell: one fused MXU matmul per round; gate blocks 128-lane aligned
        gates = jnp.dot(jnp.concatenate([att, qt], axis=1), wcat,
                        preferred_element_type=jnp.float32) + bcat  # (N, 4*H_pad)
        sig = jax.nn.sigmoid(gates)           # one full-width EUP pass
        gi = sig[:, 0 * h_pad:1 * h_pad]
        gf = sig[:, 1 * h_pad:2 * h_pad]
        go = sig[:, 3 * h_pad:4 * h_pad]
        gg = jnp.tanh(gates[:, 2 * h_pad:3 * h_pad])
        ct = gf * ct + gi * gg                # padded lanes stay exactly 0
        qt = go * jnp.tanh(ct)

    att_out[...] = att                        # lane-dense (N, E_pad) stores
    h_out[...] = qt                           # lane-dense (N, H_pad) stores
    attw_out[...] = attw


# ----------------------------------------------------------------------------
# Parameter construction / preparation
# ----------------------------------------------------------------------------
def _init_linear(key, in_size, out_size, bias=True):
    kw, kb = jax.random.split(key)
    bound = 1.0 / math.sqrt(in_size)
    w = jax.random.uniform(kw, (in_size, out_size), jnp.float32, -bound, bound)
    b = (jax.random.uniform(kb, (1, out_size), jnp.float32, -bound, bound)
         if bias else jnp.zeros((1, out_size), jnp.float32))
    return w, b


def init_set_encoder_params(key, input_dim, embedder_hidden_sizes, embedded_dim,
                            lstm_size):
    """Raw (unpadded) parameters, deterministic PyTorch-style uniform init."""
    keys = jax.random.split(key, len(embedder_hidden_sizes) + 6)
    params = {}
    emb = []
    in_size = input_dim
    for idx, hdim in enumerate(embedder_hidden_sizes):
        emb.append(_init_linear(keys[idx], in_size, hdim))
        in_size = hdim
    emb.append(_init_linear(keys[len(embedder_hidden_sizes)], in_size,
                            embedded_dim))
    params["embedder"] = emb

    if embedded_dim != lstm_size:           # simple attention projection
        wa, _ = _init_linear(keys[-5], lstm_size, embedded_dim, bias=False)
        params["attention_w"] = wa
    else:
        params["attention_w"] = None        # identity: no matmul at all

    bound = 1.0 / math.sqrt(lstm_size)
    params["lstm_wih"] = jax.random.uniform(
        keys[-4], (embedded_dim, 4 * lstm_size), jnp.float32, -bound, bound)
    params["lstm_whh"] = jax.random.uniform(
        keys[-3], (lstm_size, 4 * lstm_size), jnp.float32, -bound, bound)
    b_ih = jax.random.uniform(keys[-2], (1, 4 * lstm_size), jnp.float32, -bound, bound)
    b_hh = jax.random.uniform(keys[-1], (1, 4 * lstm_size), jnp.float32, -bound, bound)
    params["lstm_b"] = b_ih + b_hh
    return params


def prepare_kernel_params(params, embedded_dim, lstm_size):
    """One-time prep: lane-pad to 128 and fuse the two LSTM weight matrices."""
    e_pad = _round_up(embedded_dim, _LANE)
    h_pad = _round_up(lstm_size, _LANE)
    emb = [(w, b) for (w, b) in params["embedder"][:-1]]
    w_last, b_last = params["embedder"][-1]
    emb.append((_pad_cols(w_last, e_pad), _pad_cols(b_last, e_pad)))
    wa = params["attention_w"]
    wa_p = None if wa is None else _pad_rows(_pad_cols(wa, e_pad), h_pad)
    wih_g = _pad_rows(_pad_gate_blocks(params["lstm_wih"], lstm_size, h_pad), e_pad)
    whh_g = _pad_rows(_pad_gate_blocks(params["lstm_whh"], lstm_size, h_pad), h_pad)
    return {
        "embedder": emb,
        "attention_w": wa_p,
        "lstm_wcat": jnp.concatenate([wih_g, whh_g], axis=0),   # (E_pad+H_pad, 4*H_pad)
        "lstm_bcat": _pad_gate_blocks(params["lstm_b"], lstm_size, h_pad),
        "e_pad": e_pad,
        "h_pad": h_pad,
    }


# ----------------------------------------------------------------------------
# SetEncoder forward (single fused pallas_call)
# ----------------------------------------------------------------------------
def set_encoder_forward(kparams, state, length, *, n_shuffle, n_features,
                        embedded_dim, lstm_size, normalize=False,
                        max_batch_tile=128):
    """Returns (encoded, weight_bookkeeping), matching SetEncoder.forward.

    `length` is host-side (python ints); data-dependent sizes (`nonzero`,
    `max_len`) are resolved at trace time, like the original's .cpu().numpy()
    host control flow.
    """
    assert state.ndim == 3
    assert n_shuffle >= 1
    B, L, D = state.shape
    length = [int(v) for v in length]
    nonzero = sum(1 for v in length if v > 0)

    weight_book = jnp.zeros((B, n_features), jnp.float32)
    if nonzero == 0:
        return jnp.zeros((B, lstm_size + embedded_dim), jnp.float32), weight_book

    e_pad = kparams["e_pad"]
    h_pad = kparams["h_pad"]
    len_nz = length[:nonzero]
    max_len = max(len_nz)                   # pack/pad round trip: seq = max(length)
    l_pad = _round_up(max_len, _SUBLANE)    # sublane-aligned seq dim
    tile_n = min(_round_up(nonzero, _SUBLANE), max_batch_tile)
    n_pad = _round_up(nonzero, tile_n)

    # Pad batch/seq; padded rows get length 0 so the in-kernel mask hides them.
    state_k = jnp.zeros((n_pad, l_pad, D), jnp.float32)
    state_k = state_k.at[:nonzero, :max_len, :].set(
        state[:nonzero, :max_len, :].astype(jnp.float32))
    lens_k = jnp.zeros((n_pad, 1), jnp.int32)
    lens_k = lens_k.at[:nonzero, 0].set(jnp.asarray(len_nz, jnp.int32))

    emb = kparams["embedder"]
    has_proj = kparams["attention_w"] is not None

    inputs = [lens_k, state_k]
    in_specs = [pl.BlockSpec((tile_n, 1), lambda i: (i, 0)),
                pl.BlockSpec((tile_n, l_pad, D), lambda i: (i, 0, 0))]
    for (w, b) in emb:
        inputs += [w, b]
        # constant index_map -> weights stay resident in VMEM across batch tiles
        in_specs += [pl.BlockSpec(w.shape, lambda i: (0, 0)),
                     pl.BlockSpec(b.shape, lambda i: (0, 0))]
    if has_proj:
        inputs.append(kparams["attention_w"])
        in_specs.append(pl.BlockSpec(kparams["attention_w"].shape, lambda i: (0, 0)))
    inputs += [kparams["lstm_wcat"], kparams["lstm_bcat"]]
    in_specs += [pl.BlockSpec(kparams["lstm_wcat"].shape, lambda i: (0, 0)),
                 pl.BlockSpec(kparams["lstm_bcat"].shape, lambda i: (0, 0))]

    att_p, h_p, attw_p = pl.pallas_call(
        functools.partial(_set_encoder_kernel, n_layers=len(emb),
                          n_shuffle=n_shuffle, has_proj=has_proj,
                          e_pad=e_pad, h_pad=h_pad, normalize=normalize),
        out_shape=(jax.ShapeDtypeStruct((n_pad, e_pad), jnp.float32),
                   jax.ShapeDtypeStruct((n_pad, h_pad), jnp.float32),
                   jax.ShapeDtypeStruct((n_pad, l_pad), jnp.float32)),
        grid=(n_pad // tile_n,),
        in_specs=in_specs,
        out_specs=(pl.BlockSpec((tile_n, e_pad), lambda i: (i, 0)),
                   pl.BlockSpec((tile_n, h_pad), lambda i: (i, 0)),
                   pl.BlockSpec((tile_n, l_pad), lambda i: (i, 0))),
        compiler_params=pltpu.CompilerParams(
            # "parallel" is portable across v5e/v6e/v7x; on v7x this independent
            # batch axis is the one to shard across the two TensorCores.
            dimension_semantics=("parallel",)),
    )(*inputs)

    attended = att_p[:nonzero, :embedded_dim]   # padded lanes are exactly 0
    qt = h_p[:nonzero, :lstm_size]
    encoded = jnp.concatenate([attended, qt], axis=1)
    if B > nonzero:
        encoded = jnp.concatenate(
            [encoded, jnp.zeros((B - nonzero, encoded.shape[1]), encoded.dtype)],
            axis=0)

    attn_w = attw_p[:nonzero, :max_len]
    # --- self.weight bookkeeping (numpy side effect in the original) ---
    # TODO(synk): as in the original, idx = int(val) * argmax can be out of
    # range / duplicated for non-one-hot encodings; numpy/JAX scatter semantics
    # differ in that case.
    tmp = state[:, :, 1:]
    val = jnp.max(tmp, axis=2)
    acq = jnp.argmax(tmp, axis=2)
    idx = (val.astype(jnp.int32) * acq.astype(jnp.int32))[:nonzero, :max_len]
    weight_book = weight_book.at[jnp.arange(nonzero)[:, None], idx].set(attn_w)
    return encoded, weight_book


# ----------------------------------------------------------------------------
# Pure-JAX reference (mirrors the PyTorch module) for correctness checking.
# ----------------------------------------------------------------------------
def set_encoder_reference(params, state, length, *, n_shuffle, n_features,
                          embedded_dim, lstm_size, normalize=False):
    B, L, D = state.shape
    length = [int(v) for v in length]
    nonzero = sum(1 for v in length if v > 0)
    wb = jnp.zeros((B, n_features), jnp.float32)
    if nonzero == 0:
        return jnp.zeros((B, lstm_size + embedded_dim), jnp.float32), wb
    len_nz = jnp.asarray(length[:nonzero], jnp.int32)
    max_len = max(length[:nonzero])
    x = state[:nonzero, :max_len, :].astype(jnp.float32).reshape(nonzero * max_len, D)
    layers = params["embedder"]
    for li, (w, b) in enumerate(layers):
        x = jnp.dot(x, w, precision="highest") + b
        if li < len(layers) - 1:
            x = jnp.maximum(x, 0.0)
    if normalize:
        x = x / jnp.maximum(jnp.linalg.norm(x, axis=1, keepdims=True), 1e-12)
    m = x.reshape(nonzero, max_len, embedded_dim)
    valid = jnp.arange(max_len)[None, :] < len_nz[:, None]
    m = m * valid[:, :, None].astype(m.dtype)       # pad_packed_sequence zeros
    qt = jnp.zeros((nonzero, lstm_size), jnp.float32)
    ct = jnp.zeros((nonzero, lstm_size), jnp.float32)
    wa = params["attention_w"]
    wih, whh, bias = params["lstm_wih"], params["lstm_whh"], params["lstm_b"]
    H = lstm_size
    att = w_soft = None
    for _ in range(n_shuffle):
        q = qt if wa is None else jnp.dot(qt, wa, precision="highest")
        logit = jnp.einsum("nle,ne->nl", m, q, precision="highest")
        logit = jnp.where(valid, logit, -jnp.inf)
        w_soft = jax.nn.softmax(logit, axis=1)
        att = jnp.einsum("nl,nle->ne", w_soft, m, precision="highest")
        gates = (jnp.dot(att, wih, precision="highest")
                 + jnp.dot(qt, whh, precision="highest") + bias)
        gi = jax.nn.sigmoid(gates[:, :H])
        gf = jax.nn.sigmoid(gates[:, H:2 * H])
        gg = jnp.tanh(gates[:, 2 * H:3 * H])
        go = jax.nn.sigmoid(gates[:, 3 * H:])
        ct = gf * ct + gi * gg
        qt = go * jnp.tanh(ct)
    encoded = jnp.concatenate([att, qt], axis=1)
    if B > nonzero:
        encoded = jnp.concatenate(
            [encoded, jnp.zeros((B - nonzero, encoded.shape[1]), encoded.dtype)],
            axis=0)
    tmp = state[:, :, 1:]
    val = jnp.max(tmp, axis=2)
    acq = jnp.argmax(tmp, axis=2)
    idx = (val.astype(jnp.int32) * acq.astype(jnp.int32))[:nonzero, :max_len]
    wb = wb.at[jnp.arange(nonzero)[:, None], idx].set(w_soft)
    return encoded, wb


# ----------------------------------------------------------------------------
if __name__ == "__main__":
    # Small config consistent with the module: state row = [value, one-hot(feature)]
    n_features = 7
    input_dim = 1 + n_features          # D = 8
    embedder_hidden_sizes = [32, 32]
    embedded_dim = 16
    lstm_size = 32
    n_shuffle = 3
    B, L = 4, 8

    key = jax.random.PRNGKey(0)
    k_state, k_feat, k_params = jax.random.split(key, 3)

    values = jax.random.normal(k_state, (B, L, 1), jnp.float32)
    feat_ids = jax.random.randint(k_feat, (B, L), 0, n_features)
    onehot = jax.nn.one_hot(feat_ids, n_features, dtype=jnp.float32)
    state = jnp.concatenate([values, onehot], axis=2)        # (4, 8, 8)

    # lengths sorted descending with zeros last (pack_padded_sequence contract)
    length = [8, 6, 3, 0]

    params = init_set_encoder_params(k_params, input_dim, embedder_hidden_sizes,
                                     embedded_dim, lstm_size)
    kparams = prepare_kernel_params(params, embedded_dim, lstm_size)

    encoded, weight_book = set_encoder_forward(
        kparams, state, length,
        n_shuffle=n_shuffle, n_features=n_features,
        embedded_dim=embedded_dim, lstm_size=lstm_size, normalize=False)
    encoded = jax.block_until_ready(encoded)
    weight_book = jax.block_until_ready(weight_book)

    # structural checks
    assert encoded.shape == (B, embedded_dim + lstm_size), encoded.shape
    assert weight_book.shape == (B, n_features), weight_book.shape
    assert bool(jnp.all(jnp.isfinite(encoded)))
    assert bool(jnp.all(encoded[3] == 0.0))      # zero-length row stays zero
    assert bool(jnp.all(weight_book[3] == 0.0))

    # numerical check vs a pure-JAX mirror of the PyTorch forward
    ref_enc, _ = set_encoder_reference(
        params, state, length, n_shuffle=n_shuffle, n_features=n_features,
        embedded_dim=embedded_dim, lstm_size=lstm_size, normalize=False)
    np.testing.assert_allclose(np.asarray(encoded), np.asarray(ref_enc),
                               rtol=2e-2, atol=2e-2)

    print("KERNEL_OK")
</pallas_src>

<mosaic_0001>
module attributes {stable_mosaic.version = 11 : i64} {
  func.func @_set_encoder_kernel(%arg0: i32, %arg1: memref<8x1xi32, #tpu.memory_space<vmem>>, %arg2: memref<8x8x8xf32, #tpu.memory_space<vmem>>, %arg3: memref<8x32xf32, #tpu.memory_space<vmem>>, %arg4: memref<1x32xf32, #tpu.memory_space<vmem>>, %arg5: memref<32x32xf32, #tpu.memory_space<vmem>>, %arg6: memref<1x32xf32, #tpu.memory_space<vmem>>, %arg7: memref<32x128xf32, #tpu.memory_space<vmem>>, %arg8: memref<1x128xf32, #tpu.memory_space<vmem>>, %arg9: memref<128x128xf32, #tpu.memory_space<vmem>>, %arg10: memref<256x512xf32, #tpu.memory_space<vmem>>, %arg11: memref<1x512xf32, #tpu.memory_space<vmem>>, %arg12: memref<8x128xf32, #tpu.memory_space<vmem>>, %arg13: memref<8x128xf32, #tpu.memory_space<vmem>>, %arg14: memref<8x8xf32, #tpu.memory_space<vmem>>) attributes {dimension_semantics = [#tpu.dimension_semantics<parallel>], iteration_bounds = array<i64: 1>, scalar_prefetch = 0 : i64, scratch_operands = 0 : i64, tpu.core_type = #tpu.core_type<tc>, window_params = [{transform_indices = @transform_0, window_bounds = array<i64: 8, 1>}, {transform_indices = @transform_1, window_bounds = array<i64: 8, 8, 8>}, {pipeline_mode = #tpu.pipeline_mode<synchronous>, transform_indices = @transform_2, window_bounds = array<i64: 8, 32>}, {pipeline_mode = #tpu.pipeline_mode<synchronous>, transform_indices = @transform_3, window_bounds = array<i64: 1, 32>}, {pipeline_mode = #tpu.pipeline_mode<synchronous>, transform_indices = @transform_4, window_bounds = array<i64: 32, 32>}, {pipeline_mode = #tpu.pipeline_mode<synchronous>, transform_indices = @transform_5, window_bounds = array<i64: 1, 32>}, {pipeline_mode = #tpu.pipeline_mode<synchronous>, transform_indices = @transform_6, window_bounds = array<i64: 32, 128>}, {pipeline_mode = #tpu.pipeline_mode<synchronous>, transform_indices = @transform_7, window_bounds = array<i64: 1, 128>}, {pipeline_mode = #tpu.pipeline_mode<synchronous>, transform_indices = @transform_8, window_bounds = array<i64: 128, 128>}, {pipeline_mode = #tpu.pipeline_mode<synchronous>, transform_indices = @transform_9, window_bounds = array<i64: 256, 512>}, {pipeline_mode = #tpu.pipeline_mode<synchronous>, transform_indices = @transform_10, window_bounds = array<i64: 1, 512>}, {transform_indices = @transform_11, window_bounds = array<i64: 8, 128>}, {transform_indices = @transform_12, window_bounds = array<i64: 8, 128>}, {transform_indices = @transform_13, window_bounds = array<i64: 8, 8>}]} {
    %c0 = arith.constant 0 : index
    %c0_0 = arith.constant 0 : index
    %c0_1 = arith.constant 0 : index
    %0 = vector.load %arg2[%c0, %c0_0, %c0_1] : memref<8x8x8xf32, #tpu.memory_space<vmem>>, vector<8x8x8xf32>
    %1 = vector.shape_cast %0 : vector<8x8x8xf32> to vector<64x8xf32>
    %c0_2 = arith.constant 0 : index
    %c0_3 = arith.constant 0 : index
    %2 = vector.load %arg3[%c0_2, %c0_3] : memref<8x32xf32, #tpu.memory_space<vmem>>, vector<8x32xf32>
    %c0_4 = arith.constant 0 : index
    %c0_5 = arith.constant 0 : index
    %3 = vector.load %arg4[%c0_4, %c0_5] : memref<1x32xf32, #tpu.memory_space<vmem>>, vector<1x32xf32>
    %cst = arith.constant dense<0.000000e+00> : vector<64x32xf32>
    %4 = tpu.matmul %1, %2, %cst {dimension_numbers = #tpu.dot_dimension_numbers<[1], [0], [0], [1], [0, 0, 1, 1], [], []>} : vector<64x8xf32>, vector<8x32xf32>, vector<64x32xf32> -> vector<64x32xf32>
    %5 = vector.broadcast %3 : vector<1x32xf32> to vector<64x32xf32>
    %6 = arith.addf %4, %5 : vector<64x32xf32>
    %cst_6 = arith.constant 0.000000e+00 : f32
    %7 = vector.broadcast %cst_6 : f32 to vector<64x32xf32>
    %8 = arith.maximumf %6, %7 : vector<64x32xf32>
    %c0_7 = arith.constant 0 : index
    %c0_8 = arith.constant 0 : index
    %9 = vector.load %arg5[%c0_7, %c0_8] : memref<32x32xf32, #tpu.memory_space<vmem>>, vector<32x32xf32>
    %c0_9 = arith.constant 0 : index
    %c0_10 = arith.constant 0 : index
    %10 = vector.load %arg6[%c0_9, %c0_10] : memref<1x32xf32, #tpu.memory_space<vmem>>, vector<1x32xf32>
    %cst_11 = arith.constant dense<0.000000e+00> : vector<64x32xf32>
    %11 = tpu.matmul %8, %9, %cst_11 {dimension_numbers = #tpu.dot_dimension_numbers<[1], [0], [0], [1], [0, 0, 1, 1], [], []>} : vector<64x32xf32>, vector<32x32xf32>, vector<64x32xf32> -> vector<64x32xf32>
    %12 = vector.broadcast %10 : vector<1x32xf32> to vector<64x32xf32>
    %13 = arith.addf %11, %12 : vector<64x32xf32>
    %cst_12 = arith.constant 0.000000e+00 : f32
    %14 = vector.broadcast %cst_12 : f32 to vector<64x32xf32>
    %15 = arith.maximumf %13, %14 : vector<64x32xf32>
    %c0_13 = arith.constant 0 : index
    %c0_14 = arith.constant 0 : index
    %16 = vector.load %arg7[%c0_13, %c0_14] : memref<32x128xf32, #tpu.memory_space<vmem>>, vector<32x128xf32>
    %c0_15 = arith.constant 0 : index
    %c0_16 = arith.constant 0 : index
    %17 = vector.load %arg8[%c0_15, %c0_16] : memref<1x128xf32, #tpu.memory_space<vmem>>, vector<1x128xf32>
    %cst_17 = arith.constant dense<0.000000e+00> : vector<64x128xf32>
    %18 = tpu.matmul %15, %16, %cst_17 {dimension_numbers = #tpu.dot_dimension_numbers<[1], [0], [0], [1], [0, 0, 1, 1], [], []>} : vector<64x32xf32>, vector<32x128xf32>, vector<64x128xf32> -> vector<64x128xf32>
    %19 = vector.broadcast %17 : vector<1x128xf32> to vector<64x128xf32>
    %20 = arith.addf %18, %19 : vector<64x128xf32>
    %21 = vector.shape_cast %20 : vector<64x128xf32> to vector<8x8x128xf32>
    %22 = tpu.iota {dimensions = array<i32: 1>} : vector<8x8xi32>
    %c0_18 = arith.constant 0 : index
    %c0_19 = arith.constant 0 : index
    %23 = vector.load %arg1[%c0_18, %c0_19] : memref<8x1xi32, #tpu.memory_space<vmem>>, vector<8x1xi32>
    %24 = vector.broadcast %23 : vector<8x1xi32> to vector<8x8xi32>
    %25 = arith.cmpi slt, %22, %24 : vector<8x8xi32>
    %cst_20 = arith.constant 0.000000e+00 : f32
    %cst_21 = arith.constant -1.000000e+30 : f32
    %26 = vector.broadcast %cst_20 : f32 to vector<8x8xf32>
    %27 = vector.broadcast %cst_21 : f32 to vector<8x8xf32>
    %28 = arith.select %25, %26, %27 : vector<8x8xi1>, vector<8x8xf32>
    %c0_22 = arith.constant 0 : index
    %c0_23 = arith.constant 0 : index
    %29 = vector.load %arg10[%c0_22, %c0_23] : memref<256x512xf32, #tpu.memory_space<vmem>>, vector<256x512xf32>
    %c0_24 = arith.constant 0 : index
    %c0_25 = arith.constant 0 : index
    %30 = vector.load %arg11[%c0_24, %c0_25] : memref<1x512xf32, #tpu.memory_space<vmem>>, vector<1x512xf32>
    %c0_26 = arith.constant 0 : index
    %c0_27 = arith.constant 0 : index
    %31 = vector.load %arg9[%c0_26, %c0_27] : memref<128x128xf32, #tpu.memory_space<vmem>>, vector<128x128xf32>
    %cst_28 = arith.constant 0.000000e+00 : f32
    %32 = vector.broadcast %cst_28 : f32 to vector<8x128xf32>
    %cst_29 = arith.constant 0.000000e+00 : f32
    %33 = vector.broadcast %cst_29 : f32 to vector<8x128xf32>
    %cst_30 = arith.constant dense<0.000000e+00> : vector<8x128xf32>
    %34 = tpu.matmul %32, %31, %cst_30 {dimension_numbers = #tpu.dot_dimension_numbers<[1], [0], [0], [1], [0, 0, 1, 1], [], []>} : vector<8x128xf32>, vector<128x128xf32>, vector<8x128xf32> -> vector<8x128xf32>
    %35 = vector.shape_cast %34 : vector<8x128xf32> to vector<8x1x128xf32>
    %36 = vector.broadcast %35 : vector<8x1x128xf32> to vector<8x8x128xf32>
    %37 = arith.mulf %21, %36 : vector<8x8x128xf32>
    %cst_31 = arith.constant dense<0.000000e+00> : vector<8x8xf32>
    %38 = vector.multi_reduction <add>, %37, %cst_31 [2] : vector<8x8x128xf32> to vector<8x8xf32>
    %39 = arith.addf %38, %28 : vector<8x8xf32>
    %cst_32 = arith.constant dense<0xFF800000> : vector<8xf32>
    %40 = vector.multi_reduction <maximumf>, %39, %cst_32 [1] : vector<8x8xf32> to vector<8xf32>
    %41 = vector.shape_cast %40 : vector<8xf32> to vector<8x1xf32>
    %42 = vector.broadcast %41 : vector<8x1xf32> to vector<8x8xf32>
    %43 = arith.subf %39, %42 : vector<8x8xf32>
    %44 = math.exp %43 : vector<8x8xf32>
    %cst_33 = arith.constant dense<0.000000e+00> : vector<8xf32>
    %45 = vector.multi_reduction <add>, %44, %cst_33 [1] : vector<8x8xf32> to vector<8xf32>
    %46 = vector.shape_cast %45 : vector<8xf32> to vector<8x1xf32>
    %47 = vector.broadcast %46 : vector<8x1xf32> to vector<8x8xf32>
    %48 = arith.divf %44, %47 : vector<8x8xf32>
    %49 = vector.shape_cast %48 : vector<8x8xf32> to vector<8x8x1xf32>
    %50 = vector.broadcast %49 : vector<8x8x1xf32> to vector<8x8x128xf32>
    %51 = arith.mulf %50, %21 : vector<8x8x128xf32>
    %cst_34 = arith.constant dense<0.000000e+00> : vector<8x128xf32>
    %52 = vector.multi_reduction <add>, %51, %cst_34 [1] : vector<8x8x128xf32> to vector<8x128xf32>
    %53 = tpu.concatenate %52, %32 in 1 : vector<8x128xf32>, vector<8x128xf32> -> vector<8x256xf32>
    %cst_35 = arith.constant dense<0.000000e+00> : vector<8x512xf32>
    %54 = tpu.matmul %53, %29, %cst_35 {dimension_numbers = #tpu.dot_dimension_numbers<[1], [0], [0], [1], [0, 0, 1, 1], [], []>} : vector<8x256xf32>, vector<256x512xf32>, vector<8x512xf32> -> vector<8x512xf32>
    %55 = vector.broadcast %30 : vector<1x512xf32> to vector<8x512xf32>
    %56 = arith.addf %54, %55 : vector<8x512xf32>
    %57 = arith.negf %56 : vector<8x512xf32>
    %58 = math.exp %57 : vector<8x512xf32>
    %cst_36 = arith.constant 1.000000e+00 : f32
    %59 = vector.broadcast %cst_36 : f32 to vector<8x512xf32>
    %60 = arith.addf %59, %58 : vector<8x512xf32>
    %61 = arith.divf %59, %60 : vector<8x512xf32>
    %62 = vector.extract_strided_slice %61 {offsets = [0, 0], sizes = [8, 128], strides = [1, 1]} : vector<8x512xf32> to vector<8x128xf32>
    %63 = vector.extract_strided_slice %61 {offsets = [0, 128], sizes = [8, 128], strides = [1, 1]} : vector<8x512xf32> to vector<8x128xf32>
    %64 = vector.extract_strided_slice %61 {offsets = [0, 384], sizes = [8, 128], strides = [1, 1]} : vector<8x512xf32> to vector<8x128xf32>
    %65 = vector.extract_strided_slice %56 {offsets = [0, 256], sizes = [8, 128], strides = [1, 1]} : vector<8x512xf32> to vector<8x128xf32>
    %66 = math.tanh %65 : vector<8x128xf32>
    %67 = arith.mulf %63, %33 : vector<8x128xf32>
    %68 = arith.mulf %62, %66 : vector<8x128xf32>
    %69 = arith.addf %67, %68 : vector<8x128xf32>
    %70 = math.tanh %69 : vector<8x128xf32>
    %71 = arith.mulf %64, %70 : vector<8x128xf32>
    %cst_37 = arith.constant dense<0.000000e+00> : vector<8x128xf32>
    %72 = tpu.matmul %71, %31, %cst_37 {dimension_numbers = #tpu.dot_dimension_numbers<[1], [0], [0], [1], [0, 0, 1, 1], [], []>} : vector<8x128xf32>, vector<128x128xf32>, vector<8x128xf32> -> vector<8x128xf32>
    %73 = vector.shape_cast %72 : vector<8x128xf32> to vector<8x1x128xf32>
    %74 = vector.broadcast %73 : vector<8x1x128xf32> to vector<8x8x128xf32>
    %75 = arith.mulf %21, %74 : vector<8x8x128xf32>
    %cst_38 = arith.constant dense<0.000000e+00> : vector<8x8xf32>
    %76 = vector.multi_reduction <add>, %75, %cst_38 [2] : vector<8x8x128xf32> to vector<8x8xf32>
    %77 = arith.addf %76, %28 : vector<8x8xf32>
    %cst_39 = arith.constant dense<0xFF800000> : vector<8xf32>
    %78 = vector.multi_reduction <maximumf>, %77, %cst_39 [1] : vector<8x8xf32> to vector<8xf32>
    %79 = vector.shape_cast %78 : vector<8xf32> to vector<8x1xf32>
    %80 = vector.broadcast %79 : vector<8x1xf32> to vector<8x8xf32>
    %81 = arith.subf %77, %80 : vector<8x8xf32>
    %82 = math.exp %81 : vector<8x8xf32>
    %cst_40 = arith.constant dense<0.000000e+00> : vector<8xf32>
    %83 = vector.multi_reduction <add>, %82, %cst_40 [1] : vector<8x8xf32> to vector<8xf32>
    %84 = vector.shape_cast %83 : vector<8xf32> to vector<8x1xf32>
    %85 = vector.broadcast %84 : vector<8x1xf32> to vector<8x8xf32>
    %86 = arith.divf %82, %85 : vector<8x8xf32>
    %87 = vector.shape_cast %86 : vector<8x8xf32> to vector<8x8x1xf32>
    %88 = vector.broadcast %87 : vector<8x8x1xf32> to vector<8x8x128xf32>
    %89 = arith.mulf %88, %21 : vector<8x8x128xf32>
    %cst_41 = arith.constant dense<0.000000e+00> : vector<8x128xf32>
    %90 = vector.multi_reduction <add>, %89, %cst_41 [1] : vector<8x8x128xf32> to vector<8x128xf32>
    %91 = tpu.concatenate %90, %71 in 1 : vector<8x128xf32>, vector<8x128xf32> -> vector<8x256xf32>
    %cst_42 = arith.constant dense<0.000000e+00> : vector<8x512xf32>
    %92 = tpu.matmul %91, %29, %cst_42 {dimension_numbers = #tpu.dot_dimension_numbers<[1], [0], [0], [1], [0, 0, 1, 1], [], []>} : vector<8x256xf32>, vector<256x512xf32>, vector<8x512xf32> -> vector<8x512xf32>
    %93 = vector.broadcast %30 : vector<1x512xf32> to vector<8x512xf32>
    %94 = arith.addf %92, %93 : vector<8x512xf32>
    %95 = arith.negf %94 : vector<8x512xf32>
    %96 = math.exp %95 : vector<8x512xf32>
    %cst_43 = arith.constant 1.000000e+00 : f32
    %97 = vector.broadcast %cst_43 : f32 to vector<8x512xf32>
    %98 = arith.addf %97, %96 : vector<8x512xf32>
    %99 = arith.divf %97, %98 : vector<8x512xf32>
    %100 = vector.extract_strided_slice %99 {offsets = [0, 0], sizes = [8, 128], strides = [1, 1]} : vector<8x512xf32> to vector<8x128xf32>
    %101 = vector.extract_strided_slice %99 {offsets = [0, 128], sizes = [8, 128], strides = [1, 1]} : vector<8x512xf32> to vector<8x128xf32>
    %102 = vector.extract_strided_slice %99 {offsets = [0, 384], sizes = [8, 128], strides = [1, 1]} : vector<8x512xf32> to vector<8x128xf32>
    %103 = vector.extract_strided_slice %94 {offsets = [0, 256], sizes = [8, 128], strides = [1, 1]} : vector<8x512xf32> to vector<8x128xf32>
    %104 = math.tanh %103 : vector<8x128xf32>
    %105 = arith.mulf %101, %69 : vector<8x128xf32>
    %106 = arith.mulf %100, %104 : vector<8x128xf32>
    %107 = arith.addf %105, %106 : vector<8x128xf32>
    %108 = math.tanh %107 : vector<8x128xf32>
    %109 = arith.mulf %102, %108 : vector<8x128xf32>
    %cst_44 = arith.constant dense<0.000000e+00> : vector<8x128xf32>
    %110 = tpu.matmul %109, %31, %cst_44 {dimension_numbers = #tpu.dot_dimension_numbers<[1], [0], [0], [1], [0, 0, 1, 1], [], []>} : vector<8x128xf32>, vector<128x128xf32>, vector<8x128xf32> -> vector<8x128xf32>
    %111 = vector.shape_cast %110 : vector<8x128xf32> to vector<8x1x128xf32>
    %112 = vector.broadcast %111 : vector<8x1x128xf32> to vector<8x8x128xf32>
    %113 = arith.mulf %21, %112 : vector<8x8x128xf32>
    %cst_45 = arith.constant dense<0.000000e+00> : vector<8x8xf32>
    %114 = vector.multi_reduction <add>, %113, %cst_45 [2] : vector<8x8x128xf32> to vector<8x8xf32>
    %115 = arith.addf %114, %28 : vector<8x8xf32>
    %cst_46 = arith.constant dense<0xFF800000> : vector<8xf32>
    %116 = vector.multi_reduction <maximumf>, %115, %cst_46 [1] : vector<8x8xf32> to vector<8xf32>
    %117 = vector.shape_cast %116 : vector<8xf32> to vector<8x1xf32>
    %118 = vector.broadcast %117 : vector<8x1xf32> to vector<8x8xf32>
    %119 = arith.subf %115, %118 : vector<8x8xf32>
    %120 = math.exp %119 : vector<8x8xf32>
    %cst_47 = arith.constant dense<0.000000e+00> : vector<8xf32>
    %121 = vector.multi_reduction <add>, %120, %cst_47 [1] : vector<8x8xf32> to vector<8xf32>
    %122 = vector.shape_cast %121 : vector<8xf32> to vector<8x1xf32>
    %123 = vector.broadcast %122 : vector<8x1xf32> to vector<8x8xf32>
    %124 = arith.divf %120, %123 : vector<8x8xf32>
    %125 = vector.shape_cast %124 : vector<8x8xf32> to vector<8x8x1xf32>
    %126 = vector.broadcast %125 : vector<8x8x1xf32> to vector<8x8x128xf32>
    %127 = arith.mulf %126, %21 : vector<8x8x128xf32>
    %cst_48 = arith.constant dense<0.000000e+00> : vector<8x128xf32>
    %128 = vector.multi_reduction <add>, %127, %cst_48 [1] : vector<8x8x128xf32> to vector<8x128xf32>
    %129 = tpu.concatenate %128, %109 in 1 : vector<8x128xf32>, vector<8x128xf32> -> vector<8x256xf32>
    %cst_49 = arith.constant dense<0.000000e+00> : vector<8x512xf32>
    %130 = tpu.matmul %129, %29, %cst_49 {dimension_numbers = #tpu.dot_dimension_numbers<[1], [0], [0], [1], [0, 0, 1, 1], [], []>} : vector<8x256xf32>, vector<256x512xf32>, vector<8x512xf32> -> vector<8x512xf32>
    %131 = vector.broadcast %30 : vector<1x512xf32> to vector<8x512xf32>
    %132 = arith.addf %130, %131 : vector<8x512xf32>
    %133 = arith.negf %132 : vector<8x512xf32>
    %134 = math.exp %133 : vector<8x512xf32>
    %cst_50 = arith.constant 1.000000e+00 : f32
    %135 = vector.broadcast %cst_50 : f32 to vector<8x512xf32>
    %136 = arith.addf %135, %134 : vector<8x512xf32>
    %137 = arith.divf %135, %136 : vector<8x512xf32>
    %138 = vector.extract_strided_slice %137 {offsets = [0, 0], sizes = [8, 128], strides = [1, 1]} : vector<8x512xf32> to vector<8x128xf32>
    %139 = vector.extract_strided_slice %137 {offsets = [0, 128], sizes = [8, 128], strides = [1, 1]} : vector<8x512xf32> to vector<8x128xf32>
    %140 = vector.extract_strided_slice %137 {offsets = [0, 384], sizes = [8, 128], strides = [1, 1]} : vector<8x512xf32> to vector<8x128xf32>
    %141 = vector.extract_strided_slice %132 {offsets = [0, 256], sizes = [8, 128], strides = [1, 1]} : vector<8x512xf32> to vector<8x128xf32>
    %142 = math.tanh %141 : vector<8x128xf32>
    %143 = arith.mulf %139, %107 : vector<8x128xf32>
    %144 = arith.mulf %138, %142 : vector<8x128xf32>
    %145 = arith.addf %143, %144 : vector<8x128xf32>
    %146 = math.tanh %145 : vector<8x128xf32>
    %147 = arith.mulf %140, %146 : vector<8x128xf32>
    %c0_51 = arith.constant 0 : index
    %c0_52 = arith.constant 0 : index
    %148 = vector.load %arg12[%c0_51, %c0_52] : memref<8x128xf32, #tpu.memory_space<vmem>>, vector<8x128xf32>
    tpu.vector_store %arg12[%c0_51, %c0_52], %128 {strides = array<i32>} : memref<8x128xf32, #tpu.memory_space<vmem>>, vector<8x128xf32>,
    %c0_53 = arith.constant 0 : index
    %c0_54 = arith.constant 0 : index
    %149 = vector.load %arg13[%c0_53, %c0_54] : memref<8x128xf32, #tpu.memory_space<vmem>>, vector<8x128xf32>
    tpu.vector_store %arg13[%c0_53, %c0_54], %147 {strides = array<i32>} : memref<8x128xf32, #tpu.memory_space<vmem>>, vector<8x128xf32>,
    %c0_55 = arith.constant 0 : index
    %c0_56 = arith.constant 0 : index
    %150 = vector.load %arg14[%c0_55, %c0_56] : memref<8x8xf32, #tpu.memory_space<vmem>>, vector<8x8xf32>
    tpu.vector_store %arg14[%c0_55, %c0_56], %124 {strides = array<i32>} : memref<8x8xf32, #tpu.memory_space<vmem>>, vector<8x8xf32>,
    return
  }
  func.func @transform_0(%arg0: i32) -> (i32, i32) {
    %c0_i32 = arith.constant 0 : i32
    %c0_i32_0 = arith.constant 0 : i32
    return %arg0, %c0_i32 : i32, i32
  }
  func.func @transform_1(%arg0: i32) -> (i32, i32, i32) {
    %c0_i32 = arith.constant 0 : i32
    %c0_i32_0 = arith.constant 0 : i32
    %c0_i32_1 = arith.constant 0 : i32
    return %arg0, %c0_i32, %c0_i32_0 : i32, i32, i32
  }
  func.func @transform_2(%arg0: i32) -> (i32, i32) {
    %c0_i32 = arith.constant 0 : i32
    %c0_i32_0 = arith.constant 0 : i32
    %c0_i32_1 = arith.constant 0 : i32
    return %c0_i32, %c0_i32_0 : i32, i32
  }
  func.func @transform_3(%arg0: i32) -> (i32, i32) {
    %c0_i32 = arith.constant 0 : i32
    %c0_i32_0 = arith.constant 0 : i32
    %c0_i32_1 = arith.constant 0 : i32
    return %c0_i32, %c0_i32_0 : i32, i32
  }
  func.func @transform_4(%arg0: i32) -> (i32, i32) {
    %c0_i32 = arith.constant 0 : i32
    %c0_i32_0 = arith.constant 0 : i32
    %c0_i32_1 = arith.constant 0 : i32
    return %c0_i32, %c0_i32_0 : i32, i32
  }
  func.func @transform_5(%arg0: i32) -> (i32, i32) {
    %c0_i32 = arith.constant 0 : i32
    %c0_i32_0 = arith.constant 0 : i32
    %c0_i32_1 = arith.constant 0 : i32
    return %c0_i32, %c0_i32_0 : i32, i32
  }
  func.func @transform_6(%arg0: i32) -> (i32, i32) {
    %c0_i32 = arith.constant 0 : i32
    %c0_i32_0 = arith.constant 0 : i32
    %c0_i32_1 = arith.constant 0 : i32
    return %c0_i32, %c0_i32_0 : i32, i32
  }
  func.func @transform_7(%arg0: i32) -> (i32, i32) {
    %c0_i32 = arith.constant 0 : i32
    %c0_i32_0 = arith.constant 0 : i32
    %c0_i32_1 = arith.constant 0 : i32
    return %c0_i32, %c0_i32_0 : i32, i32
  }
  func.func @transform_8(%arg0: i32) -> (i32, i32) {
    %c0_i32 = arith.constant 0 : i32
    %c0_i32_0 = arith.constant 0 : i32
    %c0_i32_1 = arith.constant 0 : i32
    return %c0_i32, %c0_i32_0 : i32, i32
  }
  func.func @transform_9(%arg0: i32) -> (i32, i32) {
    %c0_i32 = arith.constant 0 : i32
    %c0_i32_0 = arith.constant 0 : i32
    %c0_i32_1 = arith.constant 0 : i32
    return %c0_i32, %c0_i32_0 : i32, i32
  }
  func.func @transform_10(%arg0: i32) -> (i32, i32) {
    %c0_i32 = arith.constant 0 : i32
    %c0_i32_0 = arith.constant 0 : i32
    %c0_i32_1 = arith.constant 0 : i32
    return %c0_i32, %c0_i32_0 : i32, i32
  }
  func.func @transform_11(%arg0: i32) -> (i32, i32) {
    %c0_i32 = arith.constant 0 : i32
    %c0_i32_0 = arith.constant 0 : i32
    return %arg0, %c0_i32 : i32, i32
  }
  func.func @transform_12(%arg0: i32) -> (i32, i32) {
    %c0_i32 = arith.constant 0 : i32
    %c0_i32_0 = arith.constant 0 : i32
    return %arg0, %c0_i32 : i32, i32
  }
  func.func @transform_13(%arg0: i32) -> (i32, i32) {
    %c0_i32 = arith.constant 0 : i32
    %c0_i32_0 = arith.constant 0 : i32
    return %arg0, %c0_i32 : i32, i32
  }
}

</mosaic_0001>

<bundles_post_ra>
// kernel: tpu_custom_call.1
= control target key start
LH: loop header
LB: loop body
LE: loop exit
PB: predicated region body
PF: predicated region fallthrough
CT: control target
= control target key end

     0   :  { %19 = vsyncpa [#allocation3], 0  ;;  %s4701_s0 = inlined_call_operand.vmem [shape: s32[8,1], index: 0, kind: input, shape index: {}]   ;;  %s4702_s1 = inlined_call_operand.hbm [shape: f32[8,8,8], index: 1, kind: input, shape index: {}]   ;;  %s4703_s2 = inlined_call_operand.vmem [shape: f32[8,32], index: 2, kind: input, shape index: {}]   ;;  %s4704_s3 = inlined_call_operand.hbm [shape: f32[1,32], index: 3, kind: input, shape index: {}]   ;;  %s4705_s4 = inlined_call_operand.hbm [shape: f32[32,32], index: 4, kind: input, shape index: {}]   ;;  %s4706_s5 = inlined_call_operand.vmem [shape: f32[1,32], index: 5, kind: input, shape index: {}]   ;;  %s4707_s6 = inlined_call_operand.hbm [shape: f32[32,128], index: 6, kind: input, shape index: {}]   ;;  %s4708_s7 = inlined_call_operand.vmem [shape: f32[1,128], index: 7, kind: input, shape index: {}]   ;;  %s4709_s8 = inlined_call_operand.hbm [shape: f32[128,128], index: 8, kind: input, shape index: {}]   ;;  %s4710_s9 = inlined_call_operand.hbm [shape: f32[256,512], index: 9, kind: input, shape index: {}]   ;;  %s4711_s10 = inlined_call_operand.vmem [shape: f32[1,512], index: 10, kind: input, shape index: {}]   ;;  %s4712_s11 = inlined_call_operand.hbm [shape: f32[8,128], index: 11, kind: output, shape index: {0}]   ;;  %s4713_s12 = inlined_call_operand.hbm [shape: f32[8,128], index: 12, kind: output, shape index: {1}]   ;;  %s4714_s13 = inlined_call_operand.hbm [shape: f32[8,8], index: 13, kind: output, shape index: {2}]  }
   0x1   :  { %20 = vsyncpa [#allocation6], 0 }
   0x2   :  { %21 = vsyncpa [#allocation9], 0 }
   0x3   :  { %22 = vsyncpa [#allocation12], 0 }
   0x4   :  { %23 = vsyncpa [#allocation4], 0  ;;  %s47_s27 = sshll.u32 %s4704_s3, 4  ;;  %s48_s27 = int_to_ptr.hbm [resolvable:$true] %s47_s27 }
   0x5   :  { %24 = vsyncpa [#allocation15], 0  ;;  %s3302_s28 = smov [#allocation5]   ;;  %s72_s15 = sshll.u32 %s4707_s6, 4  ;;  %s73_s15 = int_to_ptr.hbm [resolvable:$true] %s72_s15 }
   0x6   :  { %s49_s29 = sshll.u32 %s3302_s28, 4  ;;  %s3303_s16 = smov [#allocation8]   ;;  %s50_s29 = int_to_ptr.vmem [resolvable:$true] %s49_s29 }
   0x7   :  { %52 = dma.hbm_to_vmem [thread:$0]  %s48_s27, 16, %s50_s29, [#allocation6]  }
   0x8   :  { %s74_s17 = sshll.u32 %s3303_s16, 4  ;;  %s31_s20 = sshll.u32 %s4702_s1, 4  ;;  %s75_s17 = int_to_ptr.vmem [resolvable:$true] %s74_s17  ;;  %s32_s20 = int_to_ptr.hbm [resolvable:$true] %s31_s20 }
   0x9   :  { %s3304_s3 = smov 128   ;;  %s3305_s21 = smov 8  }
   0xa   :  { %80 = dma.hbm_to_vmem [thread:$0]  %s73_s15, 512, %s75_s17, [#allocation9], %s3304_s3, %s3304_s3, %s3305_s21  }
   0xb   :  { %s57_s24 = sshll.u32 %s4705_s4, 4  ;;  %s3306_s25 = smov [#allocation2]   ;;  %s58_s24 = int_to_ptr.hbm [resolvable:$true] %s57_s24 }
   0xc   :  { %s33_s26 = sshll.u32 %s3306_s25, 4  ;;  %s3307_s6 = smov [#allocation7]   ;;  %s34_s26 = int_to_ptr.vmem [resolvable:$true] %s33_s26 }
   0xd   :  { %39 = dma.hbm_to_vmem [thread:$0]  %s32_s20, 1024, %s34_s26, [#allocation3], %s3304_s3, %s3304_s3, %s3305_s21  }
   0xe   :  { %s59_s27 = sshll.u32 %s3307_s6, 4  ;;  %s87_s1 = sshll.u32 %s4709_s8, 4  ;;  %s60_s27 = int_to_ptr.vmem [resolvable:$true] %s59_s27  ;;  %s88_s1 = int_to_ptr.hbm [resolvable:$true] %s87_s1 }
   0xf   :  { %65 = dma.hbm_to_vmem [thread:$0]  %s58_s24, 512, %s60_s27, [#allocation6], %s3304_s3, %s3304_s3, %s3305_s21  }
  0x10   :  { %s100_s15 = sshll.u32 %s4710_s9, 4  ;;  %s3308_s16 = smov [#allocation10]   ;;  %s101_s15 = int_to_ptr.hbm [resolvable:$true] %s100_s15 }
  0x11   :  { %s89_s4 = sshll.u32 %s3308_s16, 4  ;;  %s3309_s17 = smov [#allocation11]   ;;  %s90_s4 = int_to_ptr.vmem [resolvable:$true] %s89_s4 }
  0x12   :  { %95 = dma.hbm_to_vmem [thread:$0]  %s88_s1, 2048, %s90_s4, [#allocation9], %s3304_s3, %s3304_s3, %s3305_s21  }
  0x13   :  { %s102_s18 = sshll.u32 %s3309_s17, 4  ;;  %s3310_s19 = smov 512   ;;  %s103_s18 = int_to_ptr.vmem [resolvable:$true] %s102_s18 }
  0x14   :  { %s3311_s20 = smov 32  }
  0x15   :  { %108 = dma.hbm_to_vmem [thread:$0]  %s101_s15, 16384, %s103_s18, [#allocation12], %s3310_s19, %s3310_s19, %s3311_s20  }
  0x16   :  { %3290 = dma.done.wait [#allocation3], 1024  }
  0x17   :  { %3291 = vsyncadd [#allocation3], 4294966272 }
  0x18   :  { %3292 = dma.done.wait [#allocation6], 528  }
  0x19   :  { %3293 = vsyncadd [#allocation6], 4294966768 }
  0x1a   :  { %3294 = dma.done.wait [#allocation9], 2560  }
  0x1b   :  { %3295 = vsyncadd [#allocation9], 4294964736 }
  0x1c   :  { %3296 = dma.done.wait [#allocation12], 16384  }
  0x1d   :  { %3297 = vsyncadd [#allocation12], 4294950912  ;;  %vm4715_vm0 = vcmask 64512   ;;  %v143_v0 = vld [vmem:[%s4703_s2] sm:$0xff]  ;;  %v136_v2 = vld [vmem:[#allocation2 + $0x8] sm:$0xff]  ;;  %vm230_vm1 = vcmask 261120  }
  0x1e   :  { %v135_v1 = vld [vmem:[#allocation2] sm:$0xff]  ;;  %188 = vmatpush.msra.mxu0 %v143_v0  ;;  %2787 = vmatpush.msra.mxu1 %v143_v0  ;;  %v137_v3 = vld [vmem:[#allocation2 + $0x10] sm:$0xff]  ;;  %v142_v4 = vld [vmem:[#allocation2 + $0x38] sm:$0xff]  ;;  %v4716_v58 = vmov 0.0   ;;  %v3313_v60 = vmov 0   ;;  %vm711_vm3 = vcmask 1041409  }
  0x1f   :  { %2754 = vmatmul.msk.f32.vlgmr.msra.gmra.mxu0 %vm4715_vm0, %v135_v1  ;;  %v225_v5 = vld [vmem:[#allocation7 + $0x18] sm:$0xff]  ;;  %2761 = vmatmul.msk.f32.vlgmr.msra.gmra.mxu1 %vm4715_vm0, %v142_v4  ;;  %v224_v6 = vld [vmem:[#allocation7 + $0x10] sm:$0xff]  ;;  %v140_v9 = vld [vmem:[#allocation2 + $0x28] sm:$0xff]  ;;  %vm713_vm4 = vcmask 1042434   ;;  %vm715_vm5 = vcmask 1043459   ;;  %vm717_vm6 = vcmask 1044484  }
  0x20   :  { %267 = vmatpush.msrb.mxu1 %v225_v5  ;;  %v138_v7 = vld [vmem:[#allocation2 + $0x18] sm:$0xff]  ;;  %v139_v8 = vld [vmem:[#allocation2 + $0x20] sm:$0xff]  ;;  %v141_v10 = vld [vmem:[#allocation2 + $0x30] sm:$0xff]  ;;  %2804 = vset.pattern.permute.xlu0 %v3313_v60  ;;  %vm4883_vm7 = vcmask 1045509   ;;  %vm4882_vm8 = vcmask 1046534   ;;  %vm4881_vm9 = vcmask 1047559  }
  0x21   :  { %v223_v11 = vld [vmem:[#allocation7 + $0x8] sm:$0xff]  ;;  %v222_v12 = vld [vmem:[#allocation7] sm:$0xff]  ;;  %v2810_v13 = vld [vmem:[#allocation5] ss:$0 sm:$0xff]  ;;  %2807 = vset.pattern.permute.xlu1 %v3313_v60  ;;  %s2710_s6 = sshll.u32 %s4712_s11, 4  ;;  %s3316_s11 = smov [#allocation14]   ;;  %s2711_s6 = int_to_ptr.hbm [resolvable:$true] %s2710_s6 }
  0x22   :  { %268 = vmatpush.msrb.mxu1 %v224_v6  ;;  %v529_v26 = vld [vmem:[#allocation10 + $0x78] sm:$0xff]  ;;  %v528_v27 = vld [vmem:[#allocation10 + $0x70] sm:$0xff]  ;;  %v527_v28 = vld [vmem:[#allocation10 + $0x68] sm:$0xff]  ;;  %s2719_s27 = sshll.u32 %s3316_s11, 4  ;;  %s2721_s1 = sshll.u32 %s4713_s12, 4  ;;  %s2720_s27 = int_to_ptr.vmem [resolvable:$true] %s2719_s27  ;;  %s2722_s1 = int_to_ptr.hbm [resolvable:$true] %s2721_s1 }
  0x23   :  { %530 = vmatpush.msra.mxu3 %v529_v26  ;;  %v526_v31 = vld [vmem:[#allocation10 + $0x60] sm:$0xff]  ;;  %v307_v32 = vld [vmem:[#allocation8 + $0x18] sm:$0xff]  ;;  %v524_v35 = vld [vmem:[#allocation10 + $0x50] sm:$0xff]  ;;  %v3314_v26 = vmov -1e+30   ;;  %s3317_s30 = smov [#allocation16]  }
  0x24   :  { %269 = vmatpush.msrb.mxu1 %v223_v11  ;;  %348 = vmatpush.msra.mxu2 %v307_v32  ;;  %v525_v34 = vld [vmem:[#allocation10 + $0x58] sm:$0xff]  ;;  %v523_v36 = vld [vmem:[#allocation10 + $0x48] sm:$0xff]  ;;  %v522_v39 = vld [vmem:[#allocation10 + $0x40] sm:$0xff]  ;;  %s2730_s14 = sshll.u32 %s3317_s30, 4  ;;  %s2732_s4 = sshll.u32 %s4714_s13, 4  ;;  %s2731_s14 = int_to_ptr.vmem [resolvable:$true] %s2730_s14  ;;  %s2733_s4 = int_to_ptr.hbm [resolvable:$true] %s2732_s4 }
  0x25   :  { %531 = vmatpush.msra.mxu3 %v528_v27  ;;  %v521_v41 = vld [vmem:[#allocation10 + $0x38] sm:$0xff]  ;;  %v520_v42 = vld [vmem:[#allocation10 + $0x30] sm:$0xff]  ;;  %v519_v43 = vld [vmem:[#allocation10 + $0x28] sm:$0xff] }
  0x26   :  { %270 = vmatpush.msrb.mxu1 %v222_v12  ;;  %v518_v46 = vld [vmem:[#allocation10 + $0x20] sm:$0xff]  ;;  %v517_v49 = vld [vmem:[#allocation10 + $0x18] sm:$0xff]  ;;  %v306_v52 = vld [vmem:[#allocation8 + $0x10] sm:$0xff] }
  0x27   :  { %2755 = vmatmul.msk.f32.gmra.mxu0 %vm4715_vm0, %v136_v2  ;;  %532 = vmatpush.msra.mxu3 %v527_v28  ;;  %v516_v53 = vld [vmem:[#allocation10 + $0x10] sm:$0xff]  ;;  %v305_v54 = vld [vmem:[#allocation8 + $0x8] sm:$0xff]  ;;  %v304_v56 = vld [vmem:[#allocation8] sm:$0xff] }
  0x28   :  { %349 = vmatpush.msra.mxu2 %v306_v52  ;;  %v515_v55 = vld [vmem:[#allocation10 + $0x8] sm:$0xff]  ;;  %v514_v57 = vld [vmem:[#allocation10] sm:$0xff]  ;;  %v2811_v61 = vld [vmem:[%s4706_s5] ss:$0 sm:$0xff] }
  0x29   :  { %533 = vmatpush.msra.mxu3 %v526_v31  ;;  %v379_v59 = vld [vmem:[%s4701_s0] sm:$0xff] }
  0x2a   :  { %350 = vmatpush.msra.mxu2 %v305_v54  ;;  %381 = vperm.xlu0 %2804, %v379_v59  }
  0x2b   :  { %534 = vmatpush.msra.mxu3 %v525_v34 }
  0x2c   :  { %351 = vmatpush.msra.mxu2 %v304_v56 }
  0x2d   :  { %535 = vmatpush.msra.mxu3 %v524_v35  ;;  %v2812_v35 = vld [vmem:[%s4708_s7] ss:$0 sm:$0xff] }
  0x2f   :  { %2756 = vmatmul.msk.f32.gmra.mxu0 %vm4715_vm0, %v137_v3  ;;  %536 = vmatpush.msra.mxu3 %v523_v36 }
  0x31   :  { %537 = vmatpush.msra.mxu3 %v522_v39 }
  0x33   :  { %538 = vmatpush.msra.mxu3 %v521_v41 }
  0x35   :  { %539 = vmatpush.msra.mxu3 %v520_v42 }
  0x37   :  { %2757 = vmatmul.msk.f32.gmra.mxu0 %vm4715_vm0, %v138_v7  ;;  %540 = vmatpush.msra.mxu3 %v519_v43 }
  0x39   :  { %541 = vmatpush.msra.mxu3 %v518_v46 }
  0x3b   :  { %542 = vmatpush.msra.mxu3 %v517_v49 }
  0x3d   :  { %543 = vmatpush.msra.mxu3 %v516_v53 }
  0x3f   :  { %2758 = vmatmul.msk.f32.gmra.mxu0 %vm4715_vm0, %v139_v8  ;;  %544 = vmatpush.msra.mxu3 %v515_v55 }
  0x41   :  { %545 = vmatpush.msra.mxu3 %v514_v57 }
  0x42   :  { %546 = vmatmul.f32.vlgmr.msra.gmra.mxu3 %v4716_v58  ;;  %v3806_v58 = vld [vmem:[#allocation11 + $0x248] sm:$0xff] }
  0x43   :  { %4920 = vst [vmem:[#allocation55_spill] sm:$0xff] %v3806_v58 }
  0x47   :  { %2759 = vmatmul.msk.f32.gmra.mxu0 %vm4715_vm0, %v140_v9 }
  0x4f   :  { %2760 = vmatmul.msk.f32.gmra.mxu0 %vm4715_vm0, %v141_v10  ;;  %v377_v10 = vlaneseq }
  0x51   :  { %v601_v11 = vshrl.u32 %v377_v10, 7 }
  0x53   :  { %2805 = vset.pattern.permute.xlu2 %v601_v11  ;;  %2806 = vset.pattern.permute.xlu0 %v601_v11 }
  0x9c   :  { %v190_v14 = vpop.f32.mrf.mxu0  ;;  %v211_v47 = vpop.f32.mrf.mxu1 }
  0x9d   :  { %v191_v15 = vadd.f32 %v2810_v13, %v190_v14  ;;  %v212_v50 = vadd.f32 %v2810_v13, %v211_v47 }
  0x9f   :  { %v214_v16 = vmax.f32 %v191_v15, 0.0  ;;  %v221_v51 = vmax.f32 %v212_v50, 0.0 }
  0xa1   :  { %2762 = vmatmul.msk.f32.vlgmr.msrb.gmra.mxu1 %vm230_vm1, %v214_v16 }
  0xa4   :  { %v193_v17 = vpop.f32.mrf.mxu0 }
  0xa5   :  { %v194_v18 = vadd.f32 %v2810_v13, %v193_v17 }
  0xa7   :  { %v215_v19 = vmax.f32 %v194_v18, 0.0 }
  0xa9   :  { %2763 = vmatmul.msk.f32.gmra.mxu1 %vm230_vm1, %v215_v19 }
  0xac   :  { %v196_v20 = vpop.f32.mrf.mxu0 }
  0xad   :  { %v197_v21 = vadd.f32 %v2810_v13, %v196_v20 }
  0xaf   :  { %v216_v22 = vmax.f32 %v197_v21, 0.0 }
  0xb1   :  { %2764 = vmatmul.msk.f32.gmra.mxu1 %vm230_vm1, %v216_v22 }
  0xb4   :  { %v199_v23 = vpop.f32.mrf.mxu0 }
  0xb5   :  { %v200_v24 = vadd.f32 %v2810_v13, %v199_v23 }
  0xb7   :  { %v217_v25 = vmax.f32 %v200_v24, 0.0  ;;  %v3442_v24 = vand.u32 127, %v377_v10 }
  0xb9   :  { %2765 = vmatmul.msk.f32.gmra.mxu1 %vm230_vm1, %v217_v25  ;;  %4884 = vst [vmem:[#allocation23_spill] sm:$0xff] %v3442_v24  ;;  %v382_v25 = vpop.permute.xlu0 %381 }
  0xba   :  { %vm383_vm2 = vcmp.lt.s32.totalorder %v3442_v24, %v382_v25 }
  0xbb   :  { %v384_v27 = vsel %vm383_vm2, 0.0, %v3314_v26 }
  0xbc   :  { %v202_v29 = vpop.f32.mrf.mxu0  ;;  %v599_v28 = vperm.slane %v384_v27, 0  ;;  %v620_v31 = vperm.slane %v384_v27, 3  ;;  %v627_v32 = vperm.slane %v384_v27, 4  ;;  %v634_v34 = vperm.slane %v384_v27, 5 }
  0xbd   :  { %v203_v30 = vadd.f32 %v2810_v13, %v202_v29  ;;  %v606_v29 = vperm.slane %v384_v27, 1  ;;  %v641_v41 = vperm.slane %v384_v27, 6  ;;  %v648_v52 = vperm.slane %v384_v27, 7 }
  0xbe   :  { %604 = vperm.xlu2 %2805, %v599_v28  }
  0xbf   :  { %v218_v33 = vmax.f32 %v203_v30, 0.0  ;;  %v613_v30 = vperm.slane %v384_v27, 2 }
  0xc1   :  { %2766 = vmatmul.msk.f32.gmra.mxu1 %vm230_vm1, %v218_v33 }
  0xc4   :  { %v205_v37 = vpop.f32.mrf.mxu0 }
  0xc5   :  { %v206_v38 = vadd.f32 %v2810_v13, %v205_v37  ;;  %v547_v33 = vpop.f32.mrf.mxu3 }
  0xc6   :  { %611 = vperm.xlu2 %2805, %v606_v29   ;;  %v558_v36 = vperm.slane %v547_v33, 0  ;;  %v552_v46 = vrot.slane %v547_v33, 2  ;;  %v554_v57 = vrot.slane %v547_v33, 4 }
  0xc7   :  { %v219_v40 = vmax.f32 %v206_v38, 0.0 }
  0xc8   :  { %v560_v49 = vperm.slane %v552_v46, 0 }
  0xc9   :  { %2767 = vmatmul.msk.f32.gmra.mxu1 %vm230_vm1, %v219_v40  ;;  %v551_v40 = vrot.slane %v547_v33, 1 }
  0xcb   :  { %v559_v42 = vperm.slane %v551_v40, 0 }
  0xcc   :  { %v208_v44 = vpop.f32.mrf.mxu0 }
  0xcd   :  { %v209_v45 = vadd.f32 %v2810_v13, %v208_v44 }
  0xce   :  { %618 = vperm.xlu2 %2805, %v613_v30  }
  0xcf   :  { %v220_v48 = vmax.f32 %v209_v45, 0.0 }
  0xd1   :  { %2768 = vmatmul.msk.f32.gmra.mxu1 %vm230_vm1, %v220_v48 }
  0xd6   :  { %625 = vperm.xlu2 %2805, %v620_v31  }
  0xd9   :  { %2769 = vmatmul.msk.f32.gmra.mxu1 %vm230_vm1, %v221_v51  ;;  %v553_v51 = vrot.slane %v547_v33, 3 }
  0xdb   :  { %v561_v55 = vperm.slane %v553_v51, 0 }
  0xde   :  { %632 = vperm.xlu2 %2805, %v627_v32  }
  0xe6   :  { %639 = vperm.xlu2 %2805, %v634_v34  }
  0xee   :  { %646 = vperm.xlu2 %2805, %v641_v41  }
  0xf6   :  { %2808 = vset.pattern.permute.xlu2 %v3313_v60 }
 0x11e   :  { %v272_v62 = vpop.f32.mrf.mxu1 }
 0x11f   :  { %v273_v63 = vadd.f32 %v2811_v61, %v272_v62  ;;  %v562_v62 = vperm.slane %v554_v57, 0 }
 0x121   :  { %v296_v0 = vmax.f32 %v273_v63, 0.0 }
 0x123   :  { %2770 = vmatmul.msk.f32.vlgmr.msra.gmra.mxu2 %vm230_vm1, %v296_v0  ;;  %v555_v0 = vrot.slane %v547_v33, 5 }
 0x126   :  { %v275_v1 = vpop.f32.mrf.mxu1 }
 0x127   :  { %v276_v2 = vadd.f32 %v2811_v61, %v275_v1 }
 0x129   :  { %v297_v3 = vmax.f32 %v276_v2, 0.0 }
 0x12b   :  { %2771 = vmatmul.msk.f32.gmra.mxu2 %vm230_vm1, %v297_v3  ;;  %v563_v3 = vperm.slane %v555_v0, 0 }
 0x12e   :  { %v278_v4 = vpop.f32.mrf.mxu1 }
 0x12f   :  { %v279_v5 = vadd.f32 %v2811_v61, %v278_v4 }
 0x131   :  { %v298_v6 = vmax.f32 %v279_v5, 0.0  ;;  %v556_v5 = vrot.slane %v547_v33, 6 }
 0x133   :  { %2772 = vmatmul.msk.f32.gmra.mxu2 %vm230_vm1, %v298_v6 }
 0x136   :  { %v281_v7 = vpop.f32.mrf.mxu1 }
 0x137   :  { %v282_v8 = vadd.f32 %v2811_v61, %v281_v7 }
 0x139   :  { %v299_v9 = vmax.f32 %v282_v8, 0.0  ;;  %v564_v8 = vperm.slane %v556_v5, 0 }
 0x13b   :  { %2773 = vmatmul.msk.f32.gmra.mxu2 %vm230_vm1, %v299_v9 }
 0x13e   :  { %v284_v12 = vpop.f32.mrf.mxu1 }
 0x13f   :  { %v285_v13 = vadd.f32 %v2811_v61, %v284_v12 }
 0x141   :  { %v300_v14 = vmax.f32 %v285_v13, 0.0 }
 0x143   :  { %2774 = vmatmul.msk.f32.gmra.mxu2 %vm230_vm1, %v300_v14  ;;  %v3474_v14 = vpop.permute.xlu2 %604 }
 0x144   :  { %4893 = vst [vmem:[#allocation32_spill] sm:$0xff] %v3474_v14 }
 0x146   :  { %v287_v15 = vpop.f32.mrf.mxu1 }
 0x147   :  { %v288_v16 = vadd.f32 %v2811_v61, %v287_v15 }
 0x149   :  { %v301_v17 = vmax.f32 %v288_v16, 0.0 }
 0x14b   :  { %2775 = vmatmul.msk.f32.gmra.mxu2 %vm230_vm1, %v301_v17  ;;  %v3476_v15 = vpop.permute.xlu2 %611 }
 0x14c   :  { %4894 = vst [vmem:[#allocation33_spill] sm:$0xff] %v3476_v15 }
 0x14e   :  { %v290_v18 = vpop.f32.mrf.mxu1 }
 0x14f   :  { %v291_v19 = vadd.f32 %v2811_v61, %v290_v18 }
 0x151   :  { %v302_v20 = vmax.f32 %v291_v19, 0.0 }
 0x153   :  { %2776 = vmatmul.msk.f32.gmra.mxu2 %vm230_vm1, %v302_v20  ;;  %v3482_v18 = vpop.permute.xlu2 %618 }
 0x154   :  { %4895 = vst [vmem:[#allocation34_spill] sm:$0xff] %v3482_v18 }
 0x156   :  { %v293_v21 = vpop.f32.mrf.mxu1 }
 0x157   :  { %v294_v22 = vadd.f32 %v2811_v61, %v293_v21 }
 0x159   :  { %v303_v23 = vmax.f32 %v294_v22, 0.0 }
 0x15b   :  { %2777 = vmatmul.msk.f32.gmra.mxu2 %vm230_vm1, %v303_v23  ;;  %v3488_v23 = vpop.permute.xlu2 %625 }
 0x15c   :  { %4896 = vst [vmem:[#allocation35_spill] sm:$0xff] %v3488_v23 }
 0x163   :  { %v3492_v27 = vpop.permute.xlu2 %632 }
 0x164   :  { %4897 = vst [vmem:[#allocation36_spill] sm:$0xff] %v3492_v27 }
 0x16b   :  { %v3498_v30 = vpop.permute.xlu2 %639 }
 0x16c   :  { %4898 = vst [vmem:[#allocation37_spill] sm:$0xff] %v3498_v30 }
 0x1a6   :  { %v353_v37 = vpop.f32.mrf.mxu2 }
 0x1a7   :  { %v3448_v38 = vadd.f32 %v2812_v35, %v353_v37 }
 0x1a9   :  { %4885 = vst [vmem:[#allocation24_spill] sm:$0xff] %v3448_v38  ;;  %v574_v39 = vmul.f32 %v558_v36, %v3448_v38 }
 0x1ab   :  { %582 = vadd.xlane.f32.xlu0 %v574_v39 }
 0x1ae   :  { %v356_v43 = vpop.f32.mrf.mxu2 }
 0x1af   :  { %v3451_v44 = vadd.f32 %v2812_v35, %v356_v43 }
 0x1b1   :  { %4886 = vst [vmem:[#allocation25_spill] sm:$0xff] %v3451_v44  ;;  %v575_v45 = vmul.f32 %v559_v42, %v3451_v44 }
 0x1b3   :  { %584 = vadd.xlane.f32.xlu1 %v575_v45 }
 0x1b6   :  { %v359_v47 = vpop.f32.mrf.mxu2 }
 0x1b7   :  { %v3455_v48 = vadd.f32 %v2812_v35, %v359_v47 }
 0x1b9   :  { %4887 = vst [vmem:[#allocation26_spill] sm:$0xff] %v3455_v48  ;;  %v576_v50 = vmul.f32 %v560_v49, %v3455_v48 }
 0x1bb   :  { %586 = vadd.xlane.f32.xlu1 %v576_v50 }
 0x1be   :  { %v362_v53 = vpop.f32.mrf.mxu2 }
 0x1bf   :  { %v3458_v54 = vadd.f32 %v2812_v35, %v362_v53  ;;  %653 = vperm.xlu0 %2806, %v648_v52  }
 0x1c1   :  { %4888 = vst [vmem:[#allocation27_spill] sm:$0xff] %v3458_v54  ;;  %v577_v56 = vmul.f32 %v561_v55, %v3458_v54 }
 0x1c3   :  { %588 = vadd.xlane.f32.xlu1 %v577_v56 }
 0x1c6   :  { %v365_v59 = vpop.f32.mrf.mxu2 }
 0x1c7   :  { %v3461_v61 = vadd.f32 %v2812_v35, %v365_v59  ;;  %2809 = vset.pattern.permute.xlu0 %v3313_v60  ;;  %v557_v60 = vrot.slane %v547_v33, 7  ;;  %v3504_v33 = vpop.permute.xlu2 %646 }
 0x1c8   :  { %4899 = vst [vmem:[#allocation38_spill] sm:$0xff] %v3504_v33 }
 0x1c9   :  { %4889 = vst [vmem:[#allocation28_spill] sm:$0xff] %v3461_v61  ;;  %v578_v63 = vmul.f32 %v562_v62, %v3461_v61  ;;  %v565_v12 = vperm.slane %v557_v60, 0 }
 0x1cb   :  { %590 = vadd.xlane.f32.xlu1 %v578_v63 }
 0x1ce   :  { %v368_v1 = vpop.f32.mrf.mxu2 }
 0x1cf   :  { %v3465_v2 = vadd.f32 %v2812_v35, %v368_v1 }
 0x1d1   :  { %4890 = vst [vmem:[#allocation29_spill] sm:$0xff] %v3465_v2  ;;  %v579_v4 = vmul.f32 %v563_v3, %v3465_v2 }
 0x1d3   :  { %592 = vadd.xlane.f32.xlu1 %v579_v4 }
 0x1d6   :  { %v371_v6 = vpop.f32.mrf.mxu2 }
 0x1d7   :  { %v3468_v7 = vadd.f32 %v2812_v35, %v371_v6 }
 0x1d9   :  { %4891 = vst [vmem:[#allocation30_spill] sm:$0xff] %v3468_v7  ;;  %v580_v9 = vmul.f32 %v564_v8, %v3468_v7 }
 0x1db   :  { %594 = vadd.xlane.f32.xlu1 %v580_v9 }
 0x1de   :  { %v374_v10 = vpop.f32.mrf.mxu2 }
 0x1df   :  { %v3471_v11 = vadd.f32 %v2812_v35, %v374_v10 }
 0x1e1   :  { %4892 = vst [vmem:[#allocation31_spill] sm:$0xff] %v3471_v11  ;;  %v581_v13 = vmul.f32 %v565_v12, %v3471_v11 }
 0x1e3   :  { %596 = vadd.xlane.f32.xlu1 %v581_v13 }
 0x21e   :  { %v583_v16 = vpop.xlane.xlu0 %582 }
 0x21f   :  { %v3479_v17 = vadd.f32 %v3474_v14, %v583_v16  ;;  %v3832_v14 = vld [vmem:[#allocation11 + $0x208] sm:$0xff] }
 0x220   :  { %4925 = vst [vmem:[#allocation60_spill] sm:$0xff] %v3832_v14 }
 0x221   :  { %680 = vperm.xlu1 %2807, %v3479_v17  }
 0x226   :  { %v585_v19 = vpop.xlane.xlu1 %584 }
 0x227   :  { %v664_v20 = vadd.f32 %v3476_v15, %v585_v19  ;;  %v3826_v15 = vld [vmem:[#allocation11 + $0x2c0] sm:$0xff] }
 0x229   :  { %683 = vperm.xlu2 %2808, %v664_v20  }
 0x22e   :  { %v587_v21 = vpop.xlane.xlu1 %586 }
 0x22f   :  { %v3486_v22 = vadd.f32 %v3482_v18, %v587_v21  ;;  %v3830_v18 = vld [vmem:[#allocation11 + $0x48] sm:$0xff] }
 0x230   :  { %4924 = vst [vmem:[#allocation59_spill] sm:$0xff] %v3830_v18 }
 0x231   :  { %686 = vperm.xlu2 %2808, %v3486_v22   ;;  %v3510_v36 = vpop.permute.xlu0 %653 }
 0x232   :  { %4900 = vst [vmem:[#allocation39_spill] sm:$0xff] %v3510_v36 }
 0x236   :  { %v589_v25 = vpop.xlane.xlu1 %588 }
 0x237   :  { %v666_v26 = vadd.f32 %v3488_v23, %v589_v25  ;;  %v3824_v23 = vld [vmem:[#allocation11 + $0x40] sm:$0xff] }
 0x238   :  { %4923 = vst [vmem:[#allocation58_spill] sm:$0xff] %v3824_v23 }
 0x239   :  { %689 = vperm.xlu2 %2808, %v666_v26  }
 0x23e   :  { %v591_v28 = vpop.xlane.xlu1 %590 }
 0x23f   :  { %v3495_v29 = vadd.f32 %v3492_v27, %v591_v28  ;;  %v3820_v27 = vld [vmem:[#allocation11 + $0x228] sm:$0xff] }
 0x240   :  { %4922 = vst [vmem:[#allocation57_spill] sm:$0xff] %v3820_v27 }
 0x241   :  { %692 = vperm.xlu2 %2808, %v3495_v29  }
 0x246   :  { %v593_v31 = vpop.xlane.xlu1 %592 }
 0x247   :  { %v3501_v32 = vadd.f32 %v3498_v30, %v593_v31  ;;  %v3818_v30 = vld [vmem:[#allocation11 + $0x68] sm:$0xff] }
 0x249   :  { %695 = vperm.xlu1 %2807, %v3501_v32  }
 0x24e   :  { %v595_v34 = vpop.xlane.xlu1 %594 }
 0x24f   :  { %v3507_v35 = vadd.f32 %v3504_v33, %v595_v34 }
 0x251   :  { %698 = vperm.xlu2 %2808, %v3507_v35  }
 0x256   :  { %v597_v37 = vpop.xlane.xlu1 %596 }
 0x257   :  { %v3513_v39 = vadd.f32 %v3510_v36, %v597_v37  ;;  %v3812_v36 = vld [vmem:[#allocation11 + $0x2e0] sm:$0xff] }
 0x259   :  { %701 = vperm.xlu1 %2807, %v3513_v39  }
 0x283   :  { %v684_v40 = vpop.permute.xlu2 %683 }
 0x284   :  { %v704_v46 = vperm.slane %v684_v40, %v3442_v24 }
 0x28b   :  { %v687_v41 = vpop.permute.xlu2 %686 }
 0x28c   :  { %v705_v50 = vperm.slane %v687_v41, %v3442_v24 }
 0x293   :  { %v690_v42 = vpop.permute.xlu2 %689  ;;  %v681_v43 = vpop.permute.xlu1 %680 }
 0x294   :  { %v703_v45 = vperm.slane %v681_v43, %v3442_v24  ;;  %v706_v55 = vperm.slane %v690_v42, %v3442_v24 }
 0x296   :  { %v712_v49 = vsel %vm711_vm3, %v704_v46, %v703_v45 }
 0x297   :  { %v714_v52 = vsel %vm713_vm4, %v705_v50, %v712_v49 }
 0x298   :  { %v716_v57 = vsel %vm715_vm5, %v706_v55, %v714_v52 }
 0x29b   :  { %v693_v47 = vpop.permute.xlu2 %692 }
 0x29c   :  { %v707_v53 = vperm.slane %v693_v47, %v3442_v24 }
 0x29e   :  { %v718_v62 = vsel %vm717_vm6, %v707_v53, %v716_v57 }
 0x2ab   :  { %v699_v59 = vpop.permute.xlu2 %698 }
 0x2ac   :  { %v709_v0 = vperm.slane %v699_v59, %v3442_v24 }
 0x2bb   :  { %v696_v51 = vpop.permute.xlu1 %695 }
 0x2bc   :  { %v708_v56 = vperm.slane %v696_v51, %v3442_v24 }
 0x2be   :  { %v720_v63 = vsel %vm4883_vm7, %v708_v56, %v718_v62 }
 0x2bf   :  { %v722_v4 = vsel %vm4882_vm8, %v709_v0, %v720_v63 }
 0x2cb   :  { %v702_v1 = vpop.permute.xlu1 %701 }
 0x2cc   :  { %v710_v3 = vperm.slane %v702_v1, %v3442_v24 }
 0x2ce   :  { %v724_v5 = vsel %vm4881_vm9, %v710_v3, %v722_v4 }
 0x2cf   :  { %v726_v6 = vsel %vm4715_vm0, %v724_v5, -inf }
 0x2d0   :  { %727 = vmax.xlane.f32.xlu0 %v726_v6 }
 0x343   :  { %v728_v8 = vpop.xlane.xlu0 %727 }
 0x344   :  { %v731_v9 = vperm.slane %v728_v8, 1  ;;  %v730_v60 = vperm.slane %v728_v8, 0  ;;  %v733_v13 = vperm.slane %v728_v8, 3  ;;  %v732_v16 = vperm.slane %v728_v8, 2 }
 0x345   :  { %v735_v34 = vperm.slane %v728_v8, 5  ;;  %v734_v40 = vperm.slane %v728_v8, 4  ;;  %v736_v45 = vperm.slane %v728_v8, 6 }
 0x346   :  { %v747_v10 = vsub.f32 %v664_v20, %v731_v9  ;;  %v746_v12 = vsub.f32 %v3479_v17, %v730_v60  ;;  %v749_v25 = vsub.f32 %v666_v26, %v733_v13  ;;  %v748_v28 = vsub.f32 %v3486_v22, %v732_v16 }
 0x347   :  { %v751_v17 = vsub.f32 %v3501_v32, %v735_v34  ;;  %v750_v20 = vsub.f32 %v3495_v29, %v734_v40  ;;  %v737_v22 = vperm.slane %v728_v8, 7  ;;  %v752_v32 = vsub.f32 %v3507_v35, %v736_v45 }
 0x348   :  { %v756_v19 = vmul.f32 1.442695, %v747_v10  ;;  %v754_v21 = vmul.f32 1.442695, %v746_v12  ;;  %v760_v31 = vmul.f32 1.442695, %v749_v25 }
 0x349   :  { %v758_v37 = vmul.f32 1.442695, %v748_v28  ;;  %v764_v26 = vmul.f32 1.442695, %v751_v17  ;;  %v762_v43 = vmul.f32 1.442695, %v750_v20  ;;  %v753_v49 = vsub.f32 %v3513_v39, %v737_v22 }
 0x34a   :  { %2813 = vpow2.f32 %v756_v19  ;;  %v766_v29 = vmul.f32 1.442695, %v752_v32 }
 0x34b   :  { %2815 = vpow2.f32 %v754_v21  ;;  %v768_v50 = vmul.f32 1.442695, %v753_v49 }
 0x34c   :  { %2817 = vpow2.f32 %v760_v31 }
 0x34d   :  { %2819 = vpow2.f32 %v758_v37 }
 0x34e   :  { %2821 = vpow2.f32 %v764_v26 }
 0x34f   :  { %2823 = vpow2.f32 %v762_v43 }
 0x350   :  { %v3534_v41 = vpop.eup %2813  ;;  %2825 = vpow2.f32 %v768_v50 }
 0x351   :  { %v3536_v42 = vpop.eup %2815  ;;  %782 = vperm.xlu1 %2807, %v3534_v41   ;;  %2827 = vpow2.f32 %v766_v29 }
 0x352   :  { %779 = vperm.xlu2 %2808, %v3536_v42   ;;  %v3542_v46 = vpop.eup %2817 }
 0x353   :  { %v3544_v47 = vpop.eup %2819 }
 0x354   :  { %v3550_v51 = vpop.eup %2821 }
 0x355   :  { %v3552_v52 = vpop.eup %2823 }
 0x356   :  { %v3556_v53 = vpop.eup %2825 }
 0x357   :  { %v3558_v55 = vpop.eup %2827 }
 0x359   :  { %788 = vperm.xlu1 %2807, %v3542_v46  }
 0x35a   :  { %785 = vperm.xlu2 %2808, %v3544_v47  }
 0x361   :  { %794 = vperm.xlu1 %2807, %v3550_v51  }
 0x362   :  { %791 = vperm.xlu2 %2808, %v3552_v52  }
 0x369   :  { %800 = vperm.xlu1 %2807, %v3556_v53  }
 0x36a   :  { %797 = vperm.xlu2 %2808, %v3558_v55  }
 0x3ac   :  { %v780_v35 = vpop.permute.xlu2 %779 }
 0x3ad   :  { %v802_v63 = vperm.slane %v780_v35, %v3442_v24 }
 0x3b4   :  { %v786_v56 = vpop.permute.xlu2 %785 }
 0x3b5   :  { %v804_v3 = vperm.slane %v786_v56, %v3442_v24 }
 0x3bc   :  { %v792_v59 = vpop.permute.xlu2 %791 }
 0x3bd   :  { %v806_v9 = vperm.slane %v792_v59, %v3442_v24 }
 0x3c3   :  { %v783_v39 = vpop.permute.xlu1 %782 }
 0x3c4   :  { %v803_v62 = vperm.slane %v783_v39, %v3442_v24  ;;  %v798_v60 = vpop.permute.xlu2 %797 }
 0x3c5   :  { %v808_v13 = vperm.slane %v798_v60, %v3442_v24 }
 0x3c6   :  { %v810_v0 = vsel %vm711_vm3, %v803_v62, %v802_v63 }
 0x3c7   :  { %v811_v5 = vsel %vm713_vm4, %v804_v3, %v810_v0 }
 0x3cb   :  { %v789_v57 = vpop.permute.xlu1 %788 }
 0x3cc   :  { %v805_v1 = vperm.slane %v789_v57, %v3442_v24 }
 0x3ce   :  { %v812_v6 = vsel %vm715_vm5, %v805_v1, %v811_v5 }
 0x3cf   :  { %v813_v10 = vsel %vm717_vm6, %v806_v9, %v812_v6 }
 0x3d3   :  { %v795_v4 = vpop.permute.xlu1 %794 }
 0x3d4   :  { %v807_v8 = vperm.slane %v795_v4, %v3442_v24 }
 0x3d6   :  { %v814_v12 = vsel %vm4883_vm7, %v807_v8, %v813_v10 }
 0x3d7   :  { %v815_v21 = vsel %vm4882_vm8, %v808_v13, %v814_v12 }
 0x3db   :  { %v801_v16 = vpop.permute.xlu1 %800 }
 0x3dc   :  { %v809_v19 = vperm.slane %v801_v16, %v3442_v24  ;;  %v3810_v24 = vld [vmem:[#allocation11 + $0x60] sm:$0xff] }
 0x3dd   :  { %4921 = vst [vmem:[#allocation56_spill] sm:$0xff] %v3810_v24 }
 0x3de   :  { %v816_v25 = vsel %vm4881_vm9, %v809_v19, %v815_v21 }
 0x3df   :  { %v818_v28 = vsel %vm4715_vm0, %v816_v25, 0.0 }
 0x3e0   :  { %819 = vadd.xlane.f32.xlu2 %v818_v28 }
 0x453   :  { %v3578_v31 = vpop.xlane.xlu2 %819 }
 0x454   :  { %v822_v34 = vperm.slane %v3578_v31, 0  ;;  %v823_v37 = vperm.slane %v3578_v31, 1  ;;  %v3583_v40 = vperm.slane %v3578_v31, 2  ;;  %v3586_v17 = vperm.slane %v3578_v31, 3 }
 0x455   :  { %v3590_v20 = vperm.slane %v3578_v31, 7  ;;  %v3594_v22 = vperm.slane %v3578_v31, 4  ;;  %v3600_v32 = vperm.slane %v3578_v31, 5 }
 0x456   :  { %2829 = vrcp.f32 %v822_v34  ;;  %vm858_vm10 = vweird.f32 %v823_v37  ;;  %v862_v29 = vand.u32 2147483647, %v823_v37  ;;  %v864_v56 = vand.u32 2147483648, %v823_v37 }
 0x457   :  { %2831 = vrcp.f32 %v823_v37  ;;  %v952_v39 = vand.u32 2147483647, %v3590_v20  ;;  %v847_v63 = vand.u32 2147483647, %v822_v34  ;;  %v849_v0 = vand.u32 2147483648, %v822_v34 }
 0x458   :  { %2833 = vrcp.f32 %v3583_v40  ;;  %v954_v5 = vand.u32 2147483648, %v3590_v20  ;;  %vm3611_vm13 = vcmp.eq.f32.partialorder %v862_v29, 8.507059e+37  ;;  %v865_v60 = vor.u32 1.1754944e-38, %v864_v56 }
 0x459   :  { %2835 = vrcp.f32 %v3586_v17  ;;  %vm843_vm14 = vweird.f32 %v822_v34  ;;  %vm848_vm1 = vcmp.eq.f32.partialorder %v847_v63, 8.507059e+37  ;;  %v850_v19 = vor.u32 1.1754944e-38, %v849_v0 }
 0x45a   :  { %2837 = vrcp.f32 %v3590_v20  ;;  %v879_v56 = vand.u32 2147483648, %v3583_v40 }
 0x45b   :  { %2839 = vrcp.f32 %v3594_v22 }
 0x45c   :  { %v2830_v26 = vpop.eup %2829  ;;  %2841 = vrcp.f32 %v3600_v32 }
 0x45d   :  { %v2832_v43 = vpop.eup %2831  ;;  %v839_v45 = vmul.f32 %v2830_v26, %v822_v34  ;;  %vm844_vm11 = vweird.f32 %v2830_v26 }
 0x45e   :  { %v3597_v49 = vpop.eup %2833  ;;  %v854_v50 = vmul.f32 %v2832_v43, %v823_v37  ;;  %vm859_vm12 = vweird.f32 %v2832_v43  ;;  %vm845_vm15 = vmor %vm843_vm14, %vm844_vm11  ;;  %v877_v37 = vand.u32 2147483647, %v3583_v40 }
 0x45f   :  { %v3602_v35 = vpop.eup %2835  ;;  %v840_v57 = vsub.f32 1.0, %v839_v45  ;;  %v869_v59 = vmul.f32 %v3597_v49, %v3583_v40  ;;  %vm860_vm2 = vmor %vm858_vm10, %vm859_vm12  ;;  %vm874_vm0 = vweird.f32 %v3597_v49  ;;  %vm873_vm10 = vweird.f32 %v3583_v40 }
 0x460   :  { %v855_v62 = vsub.f32 1.0, %v854_v50  ;;  %v884_v4 = vmul.f32 %v3602_v35, %v3586_v17  ;;  %v2838_v9 = vpop.eup %2837  ;;  %vm3632_vm12 = vmor %vm873_vm10, %vm874_vm0  ;;  %vm878_vm0 = vcmp.eq.f32.partialorder %v877_v37, 8.507059e+37  ;;  %v924_v37 = vand.u32 2147483648, %v3600_v32 }
 0x461   :  { %v841_v1 = vmul.f32 %v2830_v26, %v840_v57  ;;  %v870_v3 = vsub.f32 1.0, %v869_v59  ;;  %v944_v13 = vmul.f32 %v2838_v9, %v3590_v20  ;;  %v3620_v45 = vpop.eup %2839  ;;  %vm949_vm11 = vweird.f32 %v2838_v9 }
 0x462   :  { %v856_v6 = vmul.f32 %v2832_v43, %v855_v62  ;;  %v885_v28 = vsub.f32 1.0, %v884_v4  ;;  %v899_v40 = vmul.f32 %v3620_v45, %v3594_v22 }
 0x463   :  { %v842_v10 = vadd.f32 %v2830_v26, %v841_v1  ;;  %v871_v12 = vmul.f32 %v3597_v49, %v870_v3  ;;  %v945_v50 = vsub.f32 1.0, %v944_v13  ;;  %v955_v1 = vor.u32 1.1754944e-38, %v954_v5 }
 0x464   :  { %v857_v16 = vadd.f32 %v2832_v43, %v856_v6  ;;  %v886_v63 = vmul.f32 %v3602_v35, %v885_v28  ;;  %v3644_v3 = vperm.slane %v3578_v31, 6  ;;  %v892_v31 = vand.u32 2147483647, %v3586_v17 }
 0x465   :  { %v846_v21 = vsel %vm845_vm15, %v2830_v26, %v842_v10  ;;  %v872_v25 = vadd.f32 %v3597_v49, %v871_v12  ;;  %v946_v26 = vmul.f32 %v2838_v9, %v945_v50  ;;  %vm953_vm15 = vcmp.eq.f32.partialorder %v952_v39, 8.507059e+37  ;;  %v2842_v10 = vpop.eup %2841 }
 0x466   :  { %v861_v34 = vsel %vm860_vm2, %v2832_v43, %v857_v16  ;;  %v851_v29 = vsel %vm848_vm1, %v850_v19, %v846_v21  ;;  %v887_v8 = vadd.f32 %v3602_v35, %v886_v63  ;;  %vm889_vm1 = vweird.f32 %v3602_v35 }
 0x467   :  { %v866_v57 = vsel %vm3611_vm13, %v865_v60, %v861_v34  ;;  %v852_v59 = vmul.f32 %v3536_v42, %v851_v29  ;;  %v876_v42 = vsel %vm3632_vm12, %v3597_v49, %v872_v25  ;;  %v947_v0 = vadd.f32 %v2838_v9, %v946_v26 }
 0x468   :  { %v867_v62 = vmul.f32 %v3534_v41, %v866_v57  ;;  %vm948_vm13 = vweird.f32 %v3590_v20  ;;  %v880_v41 = vor.u32 1.1754944e-38, %v879_v56  ;;  %v900_v60 = vsub.f32 1.0, %v899_v40 }
 0x469   :  { %960 = vperm.xlu1 %2807, %v852_v59   ;;  %vm950_vm14 = vmor %vm948_vm13, %vm949_vm11  ;;  %v894_v12 = vand.u32 2147483648, %v3586_v17  ;;  %vm888_vm2 = vweird.f32 %v3586_v17  ;;  %2843 = vrcp.f32 %v3644_v3  ;;  %v914_v13 = vmul.f32 %v2842_v10, %v3600_v32 }
 0x46a   :  { %965 = vperm.xlu0 %2809, %v867_v62   ;;  %v951_v4 = vsel %vm950_vm14, %v2838_v9, %v947_v0  ;;  %v881_v6 = vsel %vm878_vm0, %v880_v41, %v876_v42  ;;  %vm890_vm10 = vmor %vm888_vm2, %vm889_vm1  ;;  %v901_v9 = vmul.f32 %v3620_v45, %v900_v60  ;;  %vm893_vm11 = vcmp.eq.f32.partialorder %v892_v31, 8.507059e+37  ;;  %v3693_v60 = vld [vmem:[#allocation11 + $0x388] sm:$0xff]  ;;  %v3709_v31 = vld [vmem:[#allocation11 + $0x3e0] sm:$0xff] }
 0x46b   :  { %v956_v49 = vsel %vm953_vm15, %v955_v1, %v951_v4  ;;  %v882_v5 = vmul.f32 %v3544_v47, %v881_v6  ;;  %v891_v39 = vsel %vm890_vm10, %v3602_v35, %v887_v8  ;;  %vm904_vm12 = vweird.f32 %v3620_v45  ;;  %v3674_v4 = vld [vmem:[#allocation11 + $0x3e8] sm:$0xff]  ;;  %4908 = vst [vmem:[#allocation43_spill] sm:$0xff] %v3693_v60  ;;  %1099 = vmatpush.msrb.mxu0 %v3709_v31 }
 0x46c   :  { %v957_v20 = vmul.f32 %v3556_v53, %v956_v49  ;;  %v895_v53 = vor.u32 1.1754944e-38, %v894_v12  ;;  %v902_v47 = vadd.f32 %v3620_v45, %v901_v9  ;;  %v915_v19 = vsub.f32 1.0, %v914_v13  ;;  %4905 = vst [vmem:[#allocation40_spill] sm:$0xff] %v3674_v4  ;;  %v3676_v6 = vld [vmem:[#allocation11 + $0x1e8] sm:$0xff]  ;;  %1139 = vmatpush.msrb.mxu2 %v3674_v4  ;;  %v3717_v13 = vld [vmem:[#allocation11 + $0x160] sm:$0xff]  ;;  %v3886_v4 = vld [vmem:[#allocation11 + $0x1b8] sm:$0xff] }
 0x46d   :  { %v909_v21 = vand.u32 2147483648, %v3594_v22  ;;  %vm903_vm13 = vweird.f32 %v3594_v22  ;;  %v907_v35 = vand.u32 2147483647, %v3594_v22  ;;  %vm919_vm15 = vweird.f32 %v2842_v10  ;;  %v3678_v49 = vld [vmem:[#allocation11 + $0x3c8] sm:$0xff]  ;;  %1119 = vmatpush.msra.mxu1 %v3676_v6  ;;  %4942 = vst [vmem:[#allocation77_spill] sm:$0xff] %v3886_v4 }
 0x46e   :  { %995 = vperm.xlu2 %2808, %v957_v20   ;;  %v896_v16 = vsel %vm893_vm11, %v895_v53, %v891_v39  ;;  %vm905_vm14 = vmor %vm903_vm13, %vm904_vm12  ;;  %v916_v50 = vmul.f32 %v2842_v10, %v915_v19  ;;  %vm918_vm1 = vweird.f32 %v3600_v32  ;;  %v922_v22 = vand.u32 2147483647, %v3600_v32  ;;  %4906 = vst [vmem:[#allocation41_spill] sm:$0xff] %v3678_v49  ;;  %1140 = vmatpush.msrb.mxu2 %v3678_v49  ;;  %v3687_v8 = vld [vmem:[#allocation11 + $0x3a8] sm:$0xff]  ;;  %v3727_v19 = vld [vmem:[#allocation11 + $0x3c0] sm:$0xff] }
 0x46f   :  { %v2844_v17 = vpop.eup %2843  ;;  %v897_v25 = vmul.f32 %v3542_v46, %v896_v16  ;;  %v906_v28 = vsel %vm905_vm14, %v3620_v45, %v902_v47  ;;  %v910_v29 = vor.u32 1.1754944e-38, %v909_v21  ;;  %vm908_vm0 = vcmp.eq.f32.partialorder %v907_v35, 8.507059e+37  ;;  %vm920_vm2 = vmor %vm918_vm1, %vm919_vm15  ;;  %4907 = vst [vmem:[#allocation42_spill] sm:$0xff] %v3687_v8  ;;  %v3698_v20 = vld [vmem:[#allocation11 + $0x1a8] sm:$0xff]  ;;  %v3725_v47 = vld [vmem:[#allocation11 + $0x140] sm:$0xff]  ;;  %1100 = vmatpush.msrb.mxu0 %v3727_v19 }
 0x470   :  { %v929_v34 = vmul.f32 %v2844_v17, %v3644_v3  ;;  %v917_v57 = vadd.f32 %v2842_v10, %v916_v50  ;;  %v925_v62 = vor.u32 1.1754944e-38, %v924_v37  ;;  %vm923_vm10 = vcmp.eq.f32.partialorder %v922_v22, 8.507059e+37  ;;  %1141 = vmatpush.msrb.mxu2 %v3687_v8  ;;  %v3702_v12 = vld [vmem:[#allocation11 + $0x368] sm:$0xff]  ;;  %v3739_v35 = vld [vmem:[#allocation11 + $0x3a0] sm:$0xff]  ;;  %v3874_v8 = vld [vmem:[#allocation11 + $0x1d8] sm:$0xff] }
 0x471   :  { %970 = vperm.xlu1 %2807, %v882_v5   ;;  %v911_v56 = vsel %vm908_vm0, %v910_v29, %v906_v28  ;;  %vm934_vm11 = vweird.f32 %v2844_v17  ;;  %v939_v63 = vand.u32 2147483648, %v3644_v3  ;;  %vm933_vm12 = vweird.f32 %v3644_v3  ;;  %4909 = vst [vmem:[#allocation44_spill] sm:$0xff] %v3702_v12  ;;  %v3707_v5 = vld [vmem:[#allocation11 + $0x180] sm:$0xff]  ;;  %v3711_v39 = vld [vmem:[#allocation11 + $0x188] sm:$0xff]  ;;  %1101 = vmatpush.msrb.mxu0 %v3739_v35  ;;  %v3878_v49 = vld [vmem:[#allocation11 + $0x398] sm:$0xff] }
 0x472   :  { %v930_v59 = vsub.f32 1.0, %v929_v34  ;;  %v912_v46 = vmul.f32 %v3552_v52, %v911_v56  ;;  %v921_v45 = vsel %vm920_vm2, %v2842_v10, %v917_v57  ;;  %v937_v52 = vand.u32 2147483647, %v3644_v3  ;;  %vm935_vm13 = vmor %vm933_vm12, %vm934_vm11  ;;  %v3685_v3 = vld [vmem:[#allocation11 + $0x1c8] sm:$0xff]  ;;  %v3696_v10 = vld [vmem:[#allocation11 + $0x1a0] sm:$0xff]  ;;  %1142 = vmatpush.msrb.mxu2 %v3693_v60  ;;  %4938 = vst [vmem:[#allocation73_spill] sm:$0xff] %v3874_v8 }
 0x473   :  { %v926_v43 = vsel %vm923_vm10, %v925_v62, %v921_v45  ;;  %v940_v0 = vor.u32 1.1754944e-38, %v939_v63  ;;  %1120 = vmatpush.msra.mxu1 %v3685_v3  ;;  %v3715_v9 = vld [vmem:[#allocation11 + $0x348] sm:$0xff]  ;;  %v3752_v34 = vld [vmem:[#allocation11 + $0x100] sm:$0xff]  ;;  %v3872_v60 = vld [vmem:[#allocation11 + $0x1d0] sm:$0xff]  ;;  %4939 = vst [vmem:[#allocation74_spill] sm:$0xff] %v3878_v49 }
 0x474   :  { %v931_v26 = vmul.f32 %v2844_v17, %v930_v59  ;;  %v927_v40 = vmul.f32 %v3550_v51, %v926_v43  ;;  %vm938_vm14 = vcmp.eq.f32.partialorder %v937_v52, 8.507059e+37  ;;  %v3683_v51 = vld [vmem:[#allocation11 + $0x1e0] sm:$0xff]  ;;  %1143 = vmatpush.msrb.mxu2 %v3702_v12  ;;  %4910 = vst [vmem:[#allocation45_spill] sm:$0xff] %v3715_v9  ;;  %v3719_v53 = vld [vmem:[#allocation11 + $0x168] sm:$0xff] }
 0x475   :  { %1079 = vmatpush.msrb.mxu3 %v3683_v51  ;;  %1121 = vmatpush.msra.mxu1 %v3698_v20  ;;  %v3723_v16 = vld [vmem:[#allocation11 + $0x328] sm:$0xff]  ;;  %v3754_v29 = vld [vmem:[#allocation11 + $0x380] sm:$0xff]  ;;  %4937 = vst [vmem:[#allocation72_spill] sm:$0xff] %v3872_v60 }
 0x476   :  { %v932_v42 = vadd.f32 %v2844_v17, %v931_v26  ;;  %1144 = vmatpush.msrb.mxu2 %v3715_v9  ;;  %4911 = vst [vmem:[#allocation46_spill] sm:$0xff] %v3723_v16  ;;  %v3733_v21 = vld [vmem:[#allocation11 + $0x308] sm:$0xff]  ;;  %1102 = vmatpush.msrb.mxu0 %v3754_v29  ;;  %v3764_v37 = vld [vmem:[#allocation11 + $0xe0] sm:$0xff]  ;;  %v3862_v9 = vld [vmem:[#allocation11 + $0x1f8] sm:$0xff] }
 0x477   :  { %1122 = vmatpush.msra.mxu1 %v3711_v39  ;;  %4912 = vst [vmem:[#allocation47_spill] sm:$0xff] %v3733_v21  ;;  %v3743_v28 = vld [vmem:[#allocation11 + $0x128] sm:$0xff]  ;;  %v3774_v26 = vld [vmem:[#allocation11 + $0xc0] sm:$0xff] }
 0x478   :  { %v936_v32 = vsel %vm935_vm13, %v2844_v17, %v932_v42  ;;  %v3731_v17 = vld [vmem:[#allocation11 + $0x148] sm:$0xff]  ;;  %1145 = vmatpush.msrb.mxu2 %v3723_v16  ;;  %v3778_v62 = vld [vmem:[#allocation11 + $0x340] sm:$0xff]  ;;  %v3860_v16 = vld [vmem:[#allocation11 + $0x1f0] sm:$0xff]  ;;  %4934 = vst [vmem:[#allocation69_spill] sm:$0xff] %v3862_v9 }
 0x479   :  { %975 = vperm.xlu1 %2807, %v897_v25   ;;  %v941_v41 = vsel %vm938_vm14, %v940_v0, %v936_v32  ;;  %1123 = vmatpush.msra.mxu1 %v3719_v53  ;;  %v3737_v25 = vld [vmem:[#allocation11 + $0x120] sm:$0xff]  ;;  %v3745_v50 = vld [vmem:[#allocation11 + $0x2e8] sm:$0xff]  ;;  %4933 = vst [vmem:[#allocation68_spill] sm:$0xff] %v3860_v16 }
 0x47a   :  { %v942_v1 = vmul.f32 %v3558_v55, %v941_v41  ;;  %v3691_v55 = vld [vmem:[#allocation11 + $0x1c0] sm:$0xff]  ;;  %4913 = vst [vmem:[#allocation48_spill] sm:$0xff] %v3745_v50  ;;  %1146 = vmatpush.msrb.mxu2 %v3733_v21  ;;  %v3756_v56 = vld [vmem:[#allocation11 + $0x108] sm:$0xff] }
 0x47b   :  { %1080 = vmatpush.msrb.mxu3 %v3691_v55  ;;  %1124 = vmatpush.msra.mxu1 %v3731_v17  ;;  %v3762_v59 = vld [vmem:[#allocation11 + $0x2c8] sm:$0xff]  ;;  %v3786_v63 = vld [vmem:[#allocation11 + $0xa0] sm:$0xff] }
 0x47c   :  { %1147 = vmatpush.msrb.mxu2 %v3745_v50  ;;  %4914 = vst [vmem:[#allocation49_spill] sm:$0xff] %v3762_v59  ;;  %v3770_v22 = vld [vmem:[#allocation11 + $0xe8] sm:$0xff]  ;;  %v3798_v0 = vld [vmem:[#allocation11 + $0x80] sm:$0xff] }
 0x47d   :  { %1081 = vmatpush.msrb.mxu3 %v3696_v10  ;;  %1125 = vmatpush.msra.mxu1 %v3743_v28  ;;  %v3772_v45 = vld [vmem:[#allocation11 + $0x2a8] sm:$0xff]  ;;  %4917 = vst [vmem:[#allocation52_spill] sm:$0xff] %v3786_v63  ;;  %v3800_v41 = vld [vmem:[#allocation11 + $0x300] sm:$0xff] }
 0x47e   :  { %1148 = vmatpush.msrb.mxu2 %v3762_v59  ;;  %4915 = vst [vmem:[#allocation50_spill] sm:$0xff] %v3772_v45  ;;  %v3780_v43 = vld [vmem:[#allocation11 + $0xc8] sm:$0xff]  ;;  %v3848_v59 = vld [vmem:[#allocation11 + $0x3d8] sm:$0xff]  ;;  %v3850_v50 = vld [vmem:[#allocation11] sm:$0xff] }
 0x47f   :  { %1082 = vmatpush.msrb.mxu3 %v3707_v5  ;;  %1126 = vmatpush.msra.mxu1 %v3756_v56  ;;  %v3782_v42 = vld [vmem:[#allocation11 + $0x288] sm:$0xff]  ;;  %4919 = vst [vmem:[#allocation54_spill] sm:$0xff] %v3798_v0  ;;  %v3868_v12 = vld [vmem:[#allocation11 + $0x260] sm:$0xff] }
 0x480   :  { %4916 = vst [vmem:[#allocation51_spill] sm:$0xff] %v3782_v42  ;;  %1149 = vmatpush.msrb.mxu2 %v3772_v45  ;;  %v3792_v52 = vld [vmem:[#allocation11 + $0xa8] sm:$0xff] }
 0x481   :  { %980 = vperm.xlu1 %2807, %v912_v46   ;;  %1083 = vmatpush.msrb.mxu3 %v3717_v13  ;;  %v3766_v46 = vld [vmem:[#allocation11 + $0x360] sm:$0xff]  ;;  %v3794_v32 = vld [vmem:[#allocation11 + $0x268] sm:$0xff]  ;;  %4929 = vst [vmem:[#allocation64_spill] sm:$0xff] %v3848_v59 }
 0x482   :  { %1103 = vmatpush.msrb.mxu0 %v3766_v46  ;;  %1127 = vmatpush.msra.mxu1 %v3770_v22  ;;  %4918 = vst [vmem:[#allocation53_spill] sm:$0xff] %v3794_v32  ;;  %v3844_v45 = vld [vmem:[#allocation11 + $0x28] sm:$0xff] }
 0x483   :  { %1084 = vmatpush.msrb.mxu3 %v3725_v47  ;;  %1150 = vmatpush.msrb.mxu2 %v3782_v42  ;;  %v3838_v42 = vld [vmem:[#allocation11 + $0x20] sm:$0xff]  ;;  %4928 = vst [vmem:[#allocation63_spill] sm:$0xff] %v3844_v45  ;;  %v3856_v21 = vld [vmem:[#allocation11 + $0x8] sm:$0xff] }
 0x484   :  { %1104 = vmatpush.msrb.mxu0 %v3778_v62  ;;  %1128 = vmatpush.msra.mxu1 %v3780_v43  ;;  %4927 = vst [vmem:[#allocation62_spill] sm:$0xff] %v3838_v42 }
 0x485   :  { %1085 = vmatpush.msrb.mxu3 %v3737_v25  ;;  %1151 = vmatpush.msrb.mxu2 %v3794_v32  ;;  %v3836_v32 = vld [vmem:[#allocation11 + $0x3f8] sm:$0xff]  ;;  %4930 = vst [vmem:[#allocation65_spill] sm:$0xff] %v3850_v50 }
 0x486   :  { %1129 = vmatpush.msra.mxu1 %v3792_v52  ;;  %4926 = vst [vmem:[#allocation61_spill] sm:$0xff] %v3836_v32 }
 0x487   :  { %1086 = vmatpush.msrb.mxu3 %v3752_v34  ;;  %1152 = vmatpush.msrb.mxu2 %v3806_v58  ;;  %v3842_v58 = vld [vmem:[#allocation11 + $0x2a0] sm:$0xff]  ;;  %4932 = vst [vmem:[#allocation67_spill] sm:$0xff] %v3856_v21 }
 0x488   :  { %4936 = vst [vmem:[#allocation71_spill] sm:$0xff] %v3868_v12 }
 0x489   :  { %985 = vperm.xlu1 %2807, %v927_v40   ;;  %1087 = vmatpush.msrb.mxu3 %v3764_v37  ;;  %v3788_v40 = vld [vmem:[#allocation11 + $0x320] sm:$0xff] }
 0x48a   :  { %1105 = vmatpush.msrb.mxu0 %v3788_v40  ;;  %1153 = vmatpush.msrb.mxu2 %v3820_v27  ;;  %v3854_v27 = vld [vmem:[#allocation11 + $0x280] sm:$0xff] }
 0x48b   :  { %1088 = vmatpush.msrb.mxu3 %v3774_v26  ;;  %4931 = vst [vmem:[#allocation66_spill] sm:$0xff] %v3854_v27 }
 0x48c   :  { %1106 = vmatpush.msrb.mxu0 %v3800_v41  ;;  %1154 = vmatpush.msrb.mxu2 %v3832_v14 }
 0x48d   :  { %1089 = vmatpush.msrb.mxu3 %v3786_v63 }
 0x48e   :  { %1107 = vmatpush.msrb.mxu0 %v3812_v36  ;;  %1219 = vmatpush.msra.mxu2 %v3836_v32  ;;  %v3866_v32 = vld [vmem:[#allocation11 + $0x3b8] sm:$0xff] }
 0x48f   :  { %1090 = vmatpush.msrb.mxu3 %v3798_v0  ;;  %4935 = vst [vmem:[#allocation70_spill] sm:$0xff] %v3866_v32 }
 0x490   :  { %1108 = vmatpush.msrb.mxu0 %v3826_v15  ;;  %1220 = vmatpush.msra.mxu2 %v3848_v59  ;;  %v3880_v59 = vld [vmem:[#allocation11 + $0x240] sm:$0xff] }
 0x491   :  { %990 = vperm.xlu1 %2807, %v942_v1   ;;  %v3804_v1 = vld [vmem:[#allocation11 + $0x88] sm:$0xff]  ;;  %1091 = vmatpush.msrb.mxu3 %v3810_v24  ;;  %4940 = vst [vmem:[#allocation75_spill] sm:$0xff] %v3880_v59 }
 0x492   :  { %1130 = vmatpush.msra.mxu1 %v3804_v1  ;;  %1109 = vmatpush.msrb.mxu0 %v3842_v58 }
 0x493   :  { %1092 = vmatpush.msrb.mxu3 %v3824_v23  ;;  %1221 = vmatpush.msra.mxu2 %v3866_v32  ;;  %v3896_v23 = vld [vmem:[#allocation11 + $0x190] sm:$0xff]  ;;  %v3898_v32 = vld [vmem:[#allocation11 + $0x198] sm:$0xff] }
 0x494   :  { %1131 = vmatpush.msra.mxu1 %v3818_v30  ;;  %1110 = vmatpush.msrb.mxu0 %v3854_v27  ;;  %4945 = vst [vmem:[#allocation80_spill] sm:$0xff] %v3896_v23 }
 0x495   :  { %1093 = vmatpush.msrb.mxu3 %v3838_v42  ;;  %v3884_v42 = vld [vmem:[#allocation11 + $0x1b0] sm:$0xff]  ;;  %1222 = vmatpush.msra.mxu2 %v3878_v49  ;;  %4946 = vst [vmem:[#allocation81_spill] sm:$0xff] %v3898_v32 }
 0x496   :  { %1132 = vmatpush.msra.mxu1 %v3830_v18  ;;  %1111 = vmatpush.msrb.mxu0 %v3868_v12  ;;  %4941 = vst [vmem:[#allocation76_spill] sm:$0xff] %v3884_v42  ;;  %v4007_v18 = vld [vmem:[#allocation11 + $0x98] sm:$0xff] }
 0x497   :  { %1094 = vmatpush.msrb.mxu3 %v3850_v50  ;;  %4980 = vst [vmem:[#allocation114_spill] sm:$0xff] %v4007_v18 }
 0x498   :  { %1133 = vmatpush.msra.mxu1 %v3844_v45  ;;  %1112 = vmatpush.msrb.mxu0 %v3880_v59  ;;  %v3913_v59 = vld [vmem:[#allocation11 + $0x170] sm:$0xff] }
 0x499   :  { %1159 = vmatpush.msra.mxu3 %v3860_v16  ;;  %v3890_v16 = vld [vmem:[#allocation11 + $0x378] sm:$0xff]  ;;  %4949 = vst [vmem:[#allocation84_spill] sm:$0xff] %v3913_v59 }
 0x49a   :  { %1134 = vmatpush.msra.mxu1 %v3856_v21  ;;  %4943 = vst [vmem:[#allocation78_spill] sm:$0xff] %v3890_v16  ;;  %1223 = vmatpush.msra.mxu2 %v3890_v16  ;;  %v3929_v16 = vld [vmem:[#allocation11 + $0x3d0] sm:$0xff] }
 0x49b   :  { %1160 = vmatpush.msra.mxu3 %v3872_v60  ;;  %v3905_v60 = vld [vmem:[#allocation11 + $0x358] sm:$0xff]  ;;  %4954 = vst [vmem:[#allocation89_spill] sm:$0xff] %v3929_v16 }
 0x49c   :  { %1199 = vmatpush.msrb.mxu1 %v3862_v9  ;;  %v3892_v9 = vld [vmem:[#allocation11 + $0x220] sm:$0xff]  ;;  %4947 = vst [vmem:[#allocation82_spill] sm:$0xff] %v3905_v60  ;;  %1224 = vmatpush.msra.mxu2 %v3905_v60  ;;  %v3941_v60 = vld [vmem:[#allocation11 + $0x3b0] sm:$0xff] }
 0x49d   :  { %4944 = vst [vmem:[#allocation79_spill] sm:$0xff] %v3892_v9  ;;  %1161 = vmatpush.msra.mxu3 %v3884_v42  ;;  %1113 = vmatpush.msrb.mxu0 %v3892_v9  ;;  %v3922_v42 = vld [vmem:[#allocation11 + $0x338] sm:$0xff] }
 0x49e   :  { %1200 = vmatpush.msrb.mxu1 %v3874_v8  ;;  %v3907_v8 = vld [vmem:[#allocation11 + $0x200] sm:$0xff]  ;;  %4952 = vst [vmem:[#allocation87_spill] sm:$0xff] %v3922_v42  ;;  %1225 = vmatpush.msra.mxu2 %v3922_v42  ;;  %v3953_v42 = vld [vmem:[#allocation11 + $0x390] sm:$0xff] }
 0x49f   :  { %4948 = vst [vmem:[#allocation83_spill] sm:$0xff] %v3907_v8  ;;  %1162 = vmatpush.msra.mxu3 %v3896_v23  ;;  %1114 = vmatpush.msrb.mxu0 %v3907_v8  ;;  %v3933_v23 = vld [vmem:[#allocation11 + $0x158] sm:$0xff] }
 0x4a0   :  { %1201 = vmatpush.msrb.mxu1 %v3886_v4  ;;  %4955 = vst [vmem:[#allocation90_spill] sm:$0xff] %v3933_v23 }
 0x4a1   :  { %1163 = vmatpush.msra.mxu3 %v3913_v59  ;;  %4958 = vst [vmem:[#allocation93_spill] sm:$0xff] %v3941_v60  ;;  %v3945_v59 = vld [vmem:[#allocation11 + $0x138] sm:$0xff] }
 0x4a2   :  { %1202 = vmatpush.msrb.mxu1 %v3898_v32  ;;  %v3935_v32 = vld [vmem:[#allocation11 + $0x318] sm:$0xff]  ;;  %4959 = vst [vmem:[#allocation94_spill] sm:$0xff] %v3945_v59 }
 0x4a3   :  { %4956 = vst [vmem:[#allocation91_spill] sm:$0xff] %v3935_v32  ;;  %1226 = vmatpush.msra.mxu2 %v3935_v32  ;;  %v3964_v32 = vld [vmem:[#allocation11 + $0xf0] sm:$0xff] }
 0x4a4   :  { %4962 = vst [vmem:[#allocation97_spill] sm:$0xff] %v3953_v42 }
 0x4a5   :  { %4965 = vst [vmem:[#allocation100_spill] sm:$0xff] %v3964_v32 }
 0x4c8   :  { %v996_v4 = vpop.permute.xlu2 %995 }
 0x4c9   :  { %v1005_v12 = vmul.f32 %v996_v4, %v3471_v11  ;;  %v3979_v11 = vld [vmem:[#allocation11 + $0x350] sm:$0xff] }
 0x4ca   :  { %4970 = vst [vmem:[#allocation105_spill] sm:$0xff] %v3979_v11 }
 0x4db   :  { %v3758_v57 = vpop.permute.xlu1 %960 }
 0x4dc   :  { %v966_v50 = vpop.permute.xlu0 %965  ;;  %v998_v24 = vmul.f32 %v3758_v57, %v3448_v38  ;;  %v3920_v38 = vld [vmem:[#allocation11 + $0x178] sm:$0xff] }
 0x4dd   :  { %v999_v21 = vmul.f32 %v966_v50, %v3451_v44  ;;  %v3915_v50 = vld [vmem:[#allocation11 + $0x3f0] sm:$0xff]  ;;  %4951 = vst [vmem:[#allocation86_spill] sm:$0xff] %v3920_v38  ;;  %1203 = vmatpush.msrb.mxu1 %v3920_v38 }
 0x4de   :  { %4950 = vst [vmem:[#allocation85_spill] sm:$0xff] %v3915_v50  ;;  %1179 = vmatpush.msra.mxu0 %v3915_v50  ;;  %v3947_v50 = vld [vmem:[#allocation11 + $0x2f8] sm:$0xff]  ;;  %v3951_v38 = vld [vmem:[#allocation11 + $0x110] sm:$0xff] }
 0x4df   :  { %4960 = vst [vmem:[#allocation95_spill] sm:$0xff] %v3947_v50  ;;  %1204 = vmatpush.msrb.mxu1 %v3933_v23  ;;  %1227 = vmatpush.msra.mxu2 %v3947_v50  ;;  %v3966_v23 = vld [vmem:[#allocation11 + $0x370] sm:$0xff] }
 0x4e0   :  { %1180 = vmatpush.msra.mxu0 %v3929_v16  ;;  %4961 = vst [vmem:[#allocation96_spill] sm:$0xff] %v3951_v38  ;;  %v3960_v16 = vld [vmem:[#allocation11 + $0x2d8] sm:$0xff] }
 0x4e1   :  { %4964 = vst [vmem:[#allocation99_spill] sm:$0xff] %v3960_v16  ;;  %1205 = vmatpush.msrb.mxu1 %v3945_v59  ;;  %1228 = vmatpush.msra.mxu2 %v3960_v16 }
 0x4e2   :  { %1181 = vmatpush.msra.mxu0 %v3941_v60  ;;  %4966 = vst [vmem:[#allocation101_spill] sm:$0xff] %v3966_v23 }
 0x4e3   :  { %v3814_v33 = vpop.permute.xlu1 %970 }
 0x4e4   :  { %v1000_v49 = vmul.f32 %v3814_v33, %v3455_v48  ;;  %v3927_v48 = vld [vmem:[#allocation11 + $0x150] sm:$0xff]  ;;  %1182 = vmatpush.msra.mxu0 %v3953_v42 }
 0x4e5   :  { %4953 = vst [vmem:[#allocation88_spill] sm:$0xff] %v3927_v48  ;;  %1164 = vmatpush.msra.mxu3 %v3927_v48  ;;  %v3958_v48 = vld [vmem:[#allocation11 + $0x118] sm:$0xff] }
 0x4e6   :  { %4963 = vst [vmem:[#allocation98_spill] sm:$0xff] %v3958_v48  ;;  %1206 = vmatpush.msrb.mxu1 %v3958_v48  ;;  %1183 = vmatpush.msra.mxu0 %v3966_v23 }
 0x4e8   :  { %1184 = vmatpush.msra.mxu0 %v3979_v11  ;;  %v4005_v11 = vld [vmem:[#allocation11 + $0x310] sm:$0xff] }
 0x4e9   :  { %4979 = vst [vmem:[#allocation113_spill] sm:$0xff] %v4005_v11 }
 0x4eb   :  { %v976_v14 = vpop.permute.xlu1 %975 }
 0x4ec   :  { %v1001_v57 = vmul.f32 %v976_v14, %v3458_v54  ;;  %v1012_v14 = vrot.slane %v999_v21, 4  ;;  %v1006_v54 = vrot.slane %v998_v24, 4 }
 0x4ee   :  { %v1024_v8 = vrot.slane %v1001_v57, 4  ;;  %v1013_v45 = vadd.f32 %v1012_v14, %v999_v21  ;;  %v1007_v0 = vadd.f32 %v1006_v54, %v998_v24  ;;  %v3970_v24 = vld [vmem:[#allocation11 + $0xf8] sm:$0xff] }
 0x4ef   :  { %4967 = vst [vmem:[#allocation102_spill] sm:$0xff] %v3970_v24  ;;  %v3972_v54 = vld [vmem:[#allocation11 + $0x2b8] sm:$0xff]  ;;  %1207 = vmatpush.msrb.mxu1 %v3970_v24 }
 0x4f0   :  { %v1025_v4 = vadd.f32 %v1024_v8, %v1001_v57  ;;  %4968 = vst [vmem:[#allocation103_spill] sm:$0xff] %v3972_v54  ;;  %v1048_v8 = vrot.slane %v1005_v12, 4  ;;  %v1014_v57 = vrot.slane %v1013_v45, 2  ;;  %v1008_v50 = vrot.slane %v1007_v0, 2  ;;  %1229 = vmatpush.msra.mxu2 %v3972_v54  ;;  %v3999_v24 = vld [vmem:[#allocation11 + $0x278] sm:$0xff]  ;;  %v4001_v54 = vld [vmem:[#allocation11 + $0x90] sm:$0xff] }
 0x4f1   :  { %4976 = vst [vmem:[#allocation111_spill] sm:$0xff] %v3999_v24 }
 0x4f2   :  { %v1026_v16 = vrot.slane %v1025_v4, 2  ;;  %4977 = vst [vmem:[#allocation112_spill] sm:$0xff] %v4001_v54  ;;  %v1049_v23 = vadd.f32 %v1048_v8, %v1005_v12  ;;  %v1015_v42 = vadd.f32 %v1014_v57, %v1013_v45  ;;  %v1009_v60 = vadd.f32 %v1008_v50, %v1007_v0  ;;  %v4017_v0 = vld [vmem:[#allocation11 + $0x2f0] sm:$0xff]  ;;  %v4019_v50 = vld [vmem:[#allocation11 + $0x78] sm:$0xff] }
 0x4f3   :  { %v981_v44 = vpop.permute.xlu1 %980  ;;  %4983 = vst [vmem:[#allocation117_spill] sm:$0xff] %v4017_v0  ;;  %v4024_v57 = vld [vmem:[#allocation11 + $0x238] sm:$0xff] }
 0x4f4   :  { %v1002_v33 = vmul.f32 %v981_v44, %v3461_v61  ;;  %v1018_v44 = vrot.slane %v1000_v49, 4  ;;  %v3939_v61 = vld [vmem:[#allocation11 + $0x130] sm:$0xff]  ;;  %v1027_v12 = vadd.f32 %v1026_v16, %v1025_v4  ;;  %4984 = vst [vmem:[#allocation118_spill] sm:$0xff] %v4019_v50  ;;  %v1050_v16 = vrot.slane %v1049_v23, 2 }
 0x4f5   :  { %4957 = vst [vmem:[#allocation92_spill] sm:$0xff] %v3939_v61  ;;  %1165 = vmatpush.msra.mxu3 %v3939_v61  ;;  %v3995_v61 = vld [vmem:[#allocation11 + $0xb8] sm:$0xff]  ;;  %v1016_v4 = vrot.slane %v1015_v42, 1 }
 0x4f6   :  { %v1030_v9 = vrot.slane %v1002_v33, 4  ;;  %v1019_v27 = vadd.f32 %v1018_v44, %v1000_v49  ;;  %v3977_v44 = vld [vmem:[#allocation11 + $0xd0] sm:$0xff]  ;;  %4975 = vst [vmem:[#allocation110_spill] sm:$0xff] %v3995_v61 }
 0x4f7   :  { %1166 = vmatpush.msra.mxu3 %v3951_v38  ;;  %4969 = vst [vmem:[#allocation104_spill] sm:$0xff] %v3977_v44  ;;  %v3983_v38 = vld [vmem:[#allocation11 + $0xd8] sm:$0xff] }
 0x4f8   :  { %v1031_v14 = vadd.f32 %v1030_v9, %v1002_v33  ;;  %4971 = vst [vmem:[#allocation106_spill] sm:$0xff] %v3983_v38  ;;  %v3985_v9 = vld [vmem:[#allocation11 + $0x298] sm:$0xff]  ;;  %v1020_v33 = vrot.slane %v1019_v27, 2  ;;  %1208 = vmatpush.msrb.mxu1 %v3983_v38  ;;  %v4013_v38 = vld [vmem:[#allocation11 + $0x70] sm:$0xff] }
 0x4f9   :  { %1167 = vmatpush.msra.mxu3 %v3964_v32  ;;  %4972 = vst [vmem:[#allocation107_spill] sm:$0xff] %v3985_v9  ;;  %v3993_v32 = vld [vmem:[#allocation11 + $0x330] sm:$0xff]  ;;  %1230 = vmatpush.msra.mxu2 %v3985_v9  ;;  %v4011_v9 = vld [vmem:[#allocation11 + $0x258] sm:$0xff] }
 0x4fa   :  { %4974 = vst [vmem:[#allocation109_spill] sm:$0xff] %v3993_v32  ;;  %v1032_v48 = vrot.slane %v1031_v14, 2  ;;  %1185 = vmatpush.msra.mxu0 %v3993_v32  ;;  %1209 = vmatpush.msrb.mxu1 %v3995_v61  ;;  %v1028_v61 = vrot.slane %v1027_v12, 1 }
 0x4fb   :  { %v986_v21 = vpop.permute.xlu1 %985  ;;  %1168 = vmatpush.msra.mxu3 %v3977_v44  ;;  %v4978_v44 = vmov 0.0   ;;  %4981 = vst [vmem:[#allocation115_spill] sm:$0xff] %v4011_v9  ;;  %1231 = vmatpush.msra.mxu2 %v3999_v24  ;;  %v1010_v24 = vrot.slane %v1009_v60, 1 }
 0x4fc   :  { %v1003_v49 = vmul.f32 %v986_v21, %v3465_v2  ;;  %v3989_v2 = vld [vmem:[#allocation11 + $0xb0] sm:$0xff]  ;;  %1155 = vmatmul.f32.vlgmr.msrb.gmra.mxu2 %v4978_v44  ;;  %4982 = vst [vmem:[#allocation116_spill] sm:$0xff] %v4013_v38  ;;  %1186 = vmatpush.msra.mxu0 %v4005_v11  ;;  %v1017_v11 = vadd.f32 %v1016_v4, %v1015_v42 }
 0x4fd   :  { %4973 = vst [vmem:[#allocation108_spill] sm:$0xff] %v3989_v2  ;;  %1169 = vmatpush.msra.mxu3 %v3989_v2  ;;  %1210 = vmatpush.msrb.mxu1 %v4007_v18  ;;  %v4038_v18 = vld [vmem:[#allocation11 + $0x30] sm:$0xff]  ;;  %v1011_v32 = vadd.f32 %v1010_v24, %v1009_v60 }
 0x4fe   :  { %v1036_v21 = vrot.slane %v1003_v49, 4  ;;  %4985 = vst [vmem:[#allocation119_spill] sm:$0xff] %v4024_v57  ;;  %1232 = vmatpush.msra.mxu2 %v4011_v9  ;;  %1187 = vmatpush.msra.mxu0 %v4017_v0  ;;  %v1051_v0 = vadd.f32 %v1050_v16, %v1049_v23  ;;  %v4060_v23 = vld [vmem:[#allocation11 + $0x270] sm:$0xff] }
 0x4ff   :  { %1170 = vmatpush.msra.mxu3 %v4001_v54  ;;  %v4030_v54 = vld [vmem:[#allocation11 + $0x2d0] sm:$0xff]  ;;  %1211 = vmatpush.msrb.mxu1 %v4019_v50 }
 0x500   :  { %v1037_v59 = vadd.f32 %v1036_v21, %v1003_v49  ;;  %v1021_v49 = vadd.f32 %v1020_v33, %v1019_v27  ;;  %v1033_v27 = vadd.f32 %v1032_v48, %v1031_v14  ;;  %v4026_v33 = vld [vmem:[#allocation11 + $0x50] sm:$0xff]  ;;  %v4032_v48 = vld [vmem:[#allocation11 + $0x58] sm:$0xff]  ;;  %1233 = vmatpush.msra.mxu2 %v4024_v57  ;;  %1188 = vmatpush.msra.mxu0 %v4030_v54  ;;  %v1052_v24 = vrot.slane %v1051_v0, 1 }
 0x501   :  { %4986 = vst [vmem:[#allocation120_spill] sm:$0xff] %v4026_v33  ;;  %1171 = vmatpush.msra.mxu3 %v4013_v38  ;;  %1212 = vmatpush.msrb.mxu1 %v4032_v48  ;;  %v4046_v38 = vld [vmem:[#allocation11 + $0x38] sm:$0xff]  ;;  %v4048_v50 = vld [vmem:[#allocation11 + $0x10] sm:$0xff] }
 0x502   :  { %v1038_v21 = vrot.slane %v1037_v59, 2  ;;  %4987 = vst [vmem:[#allocation121_spill] sm:$0xff] %v4032_v48  ;;  %v1022_v14 = vrot.slane %v1021_v49, 1  ;;  %v4052_v57 = vld [vmem:[#allocation11 + $0x290] sm:$0xff]  ;;  %v1029_v48 = vadd.f32 %v1028_v61, %v1027_v12  ;;  %1115 = vmatmul.f32.vlgmr.msrb.gmra.mxu0 %v4978_v44 }
 0x503   :  { %v991_v45 = vpop.permute.xlu1 %990  ;;  %1172 = vmatpush.msra.mxu3 %v4026_v33  ;;  %4988 = vst [vmem:[#allocation122_spill] sm:$0xff] %v4046_v38  ;;  %1213 = vmatpush.msrb.mxu1 %v4046_v38  ;;  %v4067_v61 = vld [vmem:[#allocation11 + $0x250] sm:$0xff] }
 0x504   :  { %v1004_v8 = vmul.f32 %v991_v45, %v3468_v7  ;;  %v1039_v2 = vadd.f32 %v1038_v21, %v1037_v59  ;;  %v4036_v7 = vld [vmem:[#allocation11 + $0x218] sm:$0xff]  ;;  %v4042_v59 = vld [vmem:[#allocation11 + $0x2b0] sm:$0xff]  ;;  %v1034_v21 = vrot.slane %v1033_v27, 1  ;;  %v1023_v33 = vadd.f32 %v1022_v14, %v1021_v49  ;;  %v5007_v14 = vld [vmem:[#allocation85_spill] sm:$0xff] }
 0x505   :  { %1234 = vmatpush.msra.mxu2 %v4036_v7  ;;  %1173 = vmatpush.msra.mxu3 %v4038_v18  ;;  %v1062_v49 = vsel %vm711_vm3, %v1017_v11, %v1011_v32  ;;  %v1053_v11 = vadd.f32 %v1052_v24, %v1051_v0  ;;  %v2960_v0 = vld [vmem:[#allocation10 + $0x60] sm:$0xff] }
 0x506   :  { %v1042_v45 = vrot.slane %v1004_v8, 4  ;;  %v1040_v63 = vrot.slane %v1039_v2, 1  ;;  %1235 = vmatmul.f32.vlgmr.msra.gmra.mxu2 %v4978_v44  ;;  %1189 = vmatpush.msra.mxu0 %v4042_v59  ;;  %v1035_v60 = vadd.f32 %v1034_v21, %v1033_v27  ;;  %v1063_v12 = vsel %vm713_vm4, %v1023_v33, %v1062_v49  ;;  %v4081_v33 = vld [vmem:[#allocation11 + $0x210] sm:$0xff]  ;;  %v5008_v21 = vld [vmem:[#allocation65_spill] sm:$0xff]  ;;  %v5012_v24 = vld [vmem:[#allocation68_spill] sm:$0xff] }
 0x507   :  { %1174 = vmatpush.msra.mxu3 %v4048_v50  ;;  %1810 = vmatpush.msrb.mxu2 %v3676_v6  ;;  %v4073_v6 = vld [vmem:[#allocation11 + $0x230] sm:$0xff]  ;;  %v5013_v49 = vld [vmem:[#allocation81_spill] sm:$0xff] }
 0x508   :  { %v1043_v9 = vadd.f32 %v1042_v45, %v1004_v8  ;;  %v4056_v45 = vld [vmem:[#allocation11 + $0x18] sm:$0xff]  ;;  %1190 = vmatpush.msra.mxu0 %v4052_v57  ;;  %v1041_v16 = vadd.f32 %v1040_v63, %v1039_v2 }
 0x509   :  { %4989 = vst [vmem:[#allocation123_spill] sm:$0xff] %v4056_v45  ;;  %1214 = vmatpush.msrb.mxu1 %v4056_v45  ;;  %1811 = vmatpush.msrb.mxu2 %v3685_v3 }
 0x50a   :  { %v1044_v8 = vrot.slane %v1043_v9, 2  ;;  %1191 = vmatpush.msra.mxu0 %v4060_v23 }
 0x50b   :  { %1812 = vmatpush.msrb.mxu2 %v3698_v20  ;;  %v2958_v20 = vld [vmem:[#allocation10 + $0x70] sm:$0xff] }
 0x50c   :  { %v1045_v42 = vadd.f32 %v1044_v8, %v1043_v9  ;;  %v1064_v9 = vsel %vm715_vm5, %v1029_v48, %v1063_v12  ;;  %1192 = vmatpush.msra.mxu0 %v4067_v61  ;;  %v2957_v48 = vld [vmem:[#allocation10 + $0x78] sm:$0xff]  ;;  %v5009_v8 = vld [vmem:[#allocation77_spill] sm:$0xff] }
 0x50d   :  { %v1065_v2 = vsel %vm717_vm6, %v1035_v60, %v1064_v9  ;;  %1813 = vmatpush.msrb.mxu2 %v3711_v39  ;;  %v2959_v39 = vld [vmem:[#allocation10 + $0x68] sm:$0xff]  ;;  %v5010_v60 = vld [vmem:[#allocation42_spill] sm:$0xff] }
 0x50e   :  { %v1046_v4 = vrot.slane %v1045_v42, 1  ;;  %v1066_v63 = vsel %vm4883_vm7, %v1041_v16, %v1065_v2  ;;  %1193 = vmatpush.msra.mxu0 %v4073_v6  ;;  %v5014_v16 = vld [vmem:[#allocation43_spill] sm:$0xff]  ;;  %v5015_v12 = vld [vmem:[#allocation93_spill] sm:$0xff]  ;;  %v5017_v9 = vld [vmem:[#allocation86_spill] sm:$0xff] }
 0x50f   :  { %1814 = vmatpush.msrb.mxu2 %v3719_v53  ;;  %v2967_v53 = vld [vmem:[#allocation10 + $0x28] sm:$0xff] }
 0x510   :  { %v1047_v27 = vadd.f32 %v1046_v4, %v1045_v42  ;;  %1194 = vmatpush.msra.mxu0 %v4081_v33  ;;  %v5011_v42 = vld [vmem:[#allocation89_spill] sm:$0xff]  ;;  %v5016_v4 = vld [vmem:[#allocation72_spill] sm:$0xff] }
 0x511   :  { %1195 = vmatmul.f32.vlgmr.msra.gmra.mxu0 %v4978_v44  ;;  %1815 = vmatpush.msrb.mxu2 %v3731_v17  ;;  %v4991_v17 = vld [vmem:[#allocation59_spill] sm:$0xff]  ;;  %v5006_v44 = vld [vmem:[#allocation41_spill] sm:$0xff] }
 0x512   :  { %v1067_v32 = vsel %vm4882_vm8, %v1047_v27, %v1066_v63  ;;  %1770 = vmatpush.msrb.mxu0 %v3683_v51  ;;  %v2962_v51 = vld [vmem:[#allocation10 + $0x50] sm:$0xff]  ;;  %v5018_v27 = vld [vmem:[#allocation44_spill] sm:$0xff]  ;;  %v5019_v2 = vld [vmem:[#allocation97_spill] sm:$0xff] }
 0x513   :  { %v1068_v3 = vsel %vm4881_vm9, %v1053_v11, %v1067_v32  ;;  %1816 = vmatpush.msrb.mxu2 %v3743_v28  ;;  %v4994_v28 = vld [vmem:[#allocation63_spill] sm:$0xff]  ;;  %v5020_v11 = vld [vmem:[#allocation76_spill] sm:$0xff]  ;;  %v5021_v63 = vld [vmem:[#allocation90_spill] sm:$0xff] }
 0x514   :  { %1095 = vmatmul.f32.vlgmr.msrb.gmra.mxu3 %v1068_v3  ;;  %1135 = vmatmul.f32.vlgmr.msra.gmra.mxu1 %v1068_v3  ;;  %v5022_v32 = vld [vmem:[#allocation45_spill] sm:$0xff] }
 0x515   :  { %1302 = vmatpush.msrb.mxu3 %v2957_v48  ;;  %1790 = vmatpush.msra.mxu1 %v3709_v31  ;;  %v2961_v31 = vld [vmem:[#allocation10 + $0x58] sm:$0xff]  ;;  %v5024_v48 = vld [vmem:[#allocation80_spill] sm:$0xff] }
 0x516   :  { %1771 = vmatpush.msrb.mxu0 %v3691_v55  ;;  %1817 = vmatpush.msrb.mxu2 %v3756_v56  ;;  %v2963_v55 = vld [vmem:[#allocation10 + $0x48] sm:$0xff]  ;;  %v4998_v56 = vld [vmem:[#allocation75_spill] sm:$0xff] }
 0x517   :  { %1303 = vmatpush.msrb.mxu3 %v2958_v20  ;;  %1791 = vmatpush.msra.mxu1 %v3727_v19  ;;  %v4990_v19 = vld [vmem:[#allocation52_spill] sm:$0xff]  ;;  %v5025_v20 = vld [vmem:[#allocation94_spill] sm:$0xff] }
 0x518   :  { %1772 = vmatpush.msrb.mxu0 %v3696_v10  ;;  %1818 = vmatpush.msrb.mxu2 %v3770_v22  ;;  %v2964_v10 = vld [vmem:[#allocation10 + $0x40] sm:$0xff]  ;;  %v5000_v22 = vld [vmem:[#allocation69_spill] sm:$0xff] }
 0x519   :  { %1304 = vmatpush.msrb.mxu3 %v2959_v39  ;;  %1792 = vmatpush.msra.mxu1 %v3739_v35  ;;  %v4993_v35 = vld [vmem:[#allocation54_spill] sm:$0xff] }
 0x51a   :  { %1773 = vmatpush.msrb.mxu0 %v3707_v5  ;;  %1819 = vmatpush.msrb.mxu2 %v3780_v43  ;;  %v2965_v5 = vld [vmem:[#allocation10 + $0x38] sm:$0xff]  ;;  %v5026_v39 = vld [vmem:[#allocation46_spill] sm:$0xff] }
 0x51b   :  { %1305 = vmatpush.msrb.mxu3 %v2960_v0  ;;  %1793 = vmatpush.msra.mxu1 %v3754_v29  ;;  %v4997_v29 = vld [vmem:[#allocation67_spill] sm:$0xff]  ;;  %v5027_v0 = vld [vmem:[#allocation105_spill] sm:$0xff] }
 0x51c   :  { %1175 = vmatmul.f32.vlgmr.msra.gmra.mxu3 %v1068_v3  ;;  %1215 = vmatmul.f32.vlgmr.msrb.gmra.mxu1 %v1068_v3  ;;  %v5001_v43 = vld [vmem:[#allocation79_spill] sm:$0xff]  ;;  %v5023_v3 = vld [vmem:[#allocation101_spill] sm:$0xff] }
 0x51d   :  { %1306 = vmatpush.msrb.mxu3 %v2961_v31  ;;  %1794 = vmatpush.msra.mxu1 %v3766_v46  ;;  %v4999_v46 = vld [vmem:[#allocation58_spill] sm:$0xff]  ;;  %v5028_v31 = vld [vmem:[#allocation84_spill] sm:$0xff] }
 0x51e   :  { %1774 = vmatpush.msrb.mxu0 %v3717_v13  ;;  %1820 = vmatpush.msrb.mxu2 %v3792_v52  ;;  %v2966_v13 = vld [vmem:[#allocation10 + $0x30] sm:$0xff] }
 0x51f   :  { %1307 = vmatpush.msrb.mxu3 %v2962_v51  ;;  %1795 = vmatpush.msra.mxu1 %v3778_v62  ;;  %v2972_v62 = vld [vmem:[#allocation10] sm:$0xff]  ;;  %v5003_v52 = vld [vmem:[#allocation62_spill] sm:$0xff] }
 0x520   :  { %1775 = vmatpush.msrb.mxu0 %v3725_v47  ;;  %1821 = vmatpush.msrb.mxu2 %v3804_v1  ;;  %v2968_v47 = vld [vmem:[#allocation10 + $0x20] sm:$0xff]  ;;  %v5005_v1 = vld [vmem:[#allocation73_spill] sm:$0xff]  ;;  %v5029_v51 = vld [vmem:[#allocation98_spill] sm:$0xff] }
 0x521   :  { %1308 = vmatpush.msrb.mxu3 %v2963_v55  ;;  %1796 = vmatpush.msra.mxu1 %v3788_v40  ;;  %v5002_v40 = vld [vmem:[#allocation40_spill] sm:$0xff]  ;;  %v5030_v55 = vld [vmem:[#allocation47_spill] sm:$0xff] }
 0x522   :  { %1776 = vmatpush.msrb.mxu0 %v3737_v25  ;;  %1822 = vmatpush.msrb.mxu2 %v3818_v30  ;;  %v4992_v25 = vld [vmem:[#allocation66_spill] sm:$0xff]  ;;  %v4996_v30 = vld [vmem:[#allocation56_spill] sm:$0xff] }
 0x523   :  { %1309 = vmatpush.msrb.mxu3 %v2964_v10  ;;  %1797 = vmatpush.msra.mxu1 %v3800_v41  ;;  %v5004_v41 = vld [vmem:[#allocation83_spill] sm:$0xff]  ;;  %v5031_v10 = vld [vmem:[#allocation109_spill] sm:$0xff] }
 0x524   :  { %1777 = vmatpush.msrb.mxu0 %v3752_v34  ;;  %1823 = vmatpush.msrb.mxu2 %v4991_v17  ;;  %v4995_v34 = vld [vmem:[#allocation71_spill] sm:$0xff] }
 0x525   :  { %1310 = vmatpush.msrb.mxu3 %v2965_v5  ;;  %1798 = vmatpush.msra.mxu1 %v3812_v36  ;;  %v2969_v36 = vld [vmem:[#allocation10 + $0x18] sm:$0xff]  ;;  %v5032_v5 = vld [vmem:[#allocation88_spill] sm:$0xff] }
 0x526   :  { %1778 = vmatpush.msrb.mxu0 %v3764_v37  ;;  %1824 = vmatpush.msrb.mxu2 %v4994_v28 }
 0x527   :  { %1311 = vmatpush.msrb.mxu3 %v2966_v13  ;;  %1799 = vmatpush.msra.mxu1 %v3826_v15  ;;  %v2970_v15 = vld [vmem:[#allocation10 + $0x10] sm:$0xff] }
 0x528   :  { %1779 = vmatpush.msrb.mxu0 %v3774_v26  ;;  %1825 = vmatpush.msrb.mxu2 %v4997_v29  ;;  %v5033_v13 = vld [vmem:[#allocation102_spill] sm:$0xff] }
 0x529   :  { %1312 = vmatpush.msrb.mxu3 %v2967_v53  ;;  %1800 = vmatpush.msra.mxu1 %v3842_v58  ;;  %v2971_v58 = vld [vmem:[#allocation10 + $0x8] sm:$0xff]  ;;  %v5034_v53 = vld [vmem:[#allocation48_spill] sm:$0xff] }
 0x52a   :  { %1780 = vmatpush.msrb.mxu0 %v4990_v19  ;;  %1890 = vmatpush.msra.mxu2 %v5000_v22 }
 0x52b   :  { %1313 = vmatpush.msrb.mxu3 %v2968_v47  ;;  %1801 = vmatpush.msra.mxu1 %v4992_v25  ;;  %v5035_v47 = vld [vmem:[#allocation113_spill] sm:$0xff]  ;;  %v5037_v25 = vld [vmem:[#allocation106_spill] sm:$0xff] }
 0x52c   :  { %1781 = vmatpush.msrb.mxu0 %v4993_v35  ;;  %1891 = vmatpush.msra.mxu2 %v5005_v1 }
 0x52d   :  { %1314 = vmatpush.msrb.mxu3 %v2969_v36  ;;  %1802 = vmatpush.msra.mxu1 %v4995_v34  ;;  %v5036_v36 = vld [vmem:[#allocation92_spill] sm:$0xff]  ;;  %v5039_v34 = vld [vmem:[#allocation117_spill] sm:$0xff] }
 0x52e   :  { %1782 = vmatpush.msrb.mxu0 %v4996_v30  ;;  %1892 = vmatpush.msra.mxu2 %v5009_v8 }
 0x52f   :  { %1315 = vmatpush.msrb.mxu3 %v2970_v15  ;;  %1803 = vmatpush.msra.mxu1 %v4998_v56  ;;  %v5038_v15 = vld [vmem:[#allocation49_spill] sm:$0xff]  ;;  %v5041_v56 = vld [vmem:[#allocation110_spill] sm:$0xff] }
 0x530   :  { %1783 = vmatpush.msrb.mxu0 %v4999_v46  ;;  %1893 = vmatpush.msra.mxu2 %v5013_v49 }
 0x531   :  { %1316 = vmatpush.msrb.mxu3 %v2971_v58  ;;  %1804 = vmatpush.msra.mxu1 %v5001_v43  ;;  %v5040_v58 = vld [vmem:[#allocation96_spill] sm:$0xff] }
 0x532   :  { %1784 = vmatpush.msrb.mxu0 %v5003_v52  ;;  %1894 = vmatpush.msra.mxu2 %v5017_v9  ;;  %v5043_v43 = vld [vmem:[#allocation100_spill] sm:$0xff] }
 0x533   :  { %1317 = vmatpush.msrb.mxu3 %v2972_v62  ;;  %1805 = vmatpush.msra.mxu1 %v5004_v41  ;;  %v5042_v62 = vld [vmem:[#allocation50_spill] sm:$0xff]  ;;  %v5045_v41 = vld [vmem:[#allocation51_spill] sm:$0xff] }
 0x534   :  { %1785 = vmatpush.msrb.mxu0 %v5008_v21  ;;  %1895 = vmatpush.msra.mxu2 %v5021_v63 }
 0x535   :  { %1830 = vmatpush.msra.mxu3 %v5002_v40  ;;  %1870 = vmatpush.msrb.mxu1 %v5007_v14  ;;  %v5044_v40 = vld [vmem:[#allocation114_spill] sm:$0xff] }
 0x536   :  { %1850 = vmatpush.msra.mxu0 %v5012_v24  ;;  %1896 = vmatpush.msra.mxu2 %v5025_v20  ;;  %v5047_v14 = vld [vmem:[#allocation118_spill] sm:$0xff] }
 0x537   :  { %1831 = vmatpush.msra.mxu3 %v5006_v44  ;;  %1871 = vmatpush.msrb.mxu1 %v5011_v42  ;;  %v5046_v44 = vld [vmem:[#allocation104_spill] sm:$0xff] }
 0x538   :  { %1851 = vmatpush.msra.mxu0 %v5016_v4  ;;  %1897 = vmatpush.msra.mxu2 %v5029_v51  ;;  %v5049_v42 = vld [vmem:[#allocation108_spill] sm:$0xff] }
 0x539   :  { %1832 = vmatpush.msra.mxu3 %v5010_v60  ;;  %1872 = vmatpush.msrb.mxu1 %v5015_v12  ;;  %v5048_v60 = vld [vmem:[#allocation53_spill] sm:$0xff]  ;;  %v5052_v12 = vld [vmem:[#allocation112_spill] sm:$0xff] }
 0x53a   :  { %1852 = vmatpush.msra.mxu0 %v5020_v11  ;;  %1898 = vmatpush.msra.mxu2 %v5033_v13 }
 0x53b   :  { %1833 = vmatpush.msra.mxu3 %v5014_v16  ;;  %1873 = vmatpush.msrb.mxu1 %v5019_v2  ;;  %v5050_v16 = vld [vmem:[#allocation121_spill] sm:$0xff]  ;;  %v5056_v2 = vld [vmem:[#allocation120_spill] sm:$0xff] }
 0x53c   :  { %1853 = vmatpush.msra.mxu0 %v5024_v48  ;;  %1899 = vmatpush.msra.mxu2 %v5037_v25 }
 0x53d   :  { %1834 = vmatpush.msra.mxu3 %v5018_v27  ;;  %1874 = vmatpush.msrb.mxu1 %v5023_v3  ;;  %v5054_v27 = vld [vmem:[#allocation116_spill] sm:$0xff] }
 0x53e   :  { %1854 = vmatpush.msra.mxu0 %v5028_v31  ;;  %1900 = vmatpush.msra.mxu2 %v5041_v56 }
 0x53f   :  { %1835 = vmatpush.msra.mxu3 %v5022_v32  ;;  %1875 = vmatpush.msrb.mxu1 %v5027_v0 }
 0x540   :  { %1855 = vmatpush.msra.mxu0 %v5032_v5  ;;  %1901 = vmatpush.msra.mxu2 %v5044_v40 }
 0x541   :  { %1836 = vmatpush.msra.mxu3 %v5026_v39  ;;  %1876 = vmatpush.msrb.mxu1 %v5031_v10 }
 0x542   :  { %1856 = vmatpush.msra.mxu0 %v5036_v36  ;;  %1902 = vmatpush.msra.mxu2 %v5047_v14 }
 0x543   :  { %1837 = vmatpush.msra.mxu3 %v5030_v55  ;;  %1877 = vmatpush.msrb.mxu1 %v5035_v47 }
 0x544   :  { %1857 = vmatpush.msra.mxu0 %v5040_v58  ;;  %1903 = vmatpush.msra.mxu2 %v5050_v16 }
 0x545   :  { %1838 = vmatpush.msra.mxu3 %v5034_v53  ;;  %1878 = vmatpush.msrb.mxu1 %v5039_v34 }
 0x546   :  { %1858 = vmatpush.msra.mxu0 %v5043_v43  ;;  %1904 = vmatpush.msra.mxu2 %v4046_v38 }
 0x547   :  { %1839 = vmatpush.msra.mxu3 %v5038_v15  ;;  %1879 = vmatpush.msrb.mxu1 %v4030_v54  ;;  %v5051_v54 = vld [vmem:[#allocation55_spill] sm:$0xff] }
 0x548   :  { %1859 = vmatpush.msra.mxu0 %v5046_v44  ;;  %1905 = vmatpush.msra.mxu2 %v4056_v45 }
 0x549   :  { %1840 = vmatpush.msra.mxu3 %v5042_v62  ;;  %1880 = vmatpush.msrb.mxu1 %v4042_v59  ;;  %v5053_v59 = vld [vmem:[#allocation57_spill] sm:$0xff] }
 0x54a   :  { %1860 = vmatpush.msra.mxu0 %v5049_v42 }
 0x54b   :  { %1841 = vmatpush.msra.mxu3 %v5045_v41  ;;  %1881 = vmatpush.msrb.mxu1 %v4052_v57  ;;  %v5055_v57 = vld [vmem:[#allocation60_spill] sm:$0xff] }
 0x54c   :  { %1861 = vmatpush.msra.mxu0 %v5052_v12 }
 0x54d   :  { %1842 = vmatpush.msra.mxu3 %v5048_v60  ;;  %1882 = vmatpush.msrb.mxu1 %v4060_v23  ;;  %v513_v23 = vld [vmem:[%s4711_s10] sm:$0xf]  ;;  %s3315_s10 = smov [#allocation13]  }
 0x54e   :  { %1862 = vmatpush.msra.mxu0 %v5054_v27  ;;  %v4203_v10 = vperm.slane %v513_v23, 3  ;;  %s2708_s24 = sshll.u32 %s3315_s10, 4  ;;  %s2709_s24 = int_to_ptr.vmem [resolvable:$true] %s2708_s24 }
 0x54f   :  { %1843 = vmatpush.msra.mxu3 %v5051_v54  ;;  %1883 = vmatpush.msrb.mxu1 %v4067_v61  ;;  %v4198_v61 = vperm.slane %v513_v23, 1 }
 0x550   :  { %1863 = vmatpush.msra.mxu0 %v5056_v2  ;;  %5059 = vst [vmem:[#allocation66_spill] sm:$0xff] %v4203_v10 }
 0x551   :  { %1844 = vmatpush.msra.mxu3 %v5053_v59  ;;  %1884 = vmatpush.msrb.mxu1 %v4073_v6  ;;  %5057 = vst [vmem:[#allocation52_spill] sm:$0xff] %v4198_v61  ;;  %v4201_v6 = vperm.slane %v513_v23, 0 }
 0x552   :  { %1864 = vmatpush.msra.mxu0 %v4038_v18 }
 0x553   :  { %1845 = vmatpush.msra.mxu3 %v5055_v57  ;;  %1885 = vmatpush.msrb.mxu1 %v4081_v33  ;;  %5058 = vst [vmem:[#allocation59_spill] sm:$0xff] %v4201_v6 }
 0x554   :  { %1865 = vmatpush.msra.mxu0 %v4048_v50 }
 0x57f   :  { %v1156_v32 = vpop.f32.mrf.mxu2  ;;  %v1116_v53 = vpop.f32.mrf.mxu0 }
 0x589   :  { %v1236_v34 = vpop.f32.mrf.mxu2 }
 0x591   :  { %v1136_v3 = vpop.f32.mrf.mxu1 }
 0x592   :  { %v1137_v39 = vadd.f32 %v1136_v3, %v4198_v61 }
 0x594   :  { %v1157_v0 = vadd.f32 %v1156_v32, %v1137_v39 }
 0x596   :  { %v2779_v55 = vmul.f32 -1.442695, %v1157_v0  ;;  %v4207_v0 = vperm.slane %v513_v23, 2 }
 0x597   :  { %v1096_v33 = vpop.f32.mrf.mxu3 }
 0x598   :  { %2845 = vpow2.f32 %v2779_v55  ;;  %v1097_v47 = vadd.f32 %v1096_v33, %v4201_v6  ;;  %5060 = vst [vmem:[#allocation54_spill] sm:$0xff] %v4207_v0 }
 0x599   :  { %v1216_v15 = vpop.f32.mrf.mxu1 }
 0x59a   :  { %v1117_v62 = vadd.f32 %v1116_v53, %v1097_v47  ;;  %v1217_v41 = vadd.f32 %v1216_v15, %v4203_v10 }
 0x59c   :  { %v2778_v60 = vmul.f32 -1.442695, %v1117_v62  ;;  %v1237_v54 = vadd.f32 %v1236_v34, %v1217_v41  ;;  %v1196_v34 = vpop.f32.mrf.mxu0 }
 0x59e   :  { %v2846_v59 = vpop.eup %2845  ;;  %2847 = vpow2.f32 %v2778_v60  ;;  %v2780_v57 = vmul.f32 -1.442695, %v1237_v54 }
 0x59f   :  { %v1249_v32 = vadd.f32 1.0, %v2846_v59  ;;  %v1176_v61 = vpop.f32.mrf.mxu3 }
 0x5a0   :  { %2849 = vpow2.f32 %v2780_v57  ;;  %v1177_v47 = vadd.f32 %v1176_v61, %v4207_v0 }
 0x5a1   :  { %2851 = vrcp.f32 %v1249_v32  ;;  %v1277_v23 = vand.u32 2147483648, %v1249_v32  ;;  %vm1271_vm15 = vweird.f32 %v1249_v32  ;;  %v1275_v45 = vand.u32 2147483647, %v1249_v32 }
 0x5a2   :  { %v1197_v60 = vadd.f32 %v1196_v34, %v1177_v47 }
 0x5a3   :  { %v1278_v0 = vor.u32 1.1754944e-38, %v1277_v23  ;;  %vm1276_vm11 = vcmp.eq.f32.partialorder %v1275_v45, 8.507059e+37  ;;  %v2976_v23 = vld [vmem:[#allocation11 + $0x180] sm:$0xff] }
 0x5a4   :  { %v2848_v3 = vpop.eup %2847 }
 0x5a5   :  { %v1248_v39 = vadd.f32 1.0, %v2848_v3 }
 0x5a6   :  { %v2850_v55 = vpop.eup %2849 }
 0x5a7   :  { %v2852_v33 = vpop.eup %2851  ;;  %2853 = vrcp.f32 %v1248_v39  ;;  %v1250_v6 = vadd.f32 1.0, %v2850_v55  ;;  %v1262_v38 = vand.u32 2147483648, %v1248_v39  ;;  %v1260_v61 = vand.u32 2147483647, %v1248_v39 }
 0x5a8   :  { %v1267_v53 = vmul.f32 %v2852_v33, %v1249_v32  ;;  %vm1272_vm0 = vweird.f32 %v2852_v33  ;;  %vm1256_vm10 = vweird.f32 %v1248_v39 }
 0x5a9   :  { %2855 = vrcp.f32 %v1250_v6  ;;  %vm1273_vm1 = vmor %vm1271_vm15, %vm1272_vm0  ;;  %v1263_v47 = vor.u32 1.1754944e-38, %v1262_v38  ;;  %vm1261_vm13 = vcmp.eq.f32.partialorder %v1260_v61, 8.507059e+37  ;;  %vm1286_vm0 = vweird.f32 %v1250_v6  ;;  %v2977_v61 = vld [vmem:[#allocation11 + $0x160] sm:$0xff] }
 0x5aa   :  { %v1268_v15 = vsub.f32 1.0, %v1267_v53  ;;  %2857 = vtanh.f32 %v1197_v60 }
 0x5ac   :  { %v1269_v62 = vmul.f32 %v2852_v33, %v1268_v15 }
 0x5ad   :  { %v2854_v41 = vpop.eup %2853 }
 0x5ae   :  { %v1252_v54 = vmul.f32 %v2854_v41, %v1248_v39  ;;  %v1270_v59 = vadd.f32 %v2852_v33, %v1269_v62  ;;  %vm1257_vm2 = vweird.f32 %v2854_v41 }
 0x5af   :  { %v2856_v57 = vpop.eup %2855  ;;  %vm1258_vm12 = vmor %vm1256_vm10, %vm1257_vm2  ;;  %vm5099_vm2 = vcmask 64512  }
 0x5b0   :  { %v1253_v3 = vsub.f32 1.0, %v1252_v54  ;;  %v1282_v10 = vmul.f32 %v2856_v57, %v1250_v6  ;;  %v1274_v53 = vsel %vm1273_vm1, %v2852_v33, %v1270_v59  ;;  %v2858_v54 = vpop.eup %2857  ;;  %vm1287_vm14 = vweird.f32 %v2856_v57  ;;  %v5063_v59 = vld [vmem:[#allocation70_spill] sm:$0xff]  ;;  %vm5100_vm10 = vmmov %vm5099_vm2 }
 0x5b1   :  { %v1279_v34 = vsel %vm1276_vm11, %v1278_v0, %v1274_v53  ;;  %v1292_v33 = vand.u32 2147483648, %v1250_v6  ;;  %vm1288_vm15 = vmor %vm1286_vm0, %vm1287_vm14  ;;  %v5066_v53 = vld [vmem:[#allocation82_spill] sm:$0xff] }
 0x5b2   :  { %v1254_v55 = vmul.f32 %v2854_v41, %v1253_v3  ;;  %v1283_v15 = vsub.f32 1.0, %v1282_v10  ;;  %v1297_v40 = vmul.f32 0.0, %v1279_v34  ;;  %v1290_v10 = vand.u32 2147483647, %v1250_v6  ;;  %v2975_v6 = vld [vmem:[#allocation11 + $0x1a0] sm:$0xff] }
 0x5b3   :  { %v1293_v38 = vor.u32 1.1754944e-38, %v1292_v33  ;;  %v2979_v34 = vld [vmem:[#allocation11 + $0x120] sm:$0xff]  ;;  %v5071_v33 = vld [vmem:[#allocation103_spill] sm:$0xff] }
 0x5b4   :  { %v1255_v16 = vadd.f32 %v2854_v41, %v1254_v55  ;;  %v1284_v14 = vmul.f32 %v2856_v57, %v1283_v15  ;;  %vm1291_vm1 = vcmp.eq.f32.partialorder %v1290_v10, 8.507059e+37  ;;  %v5065_v55 = vld [vmem:[#allocation78_spill] sm:$0xff]  ;;  %v2978_v15 = vld [vmem:[#allocation11 + $0x140] sm:$0xff]  ;;  %v5072_v10 = vld [vmem:[#allocation107_spill] sm:$0xff] }
 0x5b6   :  { %v1259_v62 = vsel %vm1258_vm12, %v2854_v41, %v1255_v16  ;;  %v1285_v3 = vadd.f32 %v2856_v57, %v1284_v14  ;;  %v5061_v41 = vld [vmem:[#allocation61_spill] sm:$0xff]  ;;  %v2974_v14 = vld [vmem:[#allocation11 + $0x1c0] sm:$0xff] }
 0x5b7   :  { %v1264_v32 = vsel %vm1261_vm13, %v1263_v47, %v1259_v62  ;;  %v5067_v47 = vld [vmem:[#allocation87_spill] sm:$0xff] }
 0x5b8   :  { %v1298_v56 = vmul.f32 %v2858_v54, %v1264_v32  ;;  %v1289_v45 = vsel %vm1288_vm15, %v2856_v57, %v1285_v3  ;;  %v5064_v57 = vld [vmem:[#allocation74_spill] sm:$0xff]  ;;  %v5068_v62 = vld [vmem:[#allocation91_spill] sm:$0xff]  ;;  %v2980_v54 = vld [vmem:[#allocation11 + $0x100] sm:$0xff] }
 0x5b9   :  { %v1294_v39 = vsel %vm1291_vm1, %v1293_v38, %v1289_v45  ;;  %v5069_v32 = vld [vmem:[#allocation95_spill] sm:$0xff] }
 0x5ba   :  { %v4210_v60 = vadd.f32 %v1298_v56, %v1297_v40  ;;  %v2973_v56 = vld [vmem:[#allocation11 + $0x1e0] sm:$0xff]  ;;  %v5070_v3 = vld [vmem:[#allocation99_spill] sm:$0xff] }
 0x5bb   :  { %v5062_v40 = vld [vmem:[#allocation64_spill] sm:$0xff]  ;;  %v5073_v45 = vld [vmem:[#allocation111_spill] sm:$0xff] }
 0x5bc   :  { %2859 = vtanh.f32 %v4210_v60  ;;  %v5074_v38 = vld [vmem:[#allocation115_spill] sm:$0xff] }
 0x5c2   :  { %v2860_v16 = vpop.eup %2859 }
 0x5c3   :  { %v1301_v0 = vmul.f32 %v2860_v16, %v1294_v39  ;;  %v5086_v39 = vld [vmem:[#allocation28_spill] sm:$0xff] }
 0x5c5   :  { %1318 = vmatmul.f32.vlgmr.msrb.gmra.mxu3 %v1301_v0  ;;  %1806 = vmatmul.f32.vlgmr.msra.gmra.mxu1 %v1301_v0 }
 0x5c6   :  { %1910 = vmatpush.msrb.mxu3 %v5061_v41  ;;  %2461 = vmatpush.msra.mxu1 %v2973_v56 }
 0x5c8   :  { %1911 = vmatpush.msrb.mxu3 %v5062_v40  ;;  %2462 = vmatpush.msra.mxu1 %v2974_v14  ;;  %v5087_v14 = vld [vmem:[#allocation29_spill] sm:$0xff] }
 0x5ca   :  { %1912 = vmatpush.msrb.mxu3 %v5063_v59  ;;  %2463 = vmatpush.msra.mxu1 %v2975_v6 }
 0x5cc   :  { %1913 = vmatpush.msrb.mxu3 %v5064_v57  ;;  %2464 = vmatpush.msra.mxu1 %v2976_v23  ;;  %v5088_v57 = vld [vmem:[#allocation30_spill] sm:$0xff] }
 0x5cd   :  { %1846 = vmatmul.f32.vlgmr.msra.gmra.mxu3 %v1301_v0  ;;  %1886 = vmatmul.f32.vlgmr.msrb.gmra.mxu1 %v1301_v0 }
 0x5ce   :  { %1914 = vmatpush.msrb.mxu3 %v5065_v55  ;;  %2465 = vmatpush.msra.mxu1 %v2977_v61  ;;  %v5089_v61 = vld [vmem:[#allocation31_spill] sm:$0xff] }
 0x5d0   :  { %1915 = vmatpush.msrb.mxu3 %v5066_v53  ;;  %2466 = vmatpush.msra.mxu1 %v2978_v15 }
 0x5d2   :  { %1916 = vmatpush.msrb.mxu3 %v5067_v47  ;;  %2467 = vmatpush.msra.mxu1 %v2979_v34  ;;  %v5090_v47 = vld [vmem:[#allocation32_spill] sm:$0xff] }
 0x5d4   :  { %1917 = vmatpush.msrb.mxu3 %v5068_v62  ;;  %2468 = vmatpush.msra.mxu1 %v2980_v54 }
 0x5d6   :  { %1918 = vmatpush.msrb.mxu3 %v5069_v32  ;;  %2469 = vmatpush.msra.mxu1 %v3764_v37  ;;  %v5075_v37 = vld [vmem:[#allocation119_spill] sm:$0xff]  ;;  %v5091_v32 = vld [vmem:[#allocation34_spill] sm:$0xff] }
 0x5d8   :  { %1919 = vmatpush.msrb.mxu3 %v5070_v3  ;;  %2470 = vmatpush.msra.mxu1 %v3774_v26  ;;  %v2981_v26 = vld [vmem:[#allocation11 + $0x1e8] sm:$0xff] }
 0x5da   :  { %1920 = vmatpush.msrb.mxu3 %v5071_v33  ;;  %2471 = vmatpush.msra.mxu1 %v4990_v19  ;;  %v2982_v19 = vld [vmem:[#allocation11 + $0x1c8] sm:$0xff] }
 0x5db   :  { %v5092_v33 = vld [vmem:[#allocation33_spill] sm:$0xff] }
 0x5dc   :  { %1921 = vmatpush.msrb.mxu3 %v5072_v10  ;;  %2472 = vmatpush.msra.mxu1 %v4993_v35  ;;  %v2983_v35 = vld [vmem:[#allocation11 + $0x1a8] sm:$0xff] }
 0x5de   :  { %1922 = vmatpush.msrb.mxu3 %v5073_v45  ;;  %2473 = vmatpush.msra.mxu1 %v4996_v30  ;;  %v2984_v30 = vld [vmem:[#allocation11 + $0x188] sm:$0xff] }
 0x5e0   :  { %1923 = vmatpush.msrb.mxu3 %v5074_v38  ;;  %2474 = vmatpush.msra.mxu1 %v4999_v46  ;;  %v2986_v46 = vld [vmem:[#allocation11 + $0x148] sm:$0xff] }
 0x5e2   :  { %1924 = vmatpush.msrb.mxu3 %v5075_v37  ;;  %2475 = vmatpush.msra.mxu1 %v5003_v52  ;;  %v2987_v52 = vld [vmem:[#allocation11 + $0x128] sm:$0xff]  ;;  %v5093_v37 = vld [vmem:[#allocation35_spill] sm:$0xff] }
 0x5e4   :  { %1925 = vmatpush.msrb.mxu3 %v4036_v7  ;;  %2476 = vmatpush.msra.mxu1 %v5008_v21  ;;  %v2985_v7 = vld [vmem:[#allocation11 + $0x168] sm:$0xff] }
 0x5e5   :  { %1926 = vmatmul.f32.vlgmr.msrb.gmra.mxu3 %v1301_v0  ;;  %v2988_v21 = vld [vmem:[#allocation11 + $0x108] sm:$0xff] }
 0x5e6   :  { %2541 = vmatpush.msrb.mxu1 %v5012_v24  ;;  %2501 = vmatpush.msra.mxu3 %v2981_v26  ;;  %v2989_v24 = vld [vmem:[#allocation11 + $0xe8] sm:$0xff] }
 0x5e8   :  { %2542 = vmatpush.msrb.mxu1 %v5016_v4  ;;  %2502 = vmatpush.msra.mxu3 %v2982_v19  ;;  %v2990_v4 = vld [vmem:[#allocation11 + $0xc8] sm:$0xff]  ;;  %v5094_v19 = vld [vmem:[#allocation36_spill] sm:$0xff] }
 0x5ea   :  { %2543 = vmatpush.msrb.mxu1 %v5020_v11  ;;  %2503 = vmatpush.msra.mxu3 %v2983_v35  ;;  %v2991_v11 = vld [vmem:[#allocation11 + $0xa8] sm:$0xff] }
 0x5ec   :  { %2544 = vmatpush.msrb.mxu1 %v5024_v48  ;;  %2504 = vmatpush.msra.mxu3 %v2984_v30  ;;  %v2992_v48 = vld [vmem:[#allocation11 + $0x88] sm:$0xff] }
 0x5ee   :  { %2545 = vmatpush.msrb.mxu1 %v5028_v31  ;;  %2505 = vmatpush.msra.mxu3 %v2985_v7  ;;  %v2993_v31 = vld [vmem:[#allocation11 + $0x68] sm:$0xff] }
 0x5ef   :  { %v5095_v7 = vld [vmem:[#allocation37_spill] sm:$0xff] }
 0x5f0   :  { %2546 = vmatpush.msrb.mxu1 %v5032_v5  ;;  %2506 = vmatpush.msra.mxu3 %v2986_v46 }
 0x5f2   :  { %2547 = vmatpush.msrb.mxu1 %v5036_v36  ;;  %2507 = vmatpush.msra.mxu3 %v2987_v52  ;;  %v5083_v36 = vld [vmem:[#allocation26_spill] sm:$0xff] }
 0x5f4   :  { %2548 = vmatpush.msrb.mxu1 %v5040_v58  ;;  %2508 = vmatpush.msra.mxu3 %v2988_v21  ;;  %v5084_v58 = vld [vmem:[#allocation25_spill] sm:$0xff]  ;;  %v5096_v21 = vld [vmem:[#allocation38_spill] sm:$0xff] }
 0x5f6   :  { %2549 = vmatpush.msrb.mxu1 %v5043_v43  ;;  %2509 = vmatpush.msra.mxu3 %v2989_v24 }
 0x5f8   :  { %2550 = vmatpush.msrb.mxu1 %v5046_v44  ;;  %2510 = vmatpush.msra.mxu3 %v2990_v4 }
 0x5fa   :  { %2551 = vmatpush.msrb.mxu1 %v5049_v42  ;;  %2511 = vmatpush.msra.mxu3 %v2991_v11  ;;  %v5097_v11 = vld [vmem:[#allocation39_spill] sm:$0xff] }
 0x5fc   :  { %2552 = vmatpush.msrb.mxu1 %v5052_v12  ;;  %2512 = vmatpush.msra.mxu3 %v2992_v48 }
 0x5fe   :  { %2553 = vmatpush.msrb.mxu1 %v5054_v27  ;;  %2513 = vmatpush.msra.mxu3 %v2993_v31  ;;  %v5085_v27 = vld [vmem:[#allocation27_spill] sm:$0xff] }
 0x600   :  { %2554 = vmatpush.msrb.mxu1 %v5056_v2  ;;  %2514 = vmatpush.msra.mxu3 %v4991_v17  ;;  %v5078_v17 = vld [vmem:[#allocation118_spill] sm:$0xff] }
 0x602   :  { %2555 = vmatpush.msrb.mxu1 %v4038_v18  ;;  %2515 = vmatpush.msra.mxu3 %v4994_v28  ;;  %v5076_v18 = vld [vmem:[#allocation110_spill] sm:$0xff]  ;;  %v5079_v28 = vld [vmem:[#allocation121_spill] sm:$0xff] }
 0x604   :  { %2556 = vmatpush.msrb.mxu1 %v4048_v50  ;;  %2516 = vmatpush.msra.mxu3 %v4997_v29  ;;  %v5077_v50 = vld [vmem:[#allocation114_spill] sm:$0xff] }
 0x605   :  { %v5080_v29 = vld [vmem:[#allocation122_spill] sm:$0xff] }
 0x606   :  { %2581 = vmatpush.msrb.mxu3 %v5000_v22  ;;  %v5081_v22 = vld [vmem:[#allocation123_spill] sm:$0xff] }
 0x608   :  { %2582 = vmatpush.msrb.mxu3 %v5005_v1 }
 0x60a   :  { %2583 = vmatpush.msrb.mxu3 %v5009_v8 }
 0x60c   :  { %2584 = vmatpush.msrb.mxu3 %v5013_v49 }
 0x60e   :  { %2585 = vmatpush.msrb.mxu3 %v5017_v9 }
 0x610   :  { %2586 = vmatpush.msrb.mxu3 %v5021_v63  ;;  %v5082_v63 = vld [vmem:[#allocation24_spill] sm:$0xff] }
 0x612   :  { %2587 = vmatpush.msrb.mxu3 %v5025_v20 }
 0x614   :  { %2588 = vmatpush.msrb.mxu3 %v5029_v51 }
 0x616   :  { %2589 = vmatpush.msrb.mxu3 %v5033_v13 }
 0x618   :  { %2590 = vmatpush.msrb.mxu3 %v5037_v25 }
 0x61a   :  { %2591 = vmatpush.msrb.mxu3 %v5076_v18 }
 0x61c   :  { %2592 = vmatpush.msrb.mxu3 %v5077_v50 }
 0x61e   :  { %2593 = vmatpush.msrb.mxu3 %v5078_v17  ;;  %v5098_v17 = vld [vmem:[#allocation23_spill] sm:$0xff] }
 0x620   :  { %2594 = vmatpush.msrb.mxu3 %v5079_v28 }
 0x622   :  { %2595 = vmatpush.msrb.mxu3 %v5080_v29 }
 0x624   :  { %2596 = vmatpush.msrb.mxu3 %v5081_v22 }
 0x648   :  { %v1319_v1 = vpop.f32.mrf.mxu3 }
 0x649   :  { %v1330_v8 = vperm.slane %v1319_v1, 0  ;;  %v1324_v49 = vrot.slane %v1319_v1, 2  ;;  %v1323_v9 = vrot.slane %v1319_v1, 1  ;;  %v1325_v13 = vrot.slane %v1319_v1, 3 }
 0x64a   :  { %v1326_v44 = vrot.slane %v1319_v1, 4  ;;  %v1327_v16 = vrot.slane %v1319_v1, 5  ;;  %v1328_v41 = vrot.slane %v1319_v1, 6  ;;  %v1329_v6 = vrot.slane %v1319_v1, 7 }
 0x64b   :  { %v1346_v20 = vmul.f32 %v1330_v8, %v5082_v63  ;;  %v1332_v51 = vperm.slane %v1324_v49, 0  ;;  %v1331_v5 = vperm.slane %v1323_v9, 0  ;;  %v1333_v42 = vperm.slane %v1325_v13, 0 }
 0x64c   :  { %v1334_v12 = vperm.slane %v1326_v44, 0  ;;  %v1335_v56 = vperm.slane %v1327_v16, 0  ;;  %v1336_v40 = vperm.slane %v1328_v41, 0  ;;  %v1337_v55 = vperm.slane %v1329_v6, 0 }
 0x64d   :  { %1354 = vadd.xlane.f32.xlu0 %v1346_v20  ;;  %v1348_v25 = vmul.f32 %v1332_v51, %v5083_v36  ;;  %v1347_v43 = vmul.f32 %v1331_v5, %v5084_v58  ;;  %v1349_v2 = vmul.f32 %v1333_v42, %v5085_v27 }
 0x64e   :  { %v1350_v0 = vmul.f32 %v1334_v12, %v5086_v39  ;;  %v1351_v59 = vmul.f32 %v1335_v56, %v5087_v14  ;;  %v1352_v23 = vmul.f32 %v1336_v40, %v5088_v57  ;;  %v1353_v53 = vmul.f32 %v1337_v55, %v5089_v61 }
 0x64f   :  { %1358 = vadd.xlane.f32.xlu2 %v1348_v25  ;;  %1356 = vadd.xlane.f32.xlu1 %v1347_v43 }
 0x655   :  { %1360 = vadd.xlane.f32.xlu0 %v1349_v2 }
 0x657   :  { %1362 = vadd.xlane.f32.xlu1 %v1350_v0 }
 0x65d   :  { %1364 = vadd.xlane.f32.xlu0 %v1351_v59 }
 0x65f   :  { %1366 = vadd.xlane.f32.xlu1 %v1352_v23 }
 0x665   :  { %1368 = vadd.xlane.f32.xlu0 %v1353_v53 }
 0x6c0   :  { %v1355_v15 = vpop.xlane.xlu0 %1354 }
 0x6c1   :  { %v1370_v34 = vadd.f32 %v1355_v15, %v5090_v47 }
 0x6c2   :  { %v1359_v62 = vpop.xlane.xlu2 %1358  ;;  %v1357_v54 = vpop.xlane.xlu1 %1356 }
 0x6c3   :  { %v1372_v3 = vadd.f32 %v1359_v62, %v5091_v32  ;;  %v1371_v10 = vadd.f32 %v1357_v54, %v5092_v33  ;;  %1387 = vperm.xlu2 %2808, %v1370_v34  }
 0x6c5   :  { %1393 = vperm.xlu0 %2809, %v1372_v3   ;;  %1390 = vperm.xlu1 %2807, %v1371_v10  }
 0x6c8   :  { %v1361_v45 = vpop.xlane.xlu0 %1360 }
 0x6c9   :  { %v1373_v26 = vadd.f32 %v1361_v45, %v5093_v37 }
 0x6ca   :  { %v1363_v38 = vpop.xlane.xlu1 %1362 }
 0x6cb   :  { %v1374_v35 = vadd.f32 %v1363_v38, %v5094_v19 }
 0x6cd   :  { %1396 = vperm.xlu0 %2809, %v1373_v26   ;;  %1399 = vperm.xlu2 %2808, %v1374_v35  }
 0x6d0   :  { %v1365_v30 = vpop.xlane.xlu0 %1364 }
 0x6d1   :  { %v1375_v46 = vadd.f32 %v1365_v30, %v5095_v7 }
 0x6d2   :  { %v1367_v52 = vpop.xlane.xlu1 %1366 }
 0x6d3   :  { %v4287_v24 = vadd.f32 %v1367_v52, %v5096_v21  ;;  %1402 = vperm.xlu1 %2807, %v1375_v46  }
 0x6d5   :  { %1405 = vperm.xlu0 %2809, %v4287_v24  }
 0x6d8   :  { %v1369_v4 = vpop.xlane.xlu0 %1368 }
 0x6d9   :  { %v1377_v48 = vadd.f32 %v1369_v4, %v5097_v11 }
 0x6db   :  { %1408 = vperm.xlu2 %2808, %v1377_v48  }
 0x71d   :  { %v1388_v31 = vpop.permute.xlu2 %1387 }
 0x71e   :  { %v1410_v29 = vperm.slane %v1388_v31, %v5098_v17 }
 0x727   :  { %v1400_v22 = vpop.permute.xlu2 %1399 }
 0x728   :  { %v1414_v5 = vperm.slane %v1400_v22, %v5098_v17 }
 0x735   :  { %v1409_v25 = vpop.permute.xlu2 %1408 }
 0x736   :  { %v1417_v16 = vperm.slane %v1409_v25, %v5098_v17 }
 0x737   :  { %v1394_v18 = vpop.permute.xlu0 %1393  ;;  %v1391_v50 = vpop.permute.xlu1 %1390 }
 0x738   :  { %v1411_v28 = vperm.slane %v1391_v50, %v5098_v17  ;;  %v1412_v1 = vperm.slane %v1394_v18, %v5098_v17 }
 0x73a   :  { %v1418_v49 = vsel %vm711_vm3, %v1411_v28, %v1410_v29 }
 0x73b   :  { %v1419_v20 = vsel %vm713_vm4, %v1412_v1, %v1418_v49 }
 0x73f   :  { %v1397_v8 = vpop.permute.xlu0 %1396 }
 0x740   :  { %v1413_v9 = vperm.slane %v1397_v8, %v5098_v17 }
 0x742   :  { %v1420_v51 = vsel %vm715_vm5, %v1413_v9, %v1419_v20 }
 0x743   :  { %v1421_v44 = vsel %vm717_vm6, %v1414_v5, %v1420_v51 }
 0x745   :  { %v1403_v13 = vpop.permute.xlu1 %1402 }
 0x746   :  { %v1415_v43 = vperm.slane %v1403_v13, %v5098_v17 }
 0x747   :  { %v1406_v42 = vpop.permute.xlu0 %1405 }
 0x748   :  { %v1422_v12 = vsel %vm4883_vm7, %v1415_v43, %v1421_v44  ;;  %v1416_v2 = vperm.slane %v1406_v42, %v5098_v17 }
 0x74a   :  { %v1423_v0 = vsel %vm4882_vm8, %v1416_v2, %v1422_v12 }
 0x74b   :  { %v1424_v41 = vsel %vm4881_vm9, %v1417_v16, %v1423_v0 }
 0x74c   :  { %v1426_v56 = vsel %vm5099_vm2, %v1424_v41, -inf }
 0x74d   :  { %1427 = vmax.xlane.f32.xlu1 %v1426_v56 }
 0x7c0   :  { %v1428_v40 = vpop.xlane.xlu1 %1427 }
 0x7c1   :  { %v1431_v59 = vperm.slane %v1428_v40, 1  ;;  %v1430_v6 = vperm.slane %v1428_v40, 0  ;;  %v1433_v53 = vperm.slane %v1428_v40, 3  ;;  %v1432_v15 = vperm.slane %v1428_v40, 2 }
 0x7c2   :  { %v1435_v52 = vperm.slane %v1428_v40, 5  ;;  %v1434_v31 = vperm.slane %v1428_v40, 4 }
 0x7c3   :  { %v1447_v23 = vsub.f32 %v1371_v10, %v1431_v59  ;;  %v1446_v55 = vsub.f32 %v1370_v34, %v1430_v6  ;;  %v1449_v45 = vsub.f32 %v1373_v26, %v1433_v53  ;;  %v1448_v38 = vsub.f32 %v1372_v3, %v1432_v15 }
 0x7c4   :  { %v1451_v34 = vsub.f32 %v1375_v46, %v1435_v52  ;;  %v1450_v10 = vsub.f32 %v1374_v35, %v1434_v31  ;;  %v1437_v26 = vperm.slane %v1428_v40, 7  ;;  %v1436_v3 = vperm.slane %v1428_v40, 6 }
 0x7c5   :  { %v1456_v62 = vmul.f32 1.442695, %v1447_v23  ;;  %v1454_v54 = vmul.f32 1.442695, %v1446_v55  ;;  %v1460_v30 = vmul.f32 1.442695, %v1449_v45 }
 0x7c6   :  { %v1458_v4 = vmul.f32 1.442695, %v1448_v38  ;;  %v1464_v28 = vmul.f32 1.442695, %v1451_v34  ;;  %v1462_v29 = vmul.f32 1.442695, %v1450_v10  ;;  %v1453_v8 = vsub.f32 %v1377_v48, %v1437_v26 }
 0x7c7   :  { %2861 = vpow2.f32 %v1456_v62  ;;  %v1452_v49 = vsub.f32 %v4287_v24, %v1436_v3 }
 0x7c8   :  { %2863 = vpow2.f32 %v1454_v54  ;;  %v1468_v46 = vmul.f32 1.442695, %v1453_v8 }
 0x7c9   :  { %2865 = vpow2.f32 %v1460_v30  ;;  %v1466_v9 = vmul.f32 1.442695, %v1452_v49 }
 0x7ca   :  { %2867 = vpow2.f32 %v1458_v4 }
 0x7cb   :  { %2869 = vpow2.f32 %v1464_v28 }
 0x7cc   :  { %2871 = vpow2.f32 %v1462_v29 }
 0x7cd   :  { %v4307_v18 = vpop.eup %2861  ;;  %2873 = vpow2.f32 %v1468_v46 }
 0x7ce   :  { %v4309_v50 = vpop.eup %2863  ;;  %1482 = vperm.xlu2 %2808, %v4307_v18   ;;  %2875 = vpow2.f32 %v1466_v9 }
 0x7cf   :  { %1479 = vperm.xlu0 %2809, %v4309_v50   ;;  %v4313_v22 = vpop.eup %2865 }
 0x7d0   :  { %v4315_v1 = vpop.eup %2867 }
 0x7d1   :  { %v4320_v35 = vpop.eup %2869 }
 0x7d2   :  { %v4322_v20 = vpop.eup %2871 }
 0x7d3   :  { %v4326_v51 = vpop.eup %2873 }
 0x7d4   :  { %v4328_v5 = vpop.eup %2875 }
 0x7d6   :  { %1488 = vperm.xlu2 %2808, %v4313_v22  }
 0x7d7   :  { %1485 = vperm.xlu0 %2809, %v4315_v1  }
 0x7de   :  { %1494 = vperm.xlu2 %2808, %v4320_v35  }
 0x7df   :  { %1491 = vperm.xlu0 %2809, %v4322_v20  }
 0x7e6   :  { %1500 = vperm.xlu2 %2808, %v4326_v51  }
 0x7e7   :  { %1497 = vperm.xlu0 %2809, %v4328_v5  }
 0x828   :  { %v1483_v24 = vpop.permute.xlu2 %1482 }
 0x829   :  { %v1503_v12 = vperm.slane %v1483_v24, %v5098_v17 }
 0x830   :  { %v1489_v13 = vpop.permute.xlu2 %1488 }
 0x831   :  { %v1505_v56 = vperm.slane %v1489_v13, %v5098_v17 }
 0x838   :  { %v1495_v43 = vpop.permute.xlu2 %1494 }
 0x839   :  { %v1507_v23 = vperm.slane %v1495_v43, %v5098_v17 }
 0x840   :  { %v1501_v59 = vpop.permute.xlu2 %1500 }
 0x841   :  { %v1480_v48 = vpop.permute.xlu0 %1479  ;;  %v1509_v15 = vperm.slane %v1501_v59, %v5098_v17 }
 0x842   :  { %v1502_v44 = vperm.slane %v1480_v48, %v5098_v17 }
 0x844   :  { %v1510_v16 = vsel %vm711_vm3, %v1503_v12, %v1502_v44 }
 0x849   :  { %v1486_v25 = vpop.permute.xlu0 %1485 }
 0x84a   :  { %v1504_v42 = vperm.slane %v1486_v25, %v5098_v17 }
 0x84c   :  { %v1511_v0 = vsel %vm713_vm4, %v1504_v42, %v1510_v16 }
 0x84d   :  { %v1512_v40 = vsel %vm715_vm5, %v1505_v56, %v1511_v0 }
 0x851   :  { %v1492_v2 = vpop.permute.xlu0 %1491 }
 0x852   :  { %v1506_v41 = vperm.slane %v1492_v2, %v5098_v17 }
 0x854   :  { %v1513_v6 = vsel %vm717_vm6, %v1506_v41, %v1512_v40 }
 0x855   :  { %v1514_v62 = vsel %vm4883_vm7, %v1507_v23, %v1513_v6 }
 0x859   :  { %v1498_v55 = vpop.permute.xlu0 %1497 }
 0x85a   :  { %v1508_v53 = vperm.slane %v1498_v55, %v5098_v17 }
 0x85c   :  { %v1515_v54 = vsel %vm4882_vm8, %v1508_v53, %v1514_v62 }
 0x85d   :  { %v1516_v45 = vsel %vm4881_vm9, %v1509_v15, %v1515_v54 }
 0x85e   :  { %v1518_v38 = vsel %vm5100_vm10, %v1516_v45, 0.0 }
 0x85f   :  { %1519 = vadd.xlane.f32.xlu0 %v1518_v38 }
 0x8d2   :  { %v1520_v30 = vpop.xlane.xlu0 %1519 }
 0x8d3   :  { %v1522_v52 = vperm.slane %v1520_v30, 0  ;;  %v1523_v4 = vperm.slane %v1520_v30, 1  ;;  %v4348_v31 = vperm.slane %v1520_v30, 2  ;;  %v4350_v34 = vperm.slane %v1520_v30, 3 }
 0x8d4   :  { %v4352_v10 = vperm.slane %v1520_v30, 5  ;;  %v4355_v28 = vperm.slane %v1520_v30, 7  ;;  %v4359_v8 = vperm.slane %v1520_v30, 4  ;;  %v4361_v9 = vperm.slane %v1520_v30, 6 }
 0x8d5   :  { %2877 = vrcp.f32 %v1522_v52  ;;  %v1562_v26 = vand.u32 2147483647, %v1523_v4  ;;  %v1564_v29 = vand.u32 2147483648, %v1523_v4  ;;  %v1547_v49 = vand.u32 2147483647, %v1522_v52 }
 0x8d6   :  { %2879 = vrcp.f32 %v1523_v4  ;;  %vm1558_vm11 = vweird.f32 %v1523_v4  ;;  %vm1543_vm12 = vweird.f32 %v1522_v52  ;;  %v1549_v25 = vand.u32 2147483648, %v1522_v52 }
 0x8d7   :  { %2881 = vrcp.f32 %v4348_v31  ;;  %vm4368_vm13 = vcmp.eq.f32.partialorder %v1562_v26, 8.507059e+37  ;;  %v1565_v42 = vor.u32 1.1754944e-38, %v1564_v29  ;;  %vm4375_vm14 = vcmp.eq.f32.partialorder %v1547_v49, 8.507059e+37 }
 0x8d8   :  { %2883 = vrcp.f32 %v4350_v34  ;;  %vm1618_vm0 = vweird.f32 %v4352_v10  ;;  %v1550_v23 = vor.u32 1.1754944e-38, %v1549_v25  ;;  %v1624_v62 = vand.u32 2147483648, %v4352_v10 }
 0x8d9   :  { %2885 = vrcp.f32 %v4352_v10  ;;  %v1579_v45 = vand.u32 2147483648, %v4348_v31 }
 0x8da   :  { %2887 = vrcp.f32 %v4355_v28 }
 0x8db   :  { %v2878_v3 = vpop.eup %2877  ;;  %2889 = vrcp.f32 %v4359_v8 }
 0x8dc   :  { %v2880_v46 = vpop.eup %2879  ;;  %v1539_v24 = vmul.f32 %v2878_v3, %v1522_v52  ;;  %vm1544_vm15 = vweird.f32 %v2878_v3  ;;  %2891 = vrcp.f32 %v4361_v9 }
 0x8dd   :  { %v4364_v48 = vpop.eup %2881  ;;  %v1554_v13 = vmul.f32 %v2880_v46, %v1523_v4  ;;  %vm1559_vm1 = vweird.f32 %v2880_v46  ;;  %vm1545_vm2 = vmor %vm1543_vm12, %vm1544_vm15  ;;  %v1577_v4 = vand.u32 2147483647, %v4348_v31  ;;  %vm1588_vm15 = vweird.f32 %v4350_v34 }
 0x8de   :  { %v4366_v43 = vpop.eup %2883  ;;  %v1540_v12 = vsub.f32 1.0, %v1539_v24  ;;  %v1569_v2 = vmul.f32 %v4364_v48, %v4348_v31  ;;  %vm1574_vm10 = vweird.f32 %v4364_v48  ;;  %vm1560_vm9 = vmor %vm1558_vm11, %vm1559_vm1  ;;  %vm1573_vm11 = vweird.f32 %v4348_v31 }
 0x8df   :  { %v1555_v16 = vsub.f32 1.0, %v1554_v13  ;;  %v2886_v41 = vpop.eup %2885  ;;  %v1584_v59 = vmul.f32 %v4366_v43, %v4350_v34  ;;  %vm1648_vm1 = vweird.f32 %v4355_v28 }
 0x8e0   :  { %v1541_v56 = vmul.f32 %v2878_v3, %v1540_v12  ;;  %v1570_v40 = vsub.f32 1.0, %v1569_v2  ;;  %v1614_v55 = vmul.f32 %v2886_v41, %v4352_v10  ;;  %v4383_v53 = vpop.eup %2887  ;;  %vm1619_vm8 = vweird.f32 %v2886_v41 }
 0x8e1   :  { %v1556_v6 = vmul.f32 %v2880_v46, %v1555_v16  ;;  %v1644_v26 = vmul.f32 %v4383_v53, %v4355_v28  ;;  %v1585_v24 = vsub.f32 1.0, %v1584_v59  ;;  %v4394_v13 = vpop.eup %2889  ;;  %vm1620_vm12 = vmor %vm1618_vm0, %vm1619_vm8  ;;  %v1625_v59 = vor.u32 1.1754944e-38, %v1624_v62 }
 0x8e2   :  { %v1542_v15 = vadd.f32 %v2878_v3, %v1541_v56  ;;  %v1571_v54 = vmul.f32 %v4364_v48, %v1570_v40  ;;  %v1615_v30 = vsub.f32 1.0, %v1614_v55  ;;  %v1599_v31 = vmul.f32 %v4394_v13, %v4359_v8  ;;  %v2892_v55 = vpop.eup %2891 }
 0x8e3   :  { %v1557_v38 = vadd.f32 %v2880_v46, %v1556_v6  ;;  %v1645_v2 = vsub.f32 1.0, %v1644_v26  ;;  %v1586_v44 = vmul.f32 %v4366_v43, %v1585_v24  ;;  %vm1589_vm8 = vweird.f32 %v4366_v43 }
 0x8e4   :  { %v1546_v29 = vsel %vm1545_vm2, %v2878_v3, %v1542_v15  ;;  %v1572_v49 = vadd.f32 %v4364_v48, %v1571_v54  ;;  %v1616_v12 = vmul.f32 %v2886_v41, %v1615_v30  ;;  %vm1649_vm0 = vweird.f32 %v4383_v53  ;;  %vm1590_vm2 = vmor %vm1588_vm15, %vm1589_vm8 }
 0x8e5   :  { %v1561_v25 = vsel %vm1560_vm9, %v2880_v46, %v1557_v38  ;;  %v1551_v52 = vsel %vm4375_vm14, %v1550_v23, %v1546_v29  ;;  %v1622_v46 = vand.u32 2147483647, %v4352_v10  ;;  %vm1575_vm9 = vmor %vm1573_vm11, %vm1574_vm10  ;;  %v1646_v0 = vmul.f32 %v4383_v53, %v1645_v2 }
 0x8e6   :  { %v1566_v16 = vsel %vm4368_vm13, %v1565_v42, %v1561_v25  ;;  %v1552_v56 = vmul.f32 %v4309_v50, %v1551_v52  ;;  %v1617_v40 = vadd.f32 %v2886_v41, %v1616_v12  ;;  %v1576_v50 = vsel %vm1575_vm9, %v4364_v48, %v1572_v49  ;;  %vm1650_vm10 = vmor %vm1648_vm1, %vm1649_vm0 }
 0x8e7   :  { %v1567_v3 = vmul.f32 %v4307_v18, %v1566_v16  ;;  %v1580_v42 = vor.u32 1.1754944e-38, %v1579_v45  ;;  %vm1578_vm13 = vcmp.eq.f32.partialorder %v1577_v4, 8.507059e+37  ;;  %vm1623_vm14 = vcmp.eq.f32.partialorder %v1622_v46, 8.507059e+37 }
 0x8e8   :  { %1660 = vperm.xlu2 %2808, %v1552_v56   ;;  %v1621_v18 = vsel %vm1620_vm12, %v2886_v41, %v1617_v40  ;;  %v1587_v10 = vadd.f32 %v4366_v43, %v1586_v44  ;;  %v1600_v48 = vsub.f32 1.0, %v1599_v31  ;;  %v1647_v15 = vadd.f32 %v4383_v53, %v1646_v0 }
 0x8e9   :  { %1665 = vperm.xlu1 %2807, %v1567_v3   ;;  %v1581_v6 = vsel %vm1578_vm13, %v1580_v42, %v1576_v50  ;;  %v1626_v23 = vsel %vm1623_vm14, %v1625_v59, %v1621_v18  ;;  %v1594_v41 = vand.u32 2147483648, %v4350_v34  ;;  %v1654_v62 = vand.u32 2147483648, %v4355_v28 }
 0x8ea   :  { %v1582_v54 = vmul.f32 %v4315_v1, %v1581_v6  ;;  %v1592_v45 = vand.u32 2147483647, %v4350_v34  ;;  %v1627_v38 = vmul.f32 %v4320_v35, %v1626_v23  ;;  %v1652_v30 = vand.u32 2147483647, %v4355_v28 }
 0x8eb   :  { %v1591_v26 = vsel %vm1590_vm2, %v4366_v43, %v1587_v10  ;;  %v1601_v29 = vmul.f32 %v4394_v13, %v1600_v48  ;;  %v1629_v1 = vmul.f32 %v2892_v55, %v4361_v9  ;;  %v1651_v49 = vsel %vm1650_vm10, %v4383_v53, %v1647_v15 }
 0x8ec   :  { %v1595_v24 = vor.u32 1.1754944e-38, %v1594_v41  ;;  %v1655_v34 = vor.u32 1.1754944e-38, %v1654_v62  ;;  %vm1593_vm11 = vcmp.eq.f32.partialorder %v1592_v45, 8.507059e+37  ;;  %vm1653_vm9 = vcmp.eq.f32.partialorder %v1652_v30, 8.507059e+37 }
 0x8ed   :  { %v1602_v28 = vadd.f32 %v4394_v13, %v1601_v29  ;;  %vm1604_vm12 = vweird.f32 %v4394_v13  ;;  %v1630_v52 = vsub.f32 1.0, %v1629_v1  ;;  %v1609_v43 = vand.u32 2147483648, %v4359_v8 }
 0x8ee   :  { %v1596_v35 = vsel %vm1593_vm11, %v1595_v24, %v1591_v26  ;;  %v1656_v25 = vsel %vm1653_vm9, %v1655_v34, %v1651_v49  ;;  %vm1603_vm13 = vweird.f32 %v4359_v8  ;;  %v1607_v2 = vand.u32 2147483647, %v4359_v8 }
 0x8ef   :  { %v1597_v12 = vmul.f32 %v4313_v22, %v1596_v35  ;;  %v1657_v53 = vmul.f32 %v4326_v51, %v1656_v25  ;;  %vm1605_vm14 = vmor %vm1603_vm13, %vm1604_vm12  ;;  %v1631_v56 = vmul.f32 %v2892_v55, %v1630_v52  ;;  %v1610_v4 = vor.u32 1.1754944e-38, %v1609_v43 }
 0x8f0   :  { %1670 = vperm.xlu2 %2808, %v1582_v54   ;;  %v1606_v16 = vsel %vm1605_vm14, %v4394_v13, %v1602_v28  ;;  %vm1608_vm8 = vcmp.eq.f32.partialorder %v1607_v2, 8.507059e+37  ;;  %vm1634_vm0 = vweird.f32 %v2892_v55  ;;  %v1639_v46 = vand.u32 2147483648, %v4361_v9 }
 0x8f1   :  { %1685 = vperm.xlu1 %2807, %v1627_v38   ;;  %v1611_v3 = vsel %vm1608_vm8, %v1610_v4, %v1606_v16  ;;  %v1632_v40 = vadd.f32 %v2892_v55, %v1631_v56  ;;  %vm1633_vm15 = vweird.f32 %v4361_v9  ;;  %v1637_v8 = vand.u32 2147483647, %v4361_v9 }
 0x8f2   :  { %v1612_v22 = vmul.f32 %v4322_v20, %v1611_v3  ;;  %vm1635_vm1 = vmor %vm1633_vm15, %vm1634_vm0  ;;  %v1640_v50 = vor.u32 1.1754944e-38, %v1639_v46  ;;  %vm5105_vm10 = vcmask 1046534   ;;  %vm5106_vm11 = vcmask 1047559  }
 0x8f3   :  { %v1636_v51 = vsel %vm1635_vm1, %v2892_v55, %v1632_v40  ;;  %vm1638_vm2 = vcmp.eq.f32.partialorder %v1637_v8, 8.507059e+37 }
 0x8f4   :  { %v1641_v13 = vsel %vm1638_vm2, %v1640_v50, %v1636_v51 }
 0x8f5   :  { %v1642_v44 = vmul.f32 %v4328_v5, %v1641_v13 }
 0x8f8   :  { %1675 = vperm.xlu2 %2808, %v1597_v12  }
 0x8f9   :  { %1695 = vperm.xlu1 %2807, %v1657_v53  }
 0x900   :  { %1680 = vperm.xlu2 %2808, %v1612_v22  }
 0x908   :  { %1690 = vperm.xlu2 %2808, %v1642_v44  }
 0x942   :  { %v1661_v31 = vpop.permute.xlu2 %1660 }
 0x943   :  { %v1698_v42 = vmul.f32 %v1661_v31, %v5082_v63 }
 0x945   :  { %v1706_v59 = vrot.slane %v1698_v42, 4 }
 0x947   :  { %v1707_v23 = vadd.f32 %v1706_v59, %v1698_v42 }
 0x949   :  { %v1708_v54 = vrot.slane %v1707_v23, 2 }
 0x94a   :  { %v1671_v18 = vpop.permute.xlu2 %1670 }
 0x94b   :  { %v1700_v20 = vmul.f32 %v1671_v18, %v5083_v36  ;;  %v1709_v29 = vadd.f32 %v1708_v54, %v1707_v23 }
 0x94d   :  { %v1718_v9 = vrot.slane %v1700_v20, 4  ;;  %v1710_v2 = vrot.slane %v1709_v29, 1 }
 0x94f   :  { %v1719_v41 = vadd.f32 %v1718_v9, %v1700_v20  ;;  %v1711_v51 = vadd.f32 %v1710_v2, %v1709_v29  ;;  %v3001_v2 = vld [vmem:[#allocation11 + $0x380] sm:$0xff] }
 0x951   :  { %v1720_v26 = vrot.slane %v1719_v41, 2 }
 0x952   :  { %v1676_v0 = vpop.permute.xlu2 %1675 }
 0x953   :  { %v1701_v6 = vmul.f32 %v1676_v0, %v5085_v27  ;;  %v1721_v43 = vadd.f32 %v1720_v26, %v1719_v41 }
 0x955   :  { %v1724_v15 = vrot.slane %v1701_v6, 4  ;;  %v1722_v22 = vrot.slane %v1721_v43, 1 }
 0x957   :  { %v1725_v38 = vadd.f32 %v1724_v15, %v1701_v6  ;;  %v1723_v20 = vadd.f32 %v1722_v22, %v1721_v43  ;;  %v2999_v43 = vld [vmem:[#allocation11 + $0x3a0] sm:$0xff] }
 0x958   :  { %v3009_v22 = vld [vmem:[#allocation11 + $0x300] sm:$0xff] }
 0x959   :  { %v1726_v25 = vrot.slane %v1725_v38, 2 }
 0x95a   :  { %v1681_v10 = vpop.permute.xlu2 %1680 }
 0x95b   :  { %v1666_v48 = vpop.permute.xlu1 %1665  ;;  %v1702_v55 = vmul.f32 %v1681_v10, %v5086_v39  ;;  %v1727_v3 = vadd.f32 %v1726_v25, %v1725_v38  ;;  %v2996_v25 = vld [vmem:[#allocation10 + $0x70] sm:$0xff] }
 0x95c   :  { %v1699_v5 = vmul.f32 %v1666_v48, %v5084_v58 }
 0x95d   :  { %v1730_v45 = vrot.slane %v1702_v55, 4  ;;  %v1728_v31 = vrot.slane %v1727_v3, 1 }
 0x95e   :  { %v1712_v62 = vrot.slane %v1699_v5, 4 }
 0x95f   :  { %v1731_v24 = vadd.f32 %v1730_v45, %v1702_v55  ;;  %v1729_v48 = vadd.f32 %v1728_v31, %v1727_v3  ;;  %v3006_v3 = vld [vmem:[#allocation10 + $0x48] sm:$0xff]  ;;  %v3015_v31 = vld [vmem:[#allocation11 + $0x2a0] sm:$0xff] }
 0x960   :  { %v1713_v30 = vadd.f32 %v1712_v62, %v1699_v5 }
 0x961   :  { %v1732_v56 = vrot.slane %v1731_v24, 2 }
 0x962   :  { %v1714_v1 = vrot.slane %v1713_v30, 2  ;;  %v1691_v49 = vpop.permute.xlu2 %1690 }
 0x963   :  { %v1686_v34 = vpop.permute.xlu1 %1685  ;;  %v1704_v35 = vmul.f32 %v1691_v49, %v5088_v57  ;;  %v1733_v13 = vadd.f32 %v1732_v56, %v1731_v24  ;;  %v3004_v56 = vld [vmem:[#allocation10 + $0x50] sm:$0xff] }
 0x964   :  { %v1715_v28 = vadd.f32 %v1714_v1, %v1713_v30  ;;  %v1703_v52 = vmul.f32 %v1686_v34, %v5087_v14  ;;  %v2994_v34 = vld [vmem:[#allocation10 + $0x78] sm:$0xff] }
 0x965   :  { %v1742_v12 = vrot.slane %v1704_v35, 4  ;;  %v1734_v10 = vrot.slane %v1733_v13, 1 }
 0x966   :  { %v1716_v53 = vrot.slane %v1715_v28, 1  ;;  %v1736_v16 = vrot.slane %v1703_v52, 4 }
 0x967   :  { %v1743_v4 = vadd.f32 %v1742_v12, %v1704_v35  ;;  %v1735_v62 = vadd.f32 %v1734_v10, %v1733_v13  ;;  %v2995_v35 = vld [vmem:[#allocation11 + $0x3e0] sm:$0xff] }
 0x968   :  { %v1717_v40 = vadd.f32 %v1716_v53, %v1715_v28  ;;  %v1737_v46 = vadd.f32 %v1736_v16, %v1703_v52  ;;  %v2997_v28 = vld [vmem:[#allocation11 + $0x3c0] sm:$0xff]  ;;  %v2998_v52 = vld [vmem:[#allocation10 + $0x68] sm:$0xff]  ;;  %v3002_v53 = vld [vmem:[#allocation10 + $0x58] sm:$0xff] }
 0x969   :  { %v1744_v8 = vrot.slane %v1743_v4, 2  ;;  %v3000_v12 = vld [vmem:[#allocation10 + $0x60] sm:$0xff] }
 0x96a   :  { %v1738_v50 = vrot.slane %v1737_v46, 2  ;;  %v1762_v18 = vsel %vm711_vm3, %v1717_v40, %v1711_v51  ;;  %v3003_v16 = vld [vmem:[#allocation11 + $0x360] sm:$0xff] }
 0x96b   :  { %v1696_v44 = vpop.permute.xlu1 %1695  ;;  %v1745_v59 = vadd.f32 %v1744_v8, %v1743_v4  ;;  %v1763_v23 = vsel %vm713_vm4, %v1723_v20, %v1762_v18  ;;  %v3005_v4 = vld [vmem:[#allocation11 + $0x340] sm:$0xff]  ;;  %v3010_v8 = vld [vmem:[#allocation10 + $0x38] sm:$0xff] }
 0x96c   :  { %v1739_v42 = vadd.f32 %v1738_v50, %v1737_v46  ;;  %v1705_v0 = vmul.f32 %v1696_v44, %v5089_v61  ;;  %v1764_v54 = vsel %vm715_vm5, %v1729_v48, %v1763_v23  ;;  %v3007_v40 = vld [vmem:[#allocation11 + $0x320] sm:$0xff]  ;;  %v3012_v50 = vld [vmem:[#allocation10 + $0x30] sm:$0xff]  ;;  %v3014_v44 = vld [vmem:[#allocation10 + $0x28] sm:$0xff] }
 0x96d   :  { %v1746_v15 = vrot.slane %v1745_v59, 1  ;;  %v1765_v30 = vsel %vm717_vm6, %v1735_v62, %v1764_v54  ;;  %v3008_v46 = vld [vmem:[#allocation10 + $0x40] sm:$0xff]  ;;  %v3030_v54 = vld [vmem:[#allocation11 + $0x3a8] sm:$0xff]  ;;  %v3031_v62 = vld [vmem:[#allocation11 + $0x3b0] sm:$0xff] }
 0x96e   :  { %v1740_v6 = vrot.slane %v1739_v42, 1  ;;  %v1748_v9 = vrot.slane %v1705_v0, 4  ;;  %v3011_v51 = vld [vmem:[#allocation11 + $0x2e0] sm:$0xff] }
 0x96f   :  { %v1747_v38 = vadd.f32 %v1746_v15, %v1745_v59  ;;  %v3013_v13 = vld [vmem:[#allocation11 + $0x2c0] sm:$0xff]  ;;  %v3020_v59 = vld [vmem:[#allocation10 + $0x10] sm:$0xff] }
 0x970   :  { %v1749_v55 = vadd.f32 %v1748_v9, %v1705_v0  ;;  %v1741_v5 = vadd.f32 %v1740_v6, %v1739_v42  ;;  %v3016_v18 = vld [vmem:[#allocation10 + $0x20] sm:$0xff]  ;;  %v3018_v0 = vld [vmem:[#allocation10 + $0x18] sm:$0xff]  ;;  %v3022_v9 = vld [vmem:[#allocation10 + $0x8] sm:$0xff] }
 0x971   :  { %v3017_v42 = vld [vmem:[#allocation11 + $0x280] sm:$0xff]  ;;  %v3027_v15 = vld [vmem:[#allocation11 + $0x3f0] sm:$0xff] }
 0x972   :  { %v1750_v41 = vrot.slane %v1749_v55, 2  ;;  %v1766_v29 = vsel %vm4883_vm7, %v1741_v5, %v1765_v30  ;;  %v3019_v20 = vld [vmem:[#allocation11 + $0x260] sm:$0xff]  ;;  %v3028_v5 = vld [vmem:[#allocation11 + $0x3c8] sm:$0xff] }
 0x973   :  { %v1767_v49 = vsel %vm5105_vm10, %v1747_v38, %v1766_v29  ;;  %v3021_v6 = vld [vmem:[#allocation11 + $0x240] sm:$0xff]  ;;  %v3033_v38 = vld [vmem:[#allocation11 + $0x390] sm:$0xff]  ;;  %v3034_v30 = vld [vmem:[#allocation11 + $0x368] sm:$0xff] }
 0x974   :  { %v1751_v45 = vadd.f32 %v1750_v41, %v1749_v55  ;;  %v3023_v23 = vld [vmem:[#allocation11 + $0x220] sm:$0xff]  ;;  %v3026_v55 = vld [vmem:[#allocation11 + $0x3e8] sm:$0xff]  ;;  %v3029_v41 = vld [vmem:[#allocation11 + $0x3d0] sm:$0xff] }
 0x975   :  { %v3024_v10 = vld [vmem:[#allocation10] sm:$0xff]  ;;  %v3036_v29 = vld [vmem:[#allocation11 + $0x348] sm:$0xff] }
 0x976   :  { %v1752_v26 = vrot.slane %v1751_v45, 1  ;;  %v3025_v48 = vld [vmem:[#allocation11 + $0x200] sm:$0xff] }
 0x978   :  { %v1753_v1 = vadd.f32 %v1752_v26, %v1751_v45  ;;  %v3032_v45 = vld [vmem:[#allocation11 + $0x388] sm:$0xff]  ;;  %v3035_v26 = vld [vmem:[#allocation11 + $0x370] sm:$0xff] }
 0x97a   :  { %v1768_v24 = vsel %vm5106_vm11, %v1753_v1, %v1767_v49  ;;  %v3037_v1 = vld [vmem:[#allocation11 + $0x350] sm:$0xff]  ;;  %v3038_v49 = vld [vmem:[#allocation11 + $0x328] sm:$0xff] }
 0x97b   :  { %1786 = vmatmul.f32.vlgmr.msrb.gmra.mxu0 %v1768_v24  ;;  %1826 = vmatmul.f32.vlgmr.msrb.gmra.mxu2 %v1768_v24 }
 0x97c   :  { %1993 = vmatpush.msrb.mxu0 %v2994_v34  ;;  %2481 = vmatpush.msrb.mxu2 %v2995_v35  ;;  %v3040_v34 = vld [vmem:[#allocation11 + $0x308] sm:$0xff]  ;;  %v3041_v35 = vld [vmem:[#allocation11 + $0x310] sm:$0xff] }
 0x97e   :  { %1994 = vmatpush.msrb.mxu0 %v2996_v25  ;;  %2482 = vmatpush.msrb.mxu2 %v2997_v28  ;;  %v3042_v25 = vld [vmem:[#allocation11 + $0x2e8] sm:$0xff]  ;;  %v3043_v28 = vld [vmem:[#allocation11 + $0x2f0] sm:$0xff] }
 0x980   :  { %1995 = vmatpush.msrb.mxu0 %v2998_v52  ;;  %2483 = vmatpush.msrb.mxu2 %v2999_v43  ;;  %v3044_v52 = vld [vmem:[#allocation11 + $0x2c8] sm:$0xff]  ;;  %v3045_v43 = vld [vmem:[#allocation11 + $0x2d0] sm:$0xff] }
 0x982   :  { %1996 = vmatpush.msrb.mxu0 %v3000_v12  ;;  %2484 = vmatpush.msrb.mxu2 %v3001_v2  ;;  %v3046_v12 = vld [vmem:[#allocation11 + $0x2a8] sm:$0xff]  ;;  %v3047_v2 = vld [vmem:[#allocation11 + $0x2b0] sm:$0xff] }
 0x983   :  { %1866 = vmatmul.f32.vlgmr.msra.gmra.mxu0 %v1768_v24  ;;  %1906 = vmatmul.f32.vlgmr.msra.gmra.mxu2 %v1768_v24  ;;  %v3039_v24 = vld [vmem:[#allocation11 + $0x330] sm:$0xff] }
 0x984   :  { %1997 = vmatpush.msrb.mxu0 %v3002_v53  ;;  %2485 = vmatpush.msrb.mxu2 %v3003_v16  ;;  %v3048_v53 = vld [vmem:[#allocation11 + $0x288] sm:$0xff]  ;;  %v3049_v16 = vld [vmem:[#allocation11 + $0x290] sm:$0xff] }
 0x986   :  { %1998 = vmatpush.msrb.mxu0 %v3004_v56  ;;  %2486 = vmatpush.msrb.mxu2 %v3005_v4  ;;  %v3050_v56 = vld [vmem:[#allocation11 + $0x268] sm:$0xff]  ;;  %v3051_v4 = vld [vmem:[#allocation11 + $0x270] sm:$0xff] }
 0x988   :  { %1999 = vmatpush.msrb.mxu0 %v3006_v3  ;;  %2487 = vmatpush.msrb.mxu2 %v3007_v40  ;;  %v3052_v3 = vld [vmem:[#allocation11 + $0x248] sm:$0xff]  ;;  %v3053_v40 = vld [vmem:[#allocation11 + $0x250] sm:$0xff] }
 0x98a   :  { %2000 = vmatpush.msrb.mxu0 %v3008_v46  ;;  %2488 = vmatpush.msrb.mxu2 %v3009_v22  ;;  %v3054_v46 = vld [vmem:[#allocation11 + $0x228] sm:$0xff]  ;;  %v3055_v22 = vld [vmem:[#allocation11 + $0x230] sm:$0xff] }
 0x98c   :  { %2001 = vmatpush.msrb.mxu0 %v3010_v8  ;;  %2489 = vmatpush.msrb.mxu2 %v3011_v51  ;;  %v3056_v8 = vld [vmem:[#allocation11 + $0x208] sm:$0xff]  ;;  %v3057_v51 = vld [vmem:[#allocation11 + $0x210] sm:$0xff] }
 0x98e   :  { %2002 = vmatpush.msrb.mxu0 %v3012_v50  ;;  %2490 = vmatpush.msrb.mxu2 %v3013_v13  ;;  %v5107_v13 = vld [vmem:[#allocation59_spill] sm:$0xff] }
 0x990   :  { %2003 = vmatpush.msrb.mxu0 %v3014_v44  ;;  %2491 = vmatpush.msrb.mxu2 %v3015_v31  ;;  %v1807_v31 = vpop.f32.mrf.mxu1 }
 0x992   :  { %2004 = vmatpush.msrb.mxu0 %v3016_v18  ;;  %2492 = vmatpush.msrb.mxu2 %v3017_v42 }
 0x994   :  { %2005 = vmatpush.msrb.mxu0 %v3018_v0  ;;  %2493 = vmatpush.msrb.mxu2 %v3019_v20  ;;  %v5108_v20 = vld [vmem:[#allocation52_spill] sm:$0xff] }
 0x996   :  { %2006 = vmatpush.msrb.mxu0 %v3020_v59  ;;  %2494 = vmatpush.msrb.mxu2 %v3021_v6  ;;  %v1847_v6 = vpop.f32.mrf.mxu3 }
 0x998   :  { %2007 = vmatpush.msrb.mxu0 %v3022_v9  ;;  %2495 = vmatpush.msrb.mxu2 %v3023_v23 }
 0x99a   :  { %2008 = vmatpush.msrb.mxu0 %v3024_v10  ;;  %2496 = vmatpush.msrb.mxu2 %v3025_v48 }
 0x99c   :  { %2521 = vmatpush.msra.mxu0 %v3026_v55  ;;  %2561 = vmatpush.msra.mxu2 %v3027_v15  ;;  %v5109_v15 = vld [vmem:[#allocation66_spill] sm:$0xff] }
 0x99e   :  { %2522 = vmatpush.msra.mxu0 %v3028_v5  ;;  %2562 = vmatpush.msra.mxu2 %v3029_v41  ;;  %v1927_v41 = vpop.f32.mrf.mxu3 }
 0x9a0   :  { %2523 = vmatpush.msra.mxu0 %v3030_v54  ;;  %2563 = vmatpush.msra.mxu2 %v3031_v62 }
 0x9a2   :  { %2524 = vmatpush.msra.mxu0 %v3032_v45  ;;  %2564 = vmatpush.msra.mxu2 %v3033_v38 }
 0x9a4   :  { %2525 = vmatpush.msra.mxu0 %v3034_v30  ;;  %2565 = vmatpush.msra.mxu2 %v3035_v26 }
 0x9a6   :  { %2526 = vmatpush.msra.mxu0 %v3036_v29  ;;  %2566 = vmatpush.msra.mxu2 %v3037_v1  ;;  %v5110_v1 = vld [vmem:[#allocation54_spill] sm:$0xff] }
 0x9a8   :  { %2527 = vmatpush.msra.mxu0 %v3038_v49  ;;  %2567 = vmatpush.msra.mxu2 %v3039_v24 }
 0x9aa   :  { %2528 = vmatpush.msra.mxu0 %v3040_v34  ;;  %2568 = vmatpush.msra.mxu2 %v3041_v35  ;;  %v1887_v35 = vpop.f32.mrf.mxu1 }
 0x9ac   :  { %2529 = vmatpush.msra.mxu0 %v3042_v25  ;;  %2569 = vmatpush.msra.mxu2 %v3043_v28 }
 0x9ae   :  { %2530 = vmatpush.msra.mxu0 %v3044_v52  ;;  %2570 = vmatpush.msra.mxu2 %v3045_v43 }
 0x9b0   :  { %2531 = vmatpush.msra.mxu0 %v3046_v12  ;;  %2571 = vmatpush.msra.mxu2 %v3047_v2 }
 0x9b2   :  { %2532 = vmatpush.msra.mxu0 %v3048_v53  ;;  %2572 = vmatpush.msra.mxu2 %v3049_v16 }
 0x9b4   :  { %2533 = vmatpush.msra.mxu0 %v3050_v56  ;;  %2573 = vmatpush.msra.mxu2 %v3051_v4 }
 0x9b6   :  { %2534 = vmatpush.msra.mxu0 %v3052_v3  ;;  %2574 = vmatpush.msra.mxu2 %v3053_v40 }
 0x9b8   :  { %2535 = vmatpush.msra.mxu0 %v3054_v46  ;;  %2575 = vmatpush.msra.mxu2 %v3055_v22 }
 0x9ba   :  { %2536 = vmatpush.msra.mxu0 %v3056_v8  ;;  %2576 = vmatpush.msra.mxu2 %v3057_v51 }
 0x9f8   :  { %v1787_v50 = vpop.f32.mrf.mxu0 }
 0x9f9   :  { %v1788_v44 = vadd.f32 %v1787_v50, %v5107_v13 }
 0x9fb   :  { %v1808_v18 = vadd.f32 %v1807_v31, %v1788_v44 }
 0x9fd   :  { %v2781_v42 = vmul.f32 -1.442695, %v1808_v18 }
 0x9fe   :  { %v1827_v0 = vpop.f32.mrf.mxu2 }
 0x9ff   :  { %2893 = vpow2.f32 %v2781_v42  ;;  %v1828_v59 = vadd.f32 %v1827_v0, %v5108_v20 }
 0xa00   :  { %v1867_v30 = vpop.f32.mrf.mxu0 }
 0xa01   :  { %v1848_v9 = vadd.f32 %v1847_v6, %v1828_v59  ;;  %v1868_v49 = vadd.f32 %v1867_v30, %v5110_v1  ;;  %v3059_v30 = vld [vmem:[#allocation11 + $0x3d8] sm:$0xff] }
 0xa03   :  { %v2782_v23 = vmul.f32 -1.442695, %v1848_v9  ;;  %v1888_v52 = vadd.f32 %v1887_v35, %v1868_v49  ;;  %v3062_v49 = vld [vmem:[#allocation11 + $0x378] sm:$0xff] }
 0xa04   :  { %v3065_v35 = vld [vmem:[#allocation11 + $0x318] sm:$0xff] }
 0xa05   :  { %v2894_v10 = vpop.eup %2893  ;;  %2895 = vpow2.f32 %v2782_v23 }
 0xa06   :  { %v1939_v48 = vadd.f32 1.0, %v2894_v10  ;;  %v1907_v55 = vpop.f32.mrf.mxu2 }
 0xa07   :  { %v1908_v5 = vadd.f32 %v1907_v55, %v5109_v15 }
 0xa08   :  { %2897 = vrcp.f32 %v1939_v48  ;;  %v1953_v53 = vand.u32 2147483648, %v1939_v48  ;;  %vm1947_vm12 = vweird.f32 %v1939_v48  ;;  %v1951_v56 = vand.u32 2147483647, %v1939_v48 }
 0xa09   :  { %v1928_v54 = vadd.f32 %v1927_v41, %v1908_v5 }
 0xa0a   :  { %v1954_v22 = vor.u32 1.1754944e-38, %v1953_v53  ;;  %vm1952_vm0 = vcmp.eq.f32.partialorder %v1951_v56, 8.507059e+37  ;;  %v3072_v53 = vld [vmem:[#allocation11 + $0x238] sm:$0xff] }
 0xa0b   :  { %v2896_v62 = vpop.eup %2895  ;;  %v2783_v45 = vmul.f32 -1.442695, %v1928_v54 }
 0xa0c   :  { %v1940_v38 = vadd.f32 1.0, %v2896_v62 }
 0xa0d   :  { %2899 = vpow2.f32 %v2783_v45 }
 0xa0e   :  { %v2898_v26 = vpop.eup %2897  ;;  %2901 = vrcp.f32 %v1940_v38  ;;  %v1968_v4 = vand.u32 2147483648, %v1940_v38  ;;  %v1966_v46 = vand.u32 2147483647, %v1940_v38  ;;  %vm1962_vm8 = vweird.f32 %v1940_v38 }
 0xa0f   :  { %v1943_v29 = vmul.f32 %v2898_v26, %v1939_v48  ;;  %vm1948_vm9 = vweird.f32 %v2898_v26 }
 0xa10   :  { %vm1949_vm13 = vmor %vm1947_vm12, %vm1948_vm9  ;;  %v1969_v50 = vor.u32 1.1754944e-38, %v1968_v4  ;;  %vm1967_vm1 = vcmp.eq.f32.partialorder %v1966_v46, 8.507059e+37  ;;  %vm5111_vm12 = vcmask 1046534  }
 0xa11   :  { %v1944_v24 = vsub.f32 1.0, %v1943_v29  ;;  %v3061_v29 = vld [vmem:[#allocation11 + $0x398] sm:$0xff] }
 0xa13   :  { %v2900_v34 = vpop.eup %2899  ;;  %v1945_v25 = vmul.f32 %v2898_v26, %v1944_v24  ;;  %v3063_v24 = vld [vmem:[#allocation11 + $0x358] sm:$0xff] }
 0xa14   :  { %v2902_v28 = vpop.eup %2901  ;;  %v1941_v43 = vadd.f32 1.0, %v2900_v34  ;;  %v3064_v34 = vld [vmem:[#allocation11 + $0x338] sm:$0xff] }
 0xa15   :  { %v1958_v12 = vmul.f32 %v2902_v28, %v1940_v38  ;;  %v1946_v2 = vadd.f32 %v2898_v26, %v1945_v25  ;;  %vm1963_vm14 = vweird.f32 %v2902_v28  ;;  %v3066_v25 = vld [vmem:[#allocation11 + $0x2f8] sm:$0xff] }
 0xa16   :  { %2903 = vrcp.f32 %v1941_v43  ;;  %vm1964_vm15 = vmor %vm1962_vm8, %vm1963_vm14  ;;  %v1983_v48 = vand.u32 2147483648, %v1941_v43  ;;  %vm1977_vm10 = vweird.f32 %v1941_v43  ;;  %v1981_v5 = vand.u32 2147483647, %v1941_v43 }
 0xa17   :  { %v1959_v16 = vsub.f32 1.0, %v1958_v12  ;;  %2905 = vtanh.f32 %v1888_v52  ;;  %v1950_v40 = vsel %vm1949_vm13, %v2898_v26, %v1946_v2  ;;  %v3060_v26 = vld [vmem:[#allocation11 + $0x3b8] sm:$0xff]  ;;  %vm5112_vm13 = vcmask 1047559   ;;  %vm5114_vm8 = vmmov %vm5111_vm12 }
 0xa18   :  { %v1955_v44 = vsel %vm1952_vm0, %v1954_v22, %v1950_v40  ;;  %v1984_v54 = vor.u32 1.1754944e-38, %v1983_v48  ;;  %vm1982_vm9 = vcmp.eq.f32.partialorder %v1981_v5, 8.507059e+37  ;;  %v3068_v52 = vld [vmem:[#allocation11 + $0x2b8] sm:$0xff]  ;;  %vm5113_vm14 = vcmask 64512   ;;  %vm5115_vm0 = vmmov %vm5112_vm13 }
 0xa19   :  { %v1960_v3 = vmul.f32 %v2902_v28, %v1959_v16  ;;  %v3070_v12 = vld [vmem:[#allocation11 + $0x278] sm:$0xff] }
 0xa1a   :  { %v3071_v2 = vld [vmem:[#allocation11 + $0x258] sm:$0xff] }
 0xa1b   :  { %v1961_v8 = vadd.f32 %v2902_v28, %v1960_v3  ;;  %v3073_v16 = vld [vmem:[#allocation11 + $0x218] sm:$0xff] }
 0xa1c   :  { %v2904_v51 = vpop.eup %2903 }
 0xa1d   :  { %v1965_v31 = vsel %vm1964_vm15, %v2902_v28, %v1961_v8  ;;  %v1973_v18 = vmul.f32 %v2904_v51, %v1941_v43  ;;  %v2906_v42 = vpop.eup %2905  ;;  %vm1978_vm2 = vweird.f32 %v2904_v51  ;;  %v3067_v28 = vld [vmem:[#allocation11 + $0x2d8] sm:$0xff]  ;;  %vm5116_vm15 = vmmov %vm5113_vm14 }
 0xa1e   :  { %v1970_v0 = vsel %vm1967_vm1, %v1969_v50, %v1965_v31  ;;  %v1989_v6 = vmul.f32 %v2906_v42, %v1955_v44  ;;  %vm1979_vm11 = vmor %vm1977_vm10, %vm1978_vm2  ;;  %v3069_v43 = vld [vmem:[#allocation11 + $0x298] sm:$0xff] }
 0xa1f   :  { %v1988_v59 = vmul.f32 %v1970_v0, %v4210_v60  ;;  %v1974_v9 = vsub.f32 1.0, %v1973_v18  ;;  %v3058_v60 = vld [vmem:[#allocation11 + $0x3f8] sm:$0xff] }
 0xa21   :  { %v4465_v23 = vadd.f32 %v1989_v6, %v1988_v59  ;;  %v1975_v10 = vmul.f32 %v2904_v51, %v1974_v9 }
 0xa23   :  { %2907 = vtanh.f32 %v4465_v23  ;;  %v1976_v55 = vadd.f32 %v2904_v51, %v1975_v10 }
 0xa25   :  { %v1980_v41 = vsel %vm1979_vm11, %v2904_v51, %v1976_v55 }
 0xa26   :  { %v1985_v45 = vsel %vm1982_vm9, %v1984_v54, %v1980_v41 }
 0xa29   :  { %v2908_v62 = vpop.eup %2907 }
 0xa2a   :  { %v1992_v38 = vmul.f32 %v2908_v62, %v1985_v45 }
 0xa2c   :  { %2009 = vmatmul.f32.vlgmr.msrb.gmra.mxu0 %v1992_v38  ;;  %2497 = vmatmul.f32.vlgmr.msrb.gmra.mxu2 %v1992_v38 }
 0xa2d   :  { %2601 = vmatpush.msrb.mxu0 %v3058_v60 }
 0xa2f   :  { %2602 = vmatpush.msrb.mxu0 %v3059_v30 }
 0xa31   :  { %2603 = vmatpush.msrb.mxu0 %v3060_v26 }
 0xa33   :  { %2604 = vmatpush.msrb.mxu0 %v3061_v29 }
 0xa34   :  { %2537 = vmatmul.f32.vlgmr.msra.gmra.mxu0 %v1992_v38  ;;  %2577 = vmatmul.f32.vlgmr.msra.gmra.mxu2 %v1992_v38 }
 0xa35   :  { %2605 = vmatpush.msrb.mxu0 %v3062_v49 }
 0xa37   :  { %2606 = vmatpush.msrb.mxu0 %v3063_v24 }
 0xa39   :  { %2607 = vmatpush.msrb.mxu0 %v3064_v34 }
 0xa3b   :  { %2608 = vmatpush.msrb.mxu0 %v3065_v35 }
 0xa3d   :  { %2609 = vmatpush.msrb.mxu0 %v3066_v25 }
 0xa3f   :  { %2610 = vmatpush.msrb.mxu0 %v3067_v28 }
 0xa41   :  { %2611 = vmatpush.msrb.mxu0 %v3068_v52 }
 0xa43   :  { %2612 = vmatpush.msrb.mxu0 %v3069_v43 }
 0xa45   :  { %2613 = vmatpush.msrb.mxu0 %v3070_v12 }
 0xa47   :  { %2614 = vmatpush.msrb.mxu0 %v3071_v2 }
 0xa49   :  { %2615 = vmatpush.msrb.mxu0 %v3072_v53 }
 0xa4b   :  { %2616 = vmatpush.msrb.mxu0 %v3073_v16 }
 0xa4c   :  { %2617 = vmatmul.f32.vlgmr.msrb.gmra.mxu0 %v1992_v38 }
 0xaa9   :  { %v2010_v56 = vpop.f32.mrf.mxu0 }
 0xaaa   :  { %v2021_v4 = vperm.slane %v2010_v56, 0  ;;  %v2015_v3 = vrot.slane %v2010_v56, 2  ;;  %v2014_v40 = vrot.slane %v2010_v56, 1  ;;  %v2020_v51 = vrot.slane %v2010_v56, 7 }
 0xaab   :  { %v2016_v31 = vrot.slane %v2010_v56, 3  ;;  %v2017_v6 = vrot.slane %v2010_v56, 4  ;;  %v2018_v48 = vrot.slane %v2010_v56, 5  ;;  %v2019_v41 = vrot.slane %v2010_v56, 6 }
 0xaac   :  { %v2037_v46 = vmul.f32 %v2021_v4, %v5082_v63  ;;  %v2023_v22 = vperm.slane %v2015_v3, 0  ;;  %v2022_v8 = vperm.slane %v2014_v40, 0  ;;  %v2028_v18 = vperm.slane %v2020_v51, 0 }
 0xaad   :  { %v2024_v42 = vperm.slane %v2016_v31, 0  ;;  %v2025_v9 = vperm.slane %v2017_v6, 0  ;;  %v2026_v55 = vperm.slane %v2018_v48, 0  ;;  %v2027_v54 = vperm.slane %v2019_v41, 0 }
 0xaae   :  { %2045 = vadd.xlane.f32.xlu2 %v2037_v46  ;;  %v2039_v50 = vmul.f32 %v2023_v22, %v5083_v36  ;;  %v2038_v44 = vmul.f32 %v2022_v8, %v5084_v58  ;;  %v2044_v0 = vmul.f32 %v2028_v18, %v5089_v61 }
 0xaaf   :  { %v2040_v59 = vmul.f32 %v2024_v42, %v5085_v27  ;;  %v2041_v10 = vmul.f32 %v2025_v9, %v5086_v39  ;;  %v2042_v5 = vmul.f32 %v2026_v55, %v5087_v14  ;;  %v2043_v62 = vmul.f32 %v2027_v54, %v5088_v57 }
 0xab0   :  { %2049 = vadd.xlane.f32.xlu1 %v2039_v50  ;;  %2047 = vadd.xlane.f32.xlu0 %v2038_v44 }
 0xab6   :  { %2059 = vadd.xlane.f32.xlu2 %v2044_v0 }
 0xab8   :  { %2051 = vadd.xlane.f32.xlu0 %v2040_v59 }
 0xac0   :  { %2053 = vadd.xlane.f32.xlu0 %v2041_v10 }
 0xac8   :  { %2055 = vadd.xlane.f32.xlu0 %v2042_v5 }
 0xad0   :  { %2057 = vadd.xlane.f32.xlu0 %v2043_v62 }
 0xb21   :  { %v2046_v45 = vpop.xlane.xlu2 %2045 }
 0xb22   :  { %v2061_v38 = vadd.f32 %v2046_v45, %v5090_v47 }
 0xb23   :  { %v2050_v60 = vpop.xlane.xlu1 %2049  ;;  %v2048_v30 = vpop.xlane.xlu0 %2047 }
 0xb24   :  { %v2063_v26 = vadd.f32 %v2050_v60, %v5091_v32  ;;  %v2062_v29 = vadd.f32 %v2048_v30, %v5092_v33  ;;  %2078 = vperm.xlu0 %2809, %v2061_v38  }
 0xb26   :  { %2084 = vperm.xlu2 %2808, %v2063_v26   ;;  %2081 = vperm.xlu1 %2807, %v2062_v29  }
 0xb29   :  { %v2060_v25 = vpop.xlane.xlu2 %2059 }
 0xb2a   :  { %v4482_v47 = vadd.f32 %v2060_v25, %v5097_v11 }
 0xb2b   :  { %v2052_v49 = vpop.xlane.xlu0 %2051 }
 0xb2c   :  { %v2064_v24 = vadd.f32 %v2052_v49, %v5093_v37 }
 0xb2e   :  { %2087 = vperm.xlu0 %2809, %v2064_v24  }
 0xb33   :  { %v2054_v34 = vpop.xlane.xlu0 %2053 }
 0xb34   :  { %v2065_v35 = vadd.f32 %v2054_v34, %v5094_v19 }
 0xb36   :  { %2090 = vperm.xlu0 %2809, %v2065_v35  }
 0xb3b   :  { %v2056_v28 = vpop.xlane.xlu0 %2055 }
 0xb3c   :  { %v2066_v32 = vadd.f32 %v2056_v28, %v5095_v7 }
 0xb3e   :  { %2099 = vperm.xlu0 %2809, %v4482_v47   ;;  %2093 = vperm.xlu1 %2807, %v2066_v32  }
 0xb43   :  { %v2058_v33 = vpop.xlane.xlu0 %2057 }
 0xb44   :  { %v4487_v52 = vadd.f32 %v2058_v33, %v5096_v21 }
 0xb46   :  { %2096 = vperm.xlu2 %2808, %v4487_v52  }
 0xb80   :  { %v2085_v12 = vpop.permute.xlu2 %2084 }
 0xb81   :  { %v2103_v56 = vperm.slane %v2085_v12, %v5098_v17 }
 0xb96   :  { %v2079_v37 = vpop.permute.xlu0 %2078 }
 0xb97   :  { %v2101_v11 = vperm.slane %v2079_v37, %v5098_v17 }
 0xb98   :  { %v2082_v19 = vpop.permute.xlu1 %2081 }
 0xb99   :  { %v2102_v53 = vperm.slane %v2082_v19, %v5098_v17 }
 0xb9b   :  { %v2109_v7 = vsel %vm711_vm3, %v2102_v53, %v2101_v11 }
 0xb9c   :  { %v2110_v3 = vsel %vm713_vm4, %v2103_v56, %v2109_v7 }
 0xba0   :  { %v2088_v43 = vpop.permute.xlu0 %2087  ;;  %v2097_v4 = vpop.permute.xlu2 %2096 }
 0xba1   :  { %v2104_v16 = vperm.slane %v2088_v43, %v5098_v17  ;;  %v2107_v51 = vperm.slane %v2097_v4, %v5098_v17 }
 0xba3   :  { %v2111_v22 = vsel %vm715_vm5, %v2104_v16, %v2110_v3 }
 0xba8   :  { %v2091_v2 = vpop.permute.xlu0 %2090 }
 0xba9   :  { %v2105_v21 = vperm.slane %v2091_v2, %v5098_v17 }
 0xbab   :  { %v2112_v50 = vsel %vm717_vm6, %v2105_v21, %v2111_v22 }
 0xbb0   :  { %v2094_v40 = vpop.permute.xlu1 %2093  ;;  %v2100_v46 = vpop.permute.xlu0 %2099 }
 0xbb1   :  { %v2106_v8 = vperm.slane %v2094_v40, %v5098_v17  ;;  %v2108_v31 = vperm.slane %v2100_v46, %v5098_v17 }
 0xbb3   :  { %v2113_v44 = vsel %vm4883_vm7, %v2106_v8, %v2112_v50 }
 0xbb4   :  { %v2114_v18 = vsel %vm5111_vm12, %v2107_v51, %v2113_v44 }
 0xbb5   :  { %v2115_v42 = vsel %vm5112_vm13, %v2108_v31, %v2114_v18 }
 0xbb6   :  { %v2117_v0 = vsel %vm5113_vm14, %v2115_v42, -inf }
 0xbb7   :  { %2118 = vmax.xlane.f32.xlu1 %v2117_v0 }
 0xc2a   :  { %v2119_v59 = vpop.xlane.xlu1 %2118 }
 0xc2b   :  { %v2122_v6 = vperm.slane %v2119_v59, 1  ;;  %v2121_v9 = vperm.slane %v2119_v59, 0  ;;  %v2124_v55 = vperm.slane %v2119_v59, 3  ;;  %v2123_v5 = vperm.slane %v2119_v59, 2 }
 0xc2c   :  { %v2126_v30 = vperm.slane %v2119_v59, 5  ;;  %v2125_v34 = vperm.slane %v2119_v59, 4 }
 0xc2d   :  { %v2138_v10 = vsub.f32 %v2062_v29, %v2122_v6  ;;  %v2137_v48 = vsub.f32 %v2061_v38, %v2121_v9  ;;  %v2140_v62 = vsub.f32 %v2064_v24, %v2124_v55  ;;  %v2139_v45 = vsub.f32 %v2063_v26, %v2123_v5 }
 0xc2e   :  { %v2142_v38 = vsub.f32 %v2066_v32, %v2126_v30  ;;  %v2141_v29 = vsub.f32 %v2065_v35, %v2125_v34  ;;  %v2128_v24 = vperm.slane %v2119_v59, 7  ;;  %v2127_v26 = vperm.slane %v2119_v59, 6 }
 0xc2f   :  { %v2147_v41 = vmul.f32 1.442695, %v2138_v10  ;;  %v2145_v54 = vmul.f32 1.442695, %v2137_v48  ;;  %v2151_v60 = vmul.f32 1.442695, %v2140_v62 }
 0xc30   :  { %v2149_v49 = vmul.f32 1.442695, %v2139_v45  ;;  %v2155_v33 = vmul.f32 1.442695, %v2142_v38  ;;  %v2153_v37 = vmul.f32 1.442695, %v2141_v29  ;;  %v2144_v12 = vsub.f32 %v4482_v47, %v2128_v24 }
 0xc31   :  { %2909 = vpow2.f32 %v2147_v41  ;;  %v2143_v32 = vsub.f32 %v4487_v52, %v2127_v26 }
 0xc32   :  { %2911 = vpow2.f32 %v2145_v54  ;;  %v2159_v2 = vmul.f32 1.442695, %v2144_v12 }
 0xc33   :  { %2913 = vpow2.f32 %v2151_v60  ;;  %v2157_v35 = vmul.f32 1.442695, %v2143_v32 }
 0xc34   :  { %2915 = vpow2.f32 %v2149_v49 }
 0xc35   :  { %2917 = vpow2.f32 %v2155_v33 }
 0xc36   :  { %2919 = vpow2.f32 %v2153_v37 }
 0xc37   :  { %v4506_v25 = vpop.eup %2909  ;;  %2921 = vpow2.f32 %v2159_v2 }
 0xc38   :  { %v4508_v28 = vpop.eup %2911  ;;  %2173 = vperm.xlu0 %2809, %v4506_v25   ;;  %2923 = vpow2.f32 %v2157_v35 }
 0xc39   :  { %2170 = vperm.xlu2 %2808, %v4508_v28   ;;  %v4512_v43 = vpop.eup %2913 }
 0xc3a   :  { %v4514_v19 = vpop.eup %2915 }
 0xc3b   :  { %v4520_v53 = vpop.eup %2917 }
 0xc3c   :  { %v4522_v11 = vpop.eup %2919 }
 0xc3d   :  { %v4526_v7 = vpop.eup %2921 }
 0xc3e   :  { %v4528_v16 = vpop.eup %2923 }
 0xc40   :  { %2179 = vperm.xlu0 %2809, %v4512_v43  }
 0xc41   :  { %2176 = vperm.xlu2 %2808, %v4514_v19  }
 0xc48   :  { %2185 = vperm.xlu0 %2809, %v4520_v53  }
 0xc49   :  { %2182 = vperm.xlu2 %2808, %v4522_v11  }
 0xc50   :  { %2191 = vperm.xlu0 %2809, %v4526_v7  }
 0xc51   :  { %2188 = vperm.xlu2 %2808, %v4528_v16  }
 0xc93   :  { %v2171_v47 = vpop.permute.xlu2 %2170 }
 0xc94   :  { %v2193_v40 = vperm.slane %v2171_v47, %v5098_v17 }
 0xc9b   :  { %v2177_v56 = vpop.permute.xlu2 %2176 }
 0xc9c   :  { %v2195_v8 = vperm.slane %v2177_v56, %v5098_v17 }
 0xca3   :  { %v2183_v4 = vpop.permute.xlu2 %2182 }
 0xca4   :  { %v2197_v18 = vperm.slane %v2183_v4, %v5098_v17 }
 0xcaa   :  { %v2174_v52 = vpop.permute.xlu0 %2173 }
 0xcab   :  { %v2194_v3 = vperm.slane %v2174_v52, %v5098_v17  ;;  %v2189_v42 = vpop.permute.xlu2 %2188 }
 0xcac   :  { %v2199_v6 = vperm.slane %v2189_v42, %v5098_v17 }
 0xcad   :  { %v2201_v46 = vsel %vm711_vm3, %v2194_v3, %v2193_v40 }
 0xcae   :  { %v2202_v50 = vsel %vm713_vm4, %v2195_v8, %v2201_v46 }
 0xcb2   :  { %v2180_v21 = vpop.permute.xlu0 %2179 }
 0xcb3   :  { %v2196_v22 = vperm.slane %v2180_v21, %v5098_v17 }
 0xcb5   :  { %v2203_v44 = vsel %vm715_vm5, %v2196_v22, %v2202_v50 }
 0xcb6   :  { %v2204_v0 = vsel %vm717_vm6, %v2197_v18, %v2203_v44 }
 0xcba   :  { %v2186_v51 = vpop.permute.xlu0 %2185 }
 0xcbb   :  { %v2198_v31 = vperm.slane %v2186_v51, %v5098_v17 }
 0xcbd   :  { %v2205_v59 = vsel %vm4883_vm7, %v2198_v31, %v2204_v0 }
 0xcbe   :  { %v2206_v48 = vsel %vm5114_vm8, %v2199_v6, %v2205_v59 }
 0xcc2   :  { %v2192_v9 = vpop.permute.xlu0 %2191 }
 0xcc3   :  { %v2200_v10 = vperm.slane %v2192_v9, %v5098_v17 }
 0xcc5   :  { %v2207_v55 = vsel %vm5115_vm0, %v2200_v10, %v2206_v48 }
 0xcc6   :  { %v2209_v5 = vsel %vm5116_vm15, %v2207_v55, 0.0 }
 0xcc7   :  { %2210 = vadd.xlane.f32.xlu2 %v2209_v5 }
 0xd3a   :  { %v2211_v41 = vpop.xlane.xlu2 %2210 }
 0xd3b   :  { %v2213_v54 = vperm.slane %v2211_v41, 0  ;;  %v2214_v62 = vperm.slane %v2211_v41, 1  ;;  %v4548_v45 = vperm.slane %v2211_v41, 2  ;;  %v4550_v60 = vperm.slane %v2211_v41, 3 }
 0xd3c   :  { %v4552_v30 = vperm.slane %v2211_v41, 5  ;;  %v4555_v49 = vperm.slane %v2211_v41, 7  ;;  %v4558_v29 = vperm.slane %v2211_v41, 4  ;;  %v4561_v24 = vperm.slane %v2211_v41, 6 }
 0xd3d   :  { %2925 = vrcp.f32 %v2213_v54  ;;  %v2253_v34 = vand.u32 2147483647, %v2214_v62  ;;  %v2255_v38 = vand.u32 2147483648, %v2214_v62  ;;  %vm2249_vm1 = vweird.f32 %v2214_v62 }
 0xd3e   :  { %2927 = vrcp.f32 %v2214_v62  ;;  %v2238_v37 = vand.u32 2147483647, %v2213_v54  ;;  %v2343_v12 = vand.u32 2147483647, %v4555_v49  ;;  %v2345_v32 = vand.u32 2147483648, %v4555_v49 }
 0xd3f   :  { %2929 = vrcp.f32 %v4548_v45  ;;  %vm4568_vm2 = vcmp.eq.f32.partialorder %v2253_v34, 8.507059e+37  ;;  %v2256_v56 = vor.u32 1.1754944e-38, %v2255_v38  ;;  %vm2234_vm10 = vweird.f32 %v2213_v54 }
 0xd40   :  { %2931 = vrcp.f32 %v4550_v60  ;;  %v2240_v3 = vand.u32 2147483648, %v2213_v54  ;;  %vm4577_vm11 = vcmp.eq.f32.partialorder %v2238_v37, 8.507059e+37  ;;  %vm2309_vm9 = vweird.f32 %v4552_v30 }
 0xd41   :  { %2933 = vrcp.f32 %v4552_v30  ;;  %v2313_v8 = vand.u32 2147483647, %v4552_v30  ;;  %v2315_v51 = vand.u32 2147483648, %v4552_v30  ;;  %vm2264_vm14 = vweird.f32 %v4548_v45 }
 0xd42   :  { %2935 = vrcp.f32 %v4555_v49  ;;  %v2241_v9 = vor.u32 1.1754944e-38, %v2240_v3  ;;  %v2270_v48 = vand.u32 2147483648, %v4548_v45 }
 0xd43   :  { %v2926_v33 = vpop.eup %2925  ;;  %2937 = vrcp.f32 %v4558_v29 }
 0xd44   :  { %v2928_v26 = vpop.eup %2927  ;;  %v2230_v2 = vmul.f32 %v2926_v33, %v2213_v54  ;;  %vm2235_vm12 = vweird.f32 %v2926_v33  ;;  %2939 = vrcp.f32 %v4561_v24  ;;  %v2271_v22 = vor.u32 1.1754944e-38, %v2270_v48 }
 0xd45   :  { %v4566_v35 = vpop.eup %2929  ;;  %v2245_v47 = vmul.f32 %v2928_v26, %v2214_v62  ;;  %vm2250_vm13 = vweird.f32 %v2928_v26  ;;  %vm2236_vm8 = vmor %vm2234_vm10, %vm2235_vm12  ;;  %v2268_v62 = vand.u32 2147483647, %v4548_v45 }
 0xd46   :  { %v4572_v21 = vpop.eup %2931  ;;  %v2231_v4 = vsub.f32 1.0, %v2230_v2  ;;  %v2260_v40 = vmul.f32 %v4566_v35, %v4548_v45  ;;  %vm2265_vm0 = vweird.f32 %v4566_v35  ;;  %vm2251_vm15 = vmor %vm2249_vm1, %vm2250_vm13  ;;  %vm2314_vm13 = vcmp.eq.f32.partialorder %v2313_v8, 8.507059e+37 }
 0xd47   :  { %v2246_v46 = vsub.f32 1.0, %v2245_v47  ;;  %v2934_v50 = vpop.eup %2933  ;;  %v2275_v18 = vmul.f32 %v4572_v21, %v4550_v60  ;;  %vm4609_vm10 = vmor %vm2264_vm14, %vm2265_vm0  ;;  %vm2269_vm12 = vcmp.eq.f32.partialorder %v2268_v62, 8.507059e+37  ;;  %vm2280_vm14 = vweird.f32 %v4572_v21 }
 0xd48   :  { %v2232_v44 = vmul.f32 %v2926_v33, %v2231_v4  ;;  %v2261_v31 = vsub.f32 1.0, %v2260_v40  ;;  %v2305_v0 = vmul.f32 %v2934_v50, %v4552_v30  ;;  %v2936_v59 = vpop.eup %2935  ;;  %vm2310_vm7 = vweird.f32 %v2934_v50 }
 0xd49   :  { %v2247_v42 = vmul.f32 %v2928_v26, %v2246_v46  ;;  %v2335_v55 = vmul.f32 %v2936_v59, %v4555_v49  ;;  %v4593_v34 = vpop.eup %2937  ;;  %v2276_v2 = vsub.f32 1.0, %v2275_v18  ;;  %vm2340_vm1 = vweird.f32 %v2936_v59 }
 0xd4a   :  { %v2233_v6 = vadd.f32 %v2926_v33, %v2232_v44  ;;  %v2262_v10 = vmul.f32 %v4566_v35, %v2261_v31  ;;  %v2306_v41 = vsub.f32 1.0, %v2305_v0  ;;  %v2290_v45 = vmul.f32 %v4593_v34, %v4558_v29 }
 0xd4b   :  { %v2248_v5 = vadd.f32 %v2928_v26, %v2247_v42  ;;  %v2336_v47 = vsub.f32 1.0, %v2335_v55  ;;  %v2277_v52 = vmul.f32 %v4572_v21, %v2276_v2  ;;  %v2316_v18 = vor.u32 1.1754944e-38, %v2315_v51 }
 0xd4c   :  { %v2237_v38 = vsel %vm2236_vm8, %v2926_v33, %v2233_v6  ;;  %v2263_v37 = vadd.f32 %v4566_v35, %v2262_v10  ;;  %v2307_v40 = vmul.f32 %v2934_v50, %v2306_v41  ;;  %v2940_v6 = vpop.eup %2939  ;;  %v2291_v48 = vsub.f32 1.0, %v2290_v45 }
 0xd4d   :  { %v2252_v4 = vsel %vm2251_vm15, %v2928_v26, %v2248_v5  ;;  %v2242_v3 = vsel %vm4577_vm11, %v2241_v9, %v2237_v38  ;;  %v2337_v33 = vmul.f32 %v2936_v59, %v2336_v47  ;;  %vm2339_vm11 = vweird.f32 %v4555_v49 }
 0xd4e   :  { %v2257_v54 = vsel %vm4568_vm2, %v2256_v56, %v2252_v4  ;;  %v2243_v46 = vmul.f32 %v4508_v28, %v2242_v3  ;;  %v2308_v31 = vadd.f32 %v2934_v50, %v2307_v40  ;;  %vm4616_vm2 = vmor %vm2309_vm9, %vm2310_vm7  ;;  %vm2344_vm9 = vcmp.eq.f32.partialorder %v2343_v12, 8.507059e+37 }
 0xd4f   :  { %v2258_v44 = vmul.f32 %v4506_v25, %v2257_v54  ;;  %v2267_v25 = vsel %vm4609_vm10, %v4566_v35, %v2263_v37  ;;  %v2338_v56 = vadd.f32 %v2936_v59, %v2337_v33  ;;  %vm2341_vm7 = vmor %vm2339_vm11, %vm2340_vm1  ;;  %v2346_v35 = vor.u32 1.1754944e-38, %v2345_v32 }
 0xd50   :  { %2351 = vperm.xlu0 %2809, %v2243_v46   ;;  %v2312_v30 = vsel %vm4616_vm2, %v2934_v50, %v2308_v31  ;;  %v2272_v0 = vsel %vm2269_vm12, %v2271_v22, %v2267_v25  ;;  %v2278_v50 = vadd.f32 %v4572_v21, %v2277_v52  ;;  %v2285_v12 = vand.u32 2147483648, %v4550_v60 }
 0xd51   :  { %2356 = vperm.xlu1 %2807, %v2258_v44   ;;  %v2342_v42 = vsel %vm2341_vm7, %v2936_v59, %v2338_v56  ;;  %v2317_v10 = vsel %vm2314_vm13, %v2316_v18, %v2312_v30  ;;  %v2273_v49 = vmul.f32 %v4514_v19, %v2272_v0  ;;  %vm2279_vm8 = vweird.f32 %v4550_v60 }
 0xd52   :  { %v2347_v9 = vsel %vm2344_vm9, %v2346_v35, %v2342_v42  ;;  %v2283_v32 = vand.u32 2147483647, %v4550_v60  ;;  %v2318_v8 = vmul.f32 %v4520_v53, %v2317_v10  ;;  %vm2281_vm0 = vmor %vm2279_vm8, %vm2280_vm14  ;;  %v2292_v59 = vmul.f32 %v4593_v34, %v2291_v48 }
 0xd53   :  { %v2348_v55 = vmul.f32 %v4526_v7, %v2347_v9  ;;  %v2282_v51 = vsel %vm2281_vm0, %v4572_v21, %v2278_v50  ;;  %v2320_v5 = vmul.f32 %v2940_v6, %v4561_v24  ;;  %v2286_v7 = vor.u32 1.1754944e-38, %v2285_v12 }
 0xd54   :  { %vm2284_vm15 = vcmp.eq.f32.partialorder %v2283_v32, 8.507059e+37  ;;  %v2293_v19 = vadd.f32 %v4593_v34, %v2292_v59  ;;  %vm2295_vm1 = vweird.f32 %v4593_v34  ;;  %v2300_v38 = vand.u32 2147483648, %v4558_v29 }
 0xd55   :  { %2386 = vperm.xlu2 %2808, %v2348_v55   ;;  %v2287_v41 = vsel %vm2284_vm15, %v2286_v7, %v2282_v51  ;;  %v2321_v60 = vsub.f32 1.0, %v2320_v5  ;;  %vm2294_vm10 = vweird.f32 %v4558_v29  ;;  %v2298_v21 = vand.u32 2147483647, %v4558_v29 }
 0xd56   :  { %v2288_v53 = vmul.f32 %v4512_v43, %v2287_v41  ;;  %vm2296_vm2 = vmor %vm2294_vm10, %vm2295_vm1  ;;  %v2301_v47 = vor.u32 1.1754944e-38, %v2300_v38  ;;  %vm2325_vm7 = vweird.f32 %v2940_v6  ;;  %v2330_v40 = vand.u32 2147483648, %v4561_v24 }
 0xd57   :  { %v2297_v37 = vsel %vm2296_vm2, %v4593_v34, %v2293_v19  ;;  %v2322_v2 = vmul.f32 %v2940_v6, %v2321_v60  ;;  %vm2299_vm11 = vcmp.eq.f32.partialorder %v2298_v21, 8.507059e+37  ;;  %vm2324_vm9 = vweird.f32 %v4561_v24 }
 0xd58   :  { %2361 = vperm.xlu0 %2809, %v2273_v49   ;;  %v2302_v4 = vsel %vm2299_vm11, %v2301_v47, %v2297_v37  ;;  %v2328_v43 = vand.u32 2147483647, %v4561_v24  ;;  %vm2326_vm12 = vmor %vm2324_vm9, %vm2325_vm7  ;;  %v2331_v46 = vor.u32 1.1754944e-38, %v2330_v40  ;;  %vm5125_vm14 = vcmask 1045509  }
 0xd59   :  { %2376 = vperm.xlu1 %2807, %v2318_v8   ;;  %v2323_v3 = vadd.f32 %v2940_v6, %v2322_v2  ;;  %v2303_v54 = vmul.f32 %v4522_v11, %v2302_v4  ;;  %vm5126_vm8 = vcmask 1046534   ;;  %vm5127_vm0 = vcmask 1047559   ;;  %vm5129_vm1 = vmmov %vm5125_vm14 }
 0xd5a   :  { %vm2329_vm13 = vcmp.eq.f32.partialorder %v2328_v43, 8.507059e+37  ;;  %vm5128_vm15 = vcmask 64512   ;;  %vm5130_vm10 = vmmov %vm5126_vm8 }
 0xd5b   :  { %v2327_v29 = vsel %vm2326_vm12, %v2940_v6, %v2323_v3  ;;  %vm5131_vm2 = vmmov %vm5127_vm0 }
 0xd5c   :  { %v2332_v34 = vsel %vm2329_vm13, %v2331_v46, %v2327_v29 }
 0xd5d   :  { %v2333_v62 = vmul.f32 %v4528_v16, %v2332_v34 }
 0xd60   :  { %2366 = vperm.xlu0 %2809, %v2288_v53  }
 0xd68   :  { %2371 = vperm.xlu0 %2809, %v2303_v54  }
 0xd70   :  { %2381 = vperm.xlu0 %2809, %v2333_v62  }
 0xdaf   :  { %v2387_v22 = vpop.permute.xlu2 %2386 }
 0xdb0   :  { %v2693_v62 = vperm.slane %v2387_v22, %v5098_v17 }
 0xdc2   :  { %v2352_v33 = vpop.permute.xlu0 %2351 }
 0xdc3   :  { %v2357_v44 = vpop.permute.xlu1 %2356  ;;  %v2389_v11 = vmul.f32 %v2352_v33, %v5082_v63  ;;  %v2686_v63 = vperm.slane %v2352_v33, %v5098_v17 }
 0xdc4   :  { %v2390_v26 = vmul.f32 %v2357_v44, %v5084_v58  ;;  %v2396_v58 = vmul.f32 %v2387_v22, %v5089_v61  ;;  %v2687_v9 = vperm.slane %v2357_v44, %v5098_v17 }
 0xdc5   :  { %v2397_v24 = vrot.slane %v2389_v11, 4 }
 0xdc6   :  { %v2403_v25 = vrot.slane %v2390_v26, 4  ;;  %v2439_v49 = vrot.slane %v2396_v58, 4  ;;  %v2694_v5 = vsel %vm711_vm3, %v2687_v9, %v2686_v63 }
 0xdc7   :  { %v2398_v18 = vadd.f32 %v2397_v24, %v2389_v11 }
 0xdc8   :  { %v2404_v16 = vadd.f32 %v2403_v25, %v2390_v26  ;;  %v2440_v38 = vadd.f32 %v2439_v49, %v2396_v58  ;;  %v2498_v49 = vpop.f32.mrf.mxu2 }
 0xdc9   :  { %v2399_v10 = vrot.slane %v2398_v18, 2 }
 0xdca   :  { %v2362_v31 = vpop.permute.xlu0 %2361  ;;  %v2441_v34 = vrot.slane %v2440_v38, 2 }
 0xdcb   :  { %v2391_v28 = vmul.f32 %v2362_v31, %v5083_v36  ;;  %v2377_v45 = vpop.permute.xlu1 %2376  ;;  %v2405_v36 = vrot.slane %v2404_v16, 2  ;;  %v2400_v59 = vadd.f32 %v2399_v10, %v2398_v18 }
 0xdcc   :  { %v2394_v42 = vmul.f32 %v2377_v45, %v5087_v14  ;;  %v2691_v3 = vperm.slane %v2377_v45, %v5098_v17 }
 0xdcd   :  { %v2409_v56 = vrot.slane %v2391_v28, 4  ;;  %v2406_v51 = vadd.f32 %v2405_v36, %v2404_v16  ;;  %v2401_v47 = vrot.slane %v2400_v59, 1 }
 0xdce   :  { %v2427_v50 = vrot.slane %v2394_v42, 4 }
 0xdcf   :  { %v2410_v0 = vadd.f32 %v2409_v56, %v2391_v28  ;;  %v2407_v2 = vrot.slane %v2406_v51, 1  ;;  %v2402_v25 = vadd.f32 %v2401_v47, %v2400_v59 }
 0xdd0   :  { %v2428_v7 = vadd.f32 %v2427_v50, %v2394_v42 }
 0xdd1   :  { %v2411_v55 = vrot.slane %v2410_v0, 2  ;;  %v2408_v28 = vadd.f32 %v2407_v2, %v2406_v51  ;;  %v2538_v51 = vpop.f32.mrf.mxu0 }
 0xdd2   :  { %v2367_v52 = vpop.permute.xlu0 %2366  ;;  %v2429_v4 = vrot.slane %v2428_v7, 2 }
 0xdd3   :  { %v2392_v30 = vmul.f32 %v2367_v52, %v5085_v27  ;;  %v2688_v27 = vperm.slane %v2362_v31, %v5098_v17  ;;  %v2689_v14 = vperm.slane %v2367_v52, %v5098_v17  ;;  %v2412_v41 = vadd.f32 %v2411_v55, %v2410_v0 }
 0xdd4   :  { %v2430_v24 = vadd.f32 %v2429_v4, %v2428_v7  ;;  %v2453_v22 = vsel %vm711_vm3, %v2408_v28, %v2402_v25 }
 0xdd5   :  { %v2415_v35 = vrot.slane %v2392_v30, 4  ;;  %v2695_v19 = vsel %vm713_vm4, %v2688_v27, %v2694_v5  ;;  %v2413_v54 = vrot.slane %v2412_v41, 1 }
 0xdd6   :  { %v2431_v16 = vrot.slane %v2430_v24, 1 }
 0xdd7   :  { %v2416_v6 = vadd.f32 %v2415_v35, %v2392_v30  ;;  %v2414_v45 = vadd.f32 %v2413_v54, %v2412_v41 }
 0xdd8   :  { %v2432_v36 = vadd.f32 %v2431_v16, %v2430_v24 }
 0xdd9   :  { %v2417_v32 = vrot.slane %v2416_v6, 2  ;;  %v2454_v18 = vsel %vm713_vm4, %v2414_v45, %v2453_v22 }
 0xdda   :  { %v2372_v48 = vpop.permute.xlu0 %2371 }
 0xddb   :  { %v2393_v12 = vmul.f32 %v2372_v48, %v5086_v39  ;;  %v2690_v61 = vperm.slane %v2372_v48, %v5098_v17  ;;  %v2418_v53 = vadd.f32 %v2417_v32, %v2416_v6  ;;  %v2696_v39 = vsel %vm715_vm5, %v2689_v14, %v2695_v19 }
 0xddd   :  { %v2421_v8 = vrot.slane %v2393_v12, 4  ;;  %v2697_v37 = vsel %vm717_vm6, %v2690_v61, %v2696_v39  ;;  %v2419_v33 = vrot.slane %v2418_v53, 1 }
 0xdde   :  { %v2698_v44 = vsel %vm5125_vm14, %v2691_v3, %v2697_v37 }
 0xddf   :  { %v2422_v60 = vadd.f32 %v2421_v8, %v2393_v12  ;;  %v2420_v30 = vadd.f32 %v2419_v33, %v2418_v53 }
 0xde1   :  { %v2423_v21 = vrot.slane %v2422_v60, 2  ;;  %v2455_v58 = vsel %vm715_vm5, %v2420_v30, %v2454_v18 }
 0xde2   :  { %v2382_v40 = vpop.permute.xlu0 %2381 }
 0xde3   :  { %v2424_v43 = vadd.f32 %v2423_v21, %v2422_v60  ;;  %v2395_v29 = vmul.f32 %v2382_v40, %v5088_v57  ;;  %v2692_v46 = vperm.slane %v2382_v40, %v5098_v17  ;;  %v2442_v57 = vadd.f32 %v2441_v34, %v2440_v38  ;;  %v2618_v38 = vpop.f32.mrf.mxu0  ;;  %v2578_v40 = vpop.f32.mrf.mxu2 }
 0xde5   :  { %v2425_v31 = vrot.slane %v2424_v43, 1  ;;  %v2433_v26 = vrot.slane %v2395_v29, 4  ;;  %v2699_v11 = vsel %vm5126_vm8, %v2692_v46, %v2698_v44  ;;  %v2443_v0 = vrot.slane %v2442_v57, 1 }
 0xde6   :  { %v2700_v52 = vsel %vm5127_vm0, %v2693_v62, %v2699_v11 }
 0xde7   :  { %v2434_v56 = vadd.f32 %v2433_v26, %v2395_v29  ;;  %2702 = vst.msk [vmem:[#allocation16] sm:$0xff] %vm5128_vm15, %v2700_v52  ;;  %v2426_v35 = vadd.f32 %v2425_v31, %v2424_v43  ;;  %v2444_v10 = vadd.f32 %v2443_v0, %v2442_v57 }
 0xde9   :  { %v2435_v17 = vrot.slane %v2434_v56, 2  ;;  %v2456_v6 = vsel %vm717_vm6, %v2426_v35, %v2455_v58 }
 0xdea   :  { %v2457_v50 = vsel %vm5129_vm1, %v2432_v36, %v2456_v6 }
 0xdeb   :  { %v2436_v42 = vadd.f32 %v2435_v17, %v2434_v56 }
 0xded   :  { %v2437_v63 = vrot.slane %v2436_v42, 1 }
 0xdef   :  { %v2438_v9 = vadd.f32 %v2437_v63, %v2436_v42 }
 0xdf1   :  { %v2458_v48 = vsel %vm5130_vm10, %v2438_v9, %v2457_v50 }
 0xdf2   :  { %v2459_v55 = vsel %vm5131_vm2, %v2444_v10, %v2458_v48 }
 0xdf3   :  { %2477 = vmatmul.f32.vlgmr.msra.gmra.mxu1 %v2459_v55  ;;  %2684 = vst [vmem:[#allocation13] sm:$0xff] %v2459_v55  ;;  %2517 = vmatmul.f32.vlgmr.msra.gmra.mxu3 %v2459_v55 }
 0xdf4   :  { %2713 = dma.vmem_to_hbm [thread:$0]  %s2709_s24, 128, %s2711_s6, [#allocation4]  }
 0xdfb   :  { %2557 = vmatmul.f32.vlgmr.msrb.gmra.mxu1 %v2459_v55  ;;  %2597 = vmatmul.f32.vlgmr.msrb.gmra.mxu3 %v2459_v55 }
 0xe70   :  { %v2478_v27 = vpop.f32.mrf.mxu1 }
 0xe71   :  { %v2479_v12 = vadd.f32 %v2478_v27, %v5107_v13 }
 0xe73   :  { %v2499_v32 = vadd.f32 %v2498_v49, %v2479_v12 }
 0xe75   :  { %v2784_v14 = vmul.f32 -1.442695, %v2499_v32 }
 0xe76   :  { %v2518_v8 = vpop.f32.mrf.mxu3 }
 0xe77   :  { %2941 = vpow2.f32 %v2784_v14  ;;  %v2519_v61 = vadd.f32 %v2518_v8, %v5108_v20 }
 0xe78   :  { %v2558_v37 = vpop.f32.mrf.mxu1 }
 0xe79   :  { %v2539_v59 = vadd.f32 %v2538_v51, %v2519_v61  ;;  %v2559_v47 = vadd.f32 %v2558_v37, %v5110_v1 }
 0xe7b   :  { %v2785_v5 = vmul.f32 -1.442695, %v2539_v59  ;;  %v2579_v29 = vadd.f32 %v2578_v40, %v2559_v47 }
 0xe7d   :  { %v2942_v7 = vpop.eup %2941  ;;  %2943 = vpow2.f32 %v2785_v5 }
 0xe7e   :  { %v2630_v41 = vadd.f32 1.0, %v2942_v7  ;;  %v2598_v19 = vpop.f32.mrf.mxu3 }
 0xe7f   :  { %v2599_v60 = vadd.f32 %v2598_v19, %v5109_v15 }
 0xe80   :  { %2945 = vrcp.f32 %v2630_v41  ;;  %v2644_v62 = vand.u32 2147483648, %v2630_v41  ;;  %vm2638_vm4 = vweird.f32 %v2630_v41  ;;  %v2642_v44 = vand.u32 2147483647, %v2630_v41 }
 0xe81   :  { %v2619_v53 = vadd.f32 %v2618_v38, %v2599_v60 }
 0xe82   :  { %v2645_v28 = vor.u32 1.1754944e-38, %v2644_v62  ;;  %vm2643_vm7 = vcmp.eq.f32.partialorder %v2642_v44, 8.507059e+37 }
 0xe83   :  { %v2944_v13 = vpop.eup %2943  ;;  %v2786_v39 = vmul.f32 -1.442695, %v2619_v53 }
 0xe84   :  { %v2631_v21 = vadd.f32 1.0, %v2944_v13 }
 0xe85   :  { %2947 = vpow2.f32 %v2786_v39 }
 0xe86   :  { %v2946_v2 = vpop.eup %2945  ;;  %2949 = vrcp.f32 %v2631_v21  ;;  %v2659_v31 = vand.u32 2147483648, %v2631_v21  ;;  %v2657_v11 = vand.u32 2147483647, %v2631_v21  ;;  %vm2653_vm11 = vweird.f32 %v2631_v21 }
 0xe87   :  { %v2634_v20 = vmul.f32 %v2946_v2, %v2630_v41  ;;  %vm2639_vm3 = vweird.f32 %v2946_v2 }
 0xe88   :  { %vm2640_vm5 = vmor %vm2638_vm4, %vm2639_vm3  ;;  %v2660_v52 = vor.u32 1.1754944e-38, %v2659_v31  ;;  %vm2658_vm12 = vcmp.eq.f32.partialorder %v2657_v11, 8.507059e+37 }
 0xe89   :  { %v2635_v4 = vsub.f32 1.0, %v2634_v20 }
 0xe8b   :  { %v2948_v3 = vpop.eup %2947  ;;  %v2636_v54 = vmul.f32 %v2946_v2, %v2635_v4 }
 0xe8c   :  { %v2950_v43 = vpop.eup %2949  ;;  %v2632_v15 = vadd.f32 1.0, %v2948_v3 }
 0xe8d   :  { %v2649_v46 = vmul.f32 %v2950_v43, %v2631_v21  ;;  %v2637_v34 = vadd.f32 %v2946_v2, %v2636_v54  ;;  %vm2654_vm6 = vweird.f32 %v2950_v43 }
 0xe8e   :  { %2951 = vrcp.f32 %v2632_v15  ;;  %vm2655_vm9 = vmor %vm2653_vm11, %vm2654_vm6  ;;  %v2674_v58 = vand.u32 2147483648, %v2632_v15  ;;  %vm2668_vm14 = vweird.f32 %v2632_v15  ;;  %v2672_v6 = vand.u32 2147483647, %v2632_v15 }
 0xe8f   :  { %v2650_v33 = vsub.f32 1.0, %v2649_v46  ;;  %2953 = vtanh.f32 %v2579_v29  ;;  %v2641_v1 = vsel %vm2640_vm5, %v2946_v2, %v2637_v34 }
 0xe90   :  { %v2646_v45 = vsel %vm2643_vm7, %v2645_v28, %v2641_v1  ;;  %v2675_v36 = vor.u32 1.1754944e-38, %v2674_v58  ;;  %vm2673_vm0 = vcmp.eq.f32.partialorder %v2672_v6, 8.507059e+37 }
 0xe91   :  { %v2651_v26 = vmul.f32 %v2950_v43, %v2650_v33 }
 0xe93   :  { %v2652_v25 = vadd.f32 %v2950_v43, %v2651_v26 }
 0xe94   :  { %v2952_v24 = vpop.eup %2951 }
 0xe95   :  { %v2656_v56 = vsel %vm2655_vm9, %v2950_v43, %v2652_v25  ;;  %v2664_v57 = vmul.f32 %v2952_v24, %v2632_v15  ;;  %v2954_v30 = vpop.eup %2953  ;;  %vm2669_vm13 = vweird.f32 %v2952_v24 }
 0xe96   :  { %v2661_v35 = vsel %vm2658_vm12, %v2660_v52, %v2656_v56  ;;  %v2680_v22 = vmul.f32 %v2954_v30, %v2646_v45  ;;  %vm2670_vm8 = vmor %vm2668_vm14, %vm2669_vm13 }
 0xe97   :  { %v2679_v17 = vmul.f32 %v2661_v35, %v4465_v23  ;;  %v2665_v16 = vsub.f32 1.0, %v2664_v57 }
 0xe99   :  { %v2681_v18 = vadd.f32 %v2680_v22, %v2679_v17  ;;  %v2666_v42 = vmul.f32 %v2952_v24, %v2665_v16 }
 0xe9b   :  { %v2667_v0 = vadd.f32 %v2952_v24, %v2666_v42  ;;  %2955 = vtanh.f32 %v2681_v18 }
 0xe9d   :  { %v2671_v63 = vsel %vm2670_vm8, %v2952_v24, %v2667_v0 }
 0xe9e   :  { %v2676_v9 = vsel %vm2673_vm0, %v2675_v36, %v2671_v63 }
 0xea1   :  { %v2956_v23 = vpop.eup %2955 }
 0xea2   :  { %v2683_v10 = vmul.f32 %v2956_v23, %v2676_v9 }
 0xea4   :  { %2685 = vst [vmem:[#allocation14] sm:$0xff] %v2683_v10 }
 0xea5   :  { %2724 = dma.vmem_to_hbm [thread:$0]  %s2720_s27, 128, %s2722_s1, [#allocation15]  }
 0xea6   :  { %2735 = dma.vmem_to_hbm [thread:$0]  %s2731_s14, 128, %s2733_s4, [#allocation15]  }
 0xea7   :  { %3298 = dma.done.wait [#allocation4], 128  }
 0xea8   :  { %3299 = vsyncadd [#allocation4], 4294967168 }
 0xea9   :  { %3300 = dma.done.wait [#allocation15], 256  }
 0xeaa   :  { %3301 = vsyncadd [#allocation15], 4294967040 }
 0xeab   :  { %2748 = vsyncpa [#allocation3], 1 }
 0xeac   :  { %2749 = vsyncpa [#allocation6], 1 }
 0xead   :  { %2750 = vsyncpa [#allocation9], 1 }
 0xeae   :  { %2751 = vsyncpa [#allocation12], 1 }
 0xeaf   :  { %2752 = vsyncpa [#allocation4], 1 }
 0xeb0   :  { %2753 = vsyncpa [#allocation15], 1 }

</bundles_post_ra>
